<compile_context>
chip_gen: v7x
topology: tpu7x:2x2x1
jax: 0.10.0
libtpu: 0.0.40
codegen_flags: <defaults>
</compile_context>

<pallas_src>
import functools

import jax
import jax.numpy as jnp
from jax import lax
from jax.experimental import pallas as pl
from jax.experimental.pallas import tpu as pltpu

BN_EPS = 1e-5
LANE = 128
TAPS = tuple((dy, dx) for dy in range(3) for dx in range(3))


def _round_up(x, m):
  return (x + m - 1) // m * m


def _basic_block_kernel(x_ref, w1_ref, b1_ref, w2_ref, b2_ref, o_ref,
                        col_ref, out1_ref, *, H, W, Cp):
  """Fused conv3x3 -> BN -> ReLU -> conv3x3 -> BN -> +residual -> ReLU.

  One grid step processes one batch element.  Each conv is one im2col matmul
  (H*W, 9*Cp) @ (9*Cp, Cp) accumulated in f32 on the MXU.
  """
  KCp = 9 * Cp

  def zero_halo():
    # Only the 1-pixel halo positions of the im2col buffer hold zero padding;
    # the interior is fully overwritten every step, so never memset the whole
    # buffer.  Taps with dy==0 are lanes [0,3*Cp), dy==2 are [6*Cp,9*Cp).
    z_row = jnp.zeros((1, W, 3 * Cp), col_ref.dtype)
    z_col = jnp.zeros((H, 1, Cp), col_ref.dtype)
    col_ref[0:1, :, 0:3 * Cp] = z_row              # dy == 0: output row 0
    col_ref[H - 1:H, :, 6 * Cp:9 * Cp] = z_row     # dy == 2: output row H-1
    for t in (0, 3, 6):                            # dx == 0: output col 0
      col_ref[:, 0:1, t * Cp:(t + 1) * Cp] = z_col
    for t in (2, 5, 8):                            # dx == 2: output col W-1
      col_ref[:, W - 1:W, t * Cp:(t + 1) * Cp] = z_col

  def fill_taps(src_ref):
    # src_ref: (H, W, Cp).  Writes the valid region of each of the 9 shifted
    # taps into its lane-slab of the im2col buffer (lane offsets are 128-
    # aligned).  Out-of-image positions stay at the zero halo written above.
    for t, (dy, dx) in enumerate(TAPS):
      y0, y1 = max(0, 1 - dy), min(H, H + 1 - dy)
      x0, x1 = max(0, 1 - dx), min(W, W + 1 - dx)
      col_ref[y0:y1, x0:x1, t * Cp:(t + 1) * Cp] = (
          src_ref[y0 + dy - 1:y1 + dy - 1, x0 + dx - 1:x1 + dx - 1, :])

  zero_halo()

  # ---- conv1 (+ folded BN1) + ReLU ----------------------------------------
  fill_taps(x_ref)
  col = col_ref[...].reshape(H * W, KCp)
  acc1 = jnp.dot(col, w1_ref[...], preferred_element_type=jnp.float32)
  out1 = jnp.maximum(acc1 + b1_ref[...], 0.0)
  out1_ref[...] = out1.reshape(H, W, Cp).astype(out1_ref.dtype)

  # ---- conv2 (+ folded BN2) + residual + final ReLU ------------------------
  fill_taps(out1_ref)
  col = col_ref[...].reshape(H * W, KCp)
  acc2 = jnp.dot(col, w2_ref[...], preferred_element_type=jnp.float32)
  out2 = (acc2 + b2_ref[...]).reshape(H, W, Cp)
  residual = x_ref[...].astype(jnp.float32)
  o_ref[...] = jnp.maximum(out2 + residual, 0.0).astype(o_ref.dtype)


def _fold_bn_into_conv(w_oihw, gamma, beta, mean, var, cin_p, cout_p,
                       compute_dtype):
  """Folds eval-mode BatchNorm into the conv weights and a bias.

  Returns a channel-padded (9*cin_p, cout_p) weight matrix laid out to match
  the kernel's im2col buffer (tap-major, channel-minor) and a (1, cout_p)
  float32 bias.
  """
  cout, cin = w_oihw.shape[0], w_oihw.shape[1]
  scale = gamma / jnp.sqrt(var + BN_EPS)                     # (cout,)
  bias = beta - mean * scale                                 # (cout,)
  w_hwio = jnp.transpose(w_oihw, (2, 3, 1, 0)) * scale[None, None, None, :]
  w_hwio = jnp.pad(w_hwio, ((0, 0), (0, 0),
                            (0, cin_p - cin), (0, cout_p - cout)))
  w2d = w_hwio.reshape(9 * cin_p, cout_p).astype(compute_dtype)
  bias_p = jnp.pad(bias, (0, cout_p - cout)).reshape(1, cout_p)
  return w2d, bias_p.astype(jnp.float32)


def basic_block_forward(x_nchw, w1, gamma1, beta1, w2, gamma2, beta2,
                        running_mean1=None, running_var1=None,
                        running_mean2=None, running_var2=None,
                        compute_dtype=jnp.float32):
  """Runs the fused BasicBlock kernel.  x_nchw: (N, C, H, W) float32."""
  N, Cin, H, W = x_nchw.shape
  Cout = w1.shape[0]
  assert Cin == Cout, "downsample=None requires inplanes == planes"
  C = Cout

  if running_mean1 is None: running_mean1 = jnp.zeros((C,), jnp.float32)
  if running_var1 is None: running_var1 = jnp.ones((C,), jnp.float32)
  if running_mean2 is None: running_mean2 = jnp.zeros((C,), jnp.float32)
  if running_var2 is None: running_var2 = jnp.ones((C,), jnp.float32)

  Cp = _round_up(C, LANE)                 # lane-dense channel count

  # NCHW -> NHWC, pad channels with zeros to a multiple of 128 (glue).
  x = jnp.transpose(x_nchw, (0, 2, 3, 1)).astype(jnp.float32)
  x = jnp.pad(x, ((0, 0), (0, 0), (0, 0), (0, Cp - Cin))).astype(compute_dtype)

  w1_2d, b1 = _fold_bn_into_conv(w1, gamma1, beta1, running_mean1,
                                 running_var1, Cp, Cp, compute_dtype)
  w2_2d, b2 = _fold_bn_into_conv(w2, gamma2, beta2, running_mean2,
                                 running_var2, Cp, Cp, compute_dtype)

  kernel = functools.partial(_basic_block_kernel, H=H, W=W, Cp=Cp)

  out_nhwc = pl.pallas_call(
      kernel,
      out_shape=jax.ShapeDtypeStruct((N, H, W, Cp), jnp.float32),
      grid_spec=pltpu.PrefetchScalarGridSpec(
          num_scalar_prefetch=0,
          grid=(N,),
          in_specs=[
              pl.BlockSpec((None, H, W, Cp), lambda n: (n, 0, 0, 0)),  # x
              pl.BlockSpec((9 * Cp, Cp), lambda n: (0, 0)),            # w1
              pl.BlockSpec((1, Cp), lambda n: (0, 0)),                 # bias1
              pl.BlockSpec((9 * Cp, Cp), lambda n: (0, 0)),            # w2
              pl.BlockSpec((1, Cp), lambda n: (0, 0)),                 # bias2
          ],
          out_specs=pl.BlockSpec((None, H, W, Cp), lambda n: (n, 0, 0, 0)),
          scratch_shapes=[
              pltpu.VMEM((H, W, 9 * Cp), compute_dtype),   # im2col buffer
              pltpu.VMEM((H, W, Cp), compute_dtype),       # conv1 activation
          ],
      ),
      compiler_params=pltpu.CompilerParams(
          dimension_semantics=("parallel",),
          # Footprint here is ~2 MiB; keep an explicit, portable budget
          # (re-derive before growing tiles, esp. on v7x's 64 MiB VMEM).
          vmem_limit_bytes=32 * 1024 * 1024,
      ),
  )(x, w1_2d, b1, w2_2d, b2)

  # Drop channel padding, NHWC -> NCHW (glue).
  return jnp.transpose(out_nhwc[:, :, :, :Cout], (0, 3, 1, 2))


def _reference_forward(x, w1, g1, be1, m1, v1, w2, g2, be2, m2, v2):
  """Pure-JAX reference (NCHW, lax.conv, eval-mode BN) for correctness."""
  def bn(y, g, b, m, v):
    s = g / jnp.sqrt(v + BN_EPS)
    return (y - m[None, :, None, None]) * s[None, :, None, None] + \
        b[None, :, None, None]

  dn = ('NCHW', 'OIHW', 'NCHW')
  out = lax.conv_general_dilated(x, w1, (1, 1), 'SAME', dimension_numbers=dn)
  out = jnp.maximum(bn(out, g1, be1, m1, v1), 0.0)
  out = lax.conv_general_dilated(out, w2, (1, 1), 'SAME', dimension_numbers=dn)
  out = bn(out, g2, be2, m2, v2) + x
  return jnp.maximum(out, 0.0)


if __name__ == "__main__":
  # Small shapes: batch=2, inplanes=planes=4, spatial=16x16 (stride=1).
  N, C, H, W = 2, 4, 16, 16

  key = jax.random.PRNGKey(0)
  keys = jax.random.split(key, 11)
  x = jax.random.normal(keys[0], (N, C, H, W), dtype=jnp.float32)
  # conv weights in PyTorch OIHW layout: (out, in, 3, 3)
  w1 = jax.random.normal(keys[1], (C, C, 3, 3), dtype=jnp.float32) * 0.1
  w2 = jax.random.normal(keys[2], (C, C, 3, 3), dtype=jnp.float32) * 0.1
  gamma1 = 1.0 + 0.1 * jax.random.normal(keys[3], (C,), dtype=jnp.float32)
  gamma2 = 1.0 + 0.1 * jax.random.normal(keys[4], (C,), dtype=jnp.float32)
  beta1 = 0.1 * jax.random.normal(keys[5], (C,), dtype=jnp.float32)
  beta2 = 0.1 * jax.random.normal(keys[6], (C,), dtype=jnp.float32)
  # Non-trivial running stats: BN folding is exact, not hard-coded to 0/1.
  mean1 = 0.1 * jax.random.normal(keys[7], (C,), dtype=jnp.float32)
  mean2 = 0.1 * jax.random.normal(keys[8], (C,), dtype=jnp.float32)
  var1 = 1.0 + 0.2 * jax.random.uniform(keys[9], (C,), dtype=jnp.float32)
  var2 = 1.0 + 0.2 * jax.random.uniform(keys[10], (C,), dtype=jnp.float32)

  ref = jax.block_until_ready(_reference_forward(
      x, w1, gamma1, beta1, mean1, var1, w2, gamma2, beta2, mean2, var2))

  # f32 MXU operands: tight correctness check.
  out_f32 = jax.block_until_ready(basic_block_forward(
      x, w1, gamma1, beta1, w2, gamma2, beta2,
      running_mean1=mean1, running_var1=var1,
      running_mean2=mean2, running_var2=var2,
      compute_dtype=jnp.float32))
  assert out_f32.shape == (N, C, H, W), out_f32.shape
  assert jnp.allclose(out_f32, ref, atol=1e-4, rtol=1e-4), (
      float(jnp.max(jnp.abs(out_f32 - ref))))

  # bf16 MXU operands (v6e/v7x fast path), f32 accumulation: loose check.
  out_bf16 = jax.block_until_ready(basic_block_forward(
      x, w1, gamma1, beta1, w2, gamma2, beta2,
      running_mean1=mean1, running_var1=var1,
      running_mean2=mean2, running_var2=var2,
      compute_dtype=jnp.bfloat16))
  assert out_bf16.shape == (N, C, H, W), out_bf16.shape
  assert jnp.allclose(out_bf16, ref, atol=5e-2, rtol=5e-2), (
      float(jnp.max(jnp.abs(out_bf16 - ref))))

  print("KERNEL_OK")
</pallas_src>

<mosaic_0001>
module attributes {stable_mosaic.version = 11 : i64} {
  func.func @_basic_block_kernel(%arg0: i32, %arg1: memref<1x16x16x128xf32, #tpu.memory_space<vmem>>, %arg2: memref<1152x128xf32, #tpu.memory_space<vmem>>, %arg3: memref<1x128xf32, #tpu.memory_space<vmem>>, %arg4: memref<1152x128xf32, #tpu.memory_space<vmem>>, %arg5: memref<1x128xf32, #tpu.memory_space<vmem>>, %arg6: memref<1x16x16x128xf32, #tpu.memory_space<vmem>>, %arg7: memref<16x16x1152xf32, #tpu.memory_space<vmem>>, %arg8: memref<16x16x128xf32, #tpu.memory_space<vmem>>) attributes {dimension_semantics = [#tpu.dimension_semantics<parallel>], iteration_bounds = array<i64: 2>, scalar_prefetch = 0 : i64, scratch_operands = 2 : i64, tpu.core_type = #tpu.core_type<tc>, window_params = [{transform_indices = @transform_0, window_bounds = array<i64: 1, 16, 16, 128>}, {pipeline_mode = #tpu.pipeline_mode<synchronous>, transform_indices = @transform_1, window_bounds = array<i64: 1152, 128>}, {pipeline_mode = #tpu.pipeline_mode<synchronous>, transform_indices = @transform_2, window_bounds = array<i64: 1, 128>}, {pipeline_mode = #tpu.pipeline_mode<synchronous>, transform_indices = @transform_3, window_bounds = array<i64: 1152, 128>}, {pipeline_mode = #tpu.pipeline_mode<synchronous>, transform_indices = @transform_4, window_bounds = array<i64: 1, 128>}, {transform_indices = @transform_5, window_bounds = array<i64: 1, 16, 16, 128>}]} {
    %cst = arith.constant 0.000000e+00 : f32
    %0 = vector.broadcast %cst : f32 to vector<1x16x384xf32>
    %cst_0 = arith.constant 0.000000e+00 : f32
    %1 = vector.broadcast %cst_0 : f32 to vector<16x1x128xf32>
    %c0 = arith.constant 0 : index
    %c0_1 = arith.constant 0 : index
    %c0_2 = arith.constant 0 : index
    %2 = vector.load %arg7[%c0, %c0_1, %c0_2] : memref<16x16x1152xf32, #tpu.memory_space<vmem>>, vector<1x16x384xf32>
    tpu.vector_store %arg7[%c0, %c0_1, %c0_2], %0 {strides = array<i32>} : memref<16x16x1152xf32, #tpu.memory_space<vmem>>, vector<1x16x384xf32>,
    %c15 = arith.constant 15 : index
    %c0_3 = arith.constant 0 : index
    %c768 = arith.constant 768 : index
    %3 = vector.load %arg7[%c15, %c0_3, %c768] : memref<16x16x1152xf32, #tpu.memory_space<vmem>>, vector<1x16x384xf32>
    tpu.vector_store %arg7[%c15, %c0_3, %c768], %0 {strides = array<i32>} : memref<16x16x1152xf32, #tpu.memory_space<vmem>>, vector<1x16x384xf32>,
    %c0_4 = arith.constant 0 : index
    %c0_5 = arith.constant 0 : index
    %c0_6 = arith.constant 0 : index
    %4 = vector.load %arg7[%c0_4, %c0_5, %c0_6] : memref<16x16x1152xf32, #tpu.memory_space<vmem>>, vector<16x1x128xf32>
    tpu.vector_store %arg7[%c0_4, %c0_5, %c0_6], %1 {strides = array<i32>} : memref<16x16x1152xf32, #tpu.memory_space<vmem>>, vector<16x1x128xf32>,
    %c0_7 = arith.constant 0 : index
    %c0_8 = arith.constant 0 : index
    %c384 = arith.constant 384 : index
    %5 = vector.load %arg7[%c0_7, %c0_8, %c384] : memref<16x16x1152xf32, #tpu.memory_space<vmem>>, vector<16x1x128xf32>
    tpu.vector_store %arg7[%c0_7, %c0_8, %c384], %1 {strides = array<i32>} : memref<16x16x1152xf32, #tpu.memory_space<vmem>>, vector<16x1x128xf32>,
    %c0_9 = arith.constant 0 : index
    %c0_10 = arith.constant 0 : index
    %c768_11 = arith.constant 768 : index
    %6 = vector.load %arg7[%c0_9, %c0_10, %c768_11] : memref<16x16x1152xf32, #tpu.memory_space<vmem>>, vector<16x1x128xf32>
    tpu.vector_store %arg7[%c0_9, %c0_10, %c768_11], %1 {strides = array<i32>} : memref<16x16x1152xf32, #tpu.memory_space<vmem>>, vector<16x1x128xf32>,
    %c0_12 = arith.constant 0 : index
    %c15_13 = arith.constant 15 : index
    %c256 = arith.constant 256 : index
    %7 = vector.load %arg7[%c0_12, %c15_13, %c256] : memref<16x16x1152xf32, #tpu.memory_space<vmem>>, vector<16x1x128xf32>
    tpu.vector_store %arg7[%c0_12, %c15_13, %c256], %1 {strides = array<i32>} : memref<16x16x1152xf32, #tpu.memory_space<vmem>>, vector<16x1x128xf32>,
    %c0_14 = arith.constant 0 : index
    %c15_15 = arith.constant 15 : index
    %c640 = arith.constant 640 : index
    %8 = vector.load %arg7[%c0_14, %c15_15, %c640] : memref<16x16x1152xf32, #tpu.memory_space<vmem>>, vector<16x1x128xf32>
    tpu.vector_store %arg7[%c0_14, %c15_15, %c640], %1 {strides = array<i32>} : memref<16x16x1152xf32, #tpu.memory_space<vmem>>, vector<16x1x128xf32>,
    %c0_16 = arith.constant 0 : index
    %c15_17 = arith.constant 15 : index
    %c1024 = arith.constant 1024 : index
    %9 = vector.load %arg7[%c0_16, %c15_17, %c1024] : memref<16x16x1152xf32, #tpu.memory_space<vmem>>, vector<16x1x128xf32>
    tpu.vector_store %arg7[%c0_16, %c15_17, %c1024], %1 {strides = array<i32>} : memref<16x16x1152xf32, #tpu.memory_space<vmem>>, vector<16x1x128xf32>,
    %c0_18 = arith.constant 0 : index
    %c0_19 = arith.constant 0 : index
    %c0_20 = arith.constant 0 : index
    %c0_21 = arith.constant 0 : index
    %10 = vector.load %arg1[%c0_18, %c0_19, %c0_20, %c0_21] : memref<1x16x16x128xf32, #tpu.memory_space<vmem>>, vector<1x15x15x128xf32>
    %11 = vector.shape_cast %10 : vector<1x15x15x128xf32> to vector<15x15x128xf32>
    %c1 = arith.constant 1 : index
    %c1_22 = arith.constant 1 : index
    %c0_23 = arith.constant 0 : index
    %12 = vector.load %arg7[%c1, %c1_22, %c0_23] : memref<16x16x1152xf32, #tpu.memory_space<vmem>>, vector<15x15x128xf32>
    tpu.vector_store %arg7[%c1, %c1_22, %c0_23], %11 {strides = array<i32>} : memref<16x16x1152xf32, #tpu.memory_space<vmem>>, vector<15x15x128xf32>,
    %c0_24 = arith.constant 0 : index
    %c0_25 = arith.constant 0 : index
    %c0_26 = arith.constant 0 : index
    %c0_27 = arith.constant 0 : index
    %13 = vector.load %arg1[%c0_24, %c0_25, %c0_26, %c0_27] : memref<1x16x16x128xf32, #tpu.memory_space<vmem>>, vector<1x15x16x128xf32>
    %14 = vector.shape_cast %13 : vector<1x15x16x128xf32> to vector<15x16x128xf32>
    %c1_28 = arith.constant 1 : index
    %c0_29 = arith.constant 0 : index
    %c128 = arith.constant 128 : index
    %15 = vector.load %arg7[%c1_28, %c0_29, %c128] : memref<16x16x1152xf32, #tpu.memory_space<vmem>>, vector<15x16x128xf32>
    tpu.vector_store %arg7[%c1_28, %c0_29, %c128], %14 {strides = array<i32>} : memref<16x16x1152xf32, #tpu.memory_space<vmem>>, vector<15x16x128xf32>,
    %c0_30 = arith.constant 0 : index
    %c0_31 = arith.constant 0 : index
    %c1_32 = arith.constant 1 : index
    %c0_33 = arith.constant 0 : index
    %16 = vector.load %arg1[%c0_30, %c0_31, %c1_32, %c0_33] : memref<1x16x16x128xf32, #tpu.memory_space<vmem>>, vector<1x15x15x128xf32>
    %17 = vector.shape_cast %16 : vector<1x15x15x128xf32> to vector<15x15x128xf32>
    %c1_34 = arith.constant 1 : index
    %c0_35 = arith.constant 0 : index
    %c256_36 = arith.constant 256 : index
    %18 = vector.load %arg7[%c1_34, %c0_35, %c256_36] : memref<16x16x1152xf32, #tpu.memory_space<vmem>>, vector<15x15x128xf32>
    tpu.vector_store %arg7[%c1_34, %c0_35, %c256_36], %17 {strides = array<i32>} : memref<16x16x1152xf32, #tpu.memory_space<vmem>>, vector<15x15x128xf32>,
    %c0_37 = arith.constant 0 : index
    %c0_38 = arith.constant 0 : index
    %c0_39 = arith.constant 0 : index
    %c0_40 = arith.constant 0 : index
    %19 = vector.load %arg1[%c0_37, %c0_38, %c0_39, %c0_40] : memref<1x16x16x128xf32, #tpu.memory_space<vmem>>, vector<1x16x15x128xf32>
    %20 = vector.shape_cast %19 : vector<1x16x15x128xf32> to vector<16x15x128xf32>
    %c0_41 = arith.constant 0 : index
    %c1_42 = arith.constant 1 : index
    %c384_43 = arith.constant 384 : index
    %21 = vector.load %arg7[%c0_41, %c1_42, %c384_43] : memref<16x16x1152xf32, #tpu.memory_space<vmem>>, vector<16x15x128xf32>
    tpu.vector_store %arg7[%c0_41, %c1_42, %c384_43], %20 {strides = array<i32>} : memref<16x16x1152xf32, #tpu.memory_space<vmem>>, vector<16x15x128xf32>,
    %c0_44 = arith.constant 0 : index
    %c0_45 = arith.constant 0 : index
    %c0_46 = arith.constant 0 : index
    %c0_47 = arith.constant 0 : index
    %22 = vector.load %arg1[%c0_44, %c0_45, %c0_46, %c0_47] : memref<1x16x16x128xf32, #tpu.memory_space<vmem>>, vector<1x16x16x128xf32>
    %23 = vector.shape_cast %22 : vector<1x16x16x128xf32> to vector<16x16x128xf32>
    %c0_48 = arith.constant 0 : index
    %c0_49 = arith.constant 0 : index
    %c512 = arith.constant 512 : index
    %24 = vector.load %arg7[%c0_48, %c0_49, %c512] : memref<16x16x1152xf32, #tpu.memory_space<vmem>>, vector<16x16x128xf32>
    tpu.vector_store %arg7[%c0_48, %c0_49, %c512], %23 {strides = array<i32>} : memref<16x16x1152xf32, #tpu.memory_space<vmem>>, vector<16x16x128xf32>,
    %c0_50 = arith.constant 0 : index
    %c0_51 = arith.constant 0 : index
    %c1_52 = arith.constant 1 : index
    %c0_53 = arith.constant 0 : index
    %25 = vector.load %arg1[%c0_50, %c0_51, %c1_52, %c0_53] : memref<1x16x16x128xf32, #tpu.memory_space<vmem>>, vector<1x16x15x128xf32>
    %26 = vector.shape_cast %25 : vector<1x16x15x128xf32> to vector<16x15x128xf32>
    %c0_54 = arith.constant 0 : index
    %c0_55 = arith.constant 0 : index
    %c640_56 = arith.constant 640 : index
    %27 = vector.load %arg7[%c0_54, %c0_55, %c640_56] : memref<16x16x1152xf32, #tpu.memory_space<vmem>>, vector<16x15x128xf32>
    tpu.vector_store %arg7[%c0_54, %c0_55, %c640_56], %26 {strides = array<i32>} : memref<16x16x1152xf32, #tpu.memory_space<vmem>>, vector<16x15x128xf32>,
    %c0_57 = arith.constant 0 : index
    %c1_58 = arith.constant 1 : index
    %c0_59 = arith.constant 0 : index
    %c0_60 = arith.constant 0 : index
    %28 = vector.load %arg1[%c0_57, %c1_58, %c0_59, %c0_60] : memref<1x16x16x128xf32, #tpu.memory_space<vmem>>, vector<1x15x15x128xf32>
    %29 = vector.shape_cast %28 : vector<1x15x15x128xf32> to vector<15x15x128xf32>
    %c0_61 = arith.constant 0 : index
    %c1_62 = arith.constant 1 : index
    %c768_63 = arith.constant 768 : index
    %30 = vector.load %arg7[%c0_61, %c1_62, %c768_63] : memref<16x16x1152xf32, #tpu.memory_space<vmem>>, vector<15x15x128xf32>
    tpu.vector_store %arg7[%c0_61, %c1_62, %c768_63], %29 {strides = array<i32>} : memref<16x16x1152xf32, #tpu.memory_space<vmem>>, vector<15x15x128xf32>,
    %c0_64 = arith.constant 0 : index
    %c1_65 = arith.constant 1 : index
    %c0_66 = arith.constant 0 : index
    %c0_67 = arith.constant 0 : index
    %31 = vector.load %arg1[%c0_64, %c1_65, %c0_66, %c0_67] : memref<1x16x16x128xf32, #tpu.memory_space<vmem>>, vector<1x15x16x128xf32>
    %32 = vector.shape_cast %31 : vector<1x15x16x128xf32> to vector<15x16x128xf32>
    %c0_68 = arith.constant 0 : index
    %c0_69 = arith.constant 0 : index
    %c896 = arith.constant 896 : index
    %33 = vector.load %arg7[%c0_68, %c0_69, %c896] : memref<16x16x1152xf32, #tpu.memory_space<vmem>>, vector<15x16x128xf32>
    tpu.vector_store %arg7[%c0_68, %c0_69, %c896], %32 {strides = array<i32>} : memref<16x16x1152xf32, #tpu.memory_space<vmem>>, vector<15x16x128xf32>,
    %c0_70 = arith.constant 0 : index
    %c1_71 = arith.constant 1 : index
    %c1_72 = arith.constant 1 : index
    %c0_73 = arith.constant 0 : index
    %34 = vector.load %arg1[%c0_70, %c1_71, %c1_72, %c0_73] : memref<1x16x16x128xf32, #tpu.memory_space<vmem>>, vector<1x15x15x128xf32>
    %35 = vector.shape_cast %34 : vector<1x15x15x128xf32> to vector<15x15x128xf32>
    %c0_74 = arith.constant 0 : index
    %c0_75 = arith.constant 0 : index
    %c1024_76 = arith.constant 1024 : index
    %36 = vector.load %arg7[%c0_74, %c0_75, %c1024_76] : memref<16x16x1152xf32, #tpu.memory_space<vmem>>, vector<15x15x128xf32>
    tpu.vector_store %arg7[%c0_74, %c0_75, %c1024_76], %35 {strides = array<i32>} : memref<16x16x1152xf32, #tpu.memory_space<vmem>>, vector<15x15x128xf32>,
    %c0_77 = arith.constant 0 : index
    %c0_78 = arith.constant 0 : index
    %c0_79 = arith.constant 0 : index
    %37 = vector.load %arg7[%c0_77, %c0_78, %c0_79] : memref<16x16x1152xf32, #tpu.memory_space<vmem>>, vector<16x16x1152xf32>
    %38 = vector.shape_cast %37 : vector<16x16x1152xf32> to vector<256x1152xf32>
    %c0_80 = arith.constant 0 : index
    %c0_81 = arith.constant 0 : index
    %39 = vector.load %arg2[%c0_80, %c0_81] : memref<1152x128xf32, #tpu.memory_space<vmem>>, vector<1152x128xf32>
    %cst_82 = arith.constant dense<0.000000e+00> : vector<256x128xf32>
    %40 = tpu.matmul %38, %39, %cst_82 {dimension_numbers = #tpu.dot_dimension_numbers<[1], [0], [0], [1], [0, 0, 1, 1], [], []>} : vector<256x1152xf32>, vector<1152x128xf32>, vector<256x128xf32> -> vector<256x128xf32>
    %c0_83 = arith.constant 0 : index
    %c0_84 = arith.constant 0 : index
    %41 = vector.load %arg3[%c0_83, %c0_84] : memref<1x128xf32, #tpu.memory_space<vmem>>, vector<1x128xf32>
    %42 = vector.broadcast %41 : vector<1x128xf32> to vector<256x128xf32>
    %43 = arith.addf %40, %42 : vector<256x128xf32>
    %cst_85 = arith.constant 0.000000e+00 : f32
    %44 = vector.broadcast %cst_85 : f32 to vector<256x128xf32>
    %45 = arith.maximumf %43, %44 : vector<256x128xf32>
    %46 = vector.shape_cast %45 : vector<256x128xf32> to vector<16x16x128xf32>
    %c0_86 = arith.constant 0 : index
    %c0_87 = arith.constant 0 : index
    %c0_88 = arith.constant 0 : index
    %47 = vector.load %arg8[%c0_86, %c0_87, %c0_88] : memref<16x16x128xf32, #tpu.memory_space<vmem>>, vector<16x16x128xf32>
    tpu.vector_store %arg8[%c0_86, %c0_87, %c0_88], %46 {strides = array<i32>} : memref<16x16x128xf32, #tpu.memory_space<vmem>>, vector<16x16x128xf32>,
    %c0_89 = arith.constant 0 : index
    %c0_90 = arith.constant 0 : index
    %c0_91 = arith.constant 0 : index
    %48 = vector.load %arg8[%c0_89, %c0_90, %c0_91] : memref<16x16x128xf32, #tpu.memory_space<vmem>>, vector<15x15x128xf32>
    %c1_92 = arith.constant 1 : index
    %c1_93 = arith.constant 1 : index
    %c0_94 = arith.constant 0 : index
    %49 = vector.load %arg7[%c1_92, %c1_93, %c0_94] : memref<16x16x1152xf32, #tpu.memory_space<vmem>>, vector<15x15x128xf32>
    tpu.vector_store %arg7[%c1_92, %c1_93, %c0_94], %48 {strides = array<i32>} : memref<16x16x1152xf32, #tpu.memory_space<vmem>>, vector<15x15x128xf32>,
    %c0_95 = arith.constant 0 : index
    %c0_96 = arith.constant 0 : index
    %c0_97 = arith.constant 0 : index
    %50 = vector.load %arg8[%c0_95, %c0_96, %c0_97] : memref<16x16x128xf32, #tpu.memory_space<vmem>>, vector<15x16x128xf32>
    %c1_98 = arith.constant 1 : index
    %c0_99 = arith.constant 0 : index
    %c128_100 = arith.constant 128 : index
    %51 = vector.load %arg7[%c1_98, %c0_99, %c128_100] : memref<16x16x1152xf32, #tpu.memory_space<vmem>>, vector<15x16x128xf32>
    tpu.vector_store %arg7[%c1_98, %c0_99, %c128_100], %50 {strides = array<i32>} : memref<16x16x1152xf32, #tpu.memory_space<vmem>>, vector<15x16x128xf32>,
    %c0_101 = arith.constant 0 : index
    %c1_102 = arith.constant 1 : index
    %c0_103 = arith.constant 0 : index
    %52 = vector.load %arg8[%c0_101, %c1_102, %c0_103] : memref<16x16x128xf32, #tpu.memory_space<vmem>>, vector<15x15x128xf32>
    %c1_104 = arith.constant 1 : index
    %c0_105 = arith.constant 0 : index
    %c256_106 = arith.constant 256 : index
    %53 = vector.load %arg7[%c1_104, %c0_105, %c256_106] : memref<16x16x1152xf32, #tpu.memory_space<vmem>>, vector<15x15x128xf32>
    tpu.vector_store %arg7[%c1_104, %c0_105, %c256_106], %52 {strides = array<i32>} : memref<16x16x1152xf32, #tpu.memory_space<vmem>>, vector<15x15x128xf32>,
    %c0_107 = arith.constant 0 : index
    %c0_108 = arith.constant 0 : index
    %c0_109 = arith.constant 0 : index
    %54 = vector.load %arg8[%c0_107, %c0_108, %c0_109] : memref<16x16x128xf32, #tpu.memory_space<vmem>>, vector<16x15x128xf32>
    %c0_110 = arith.constant 0 : index
    %c1_111 = arith.constant 1 : index
    %c384_112 = arith.constant 384 : index
    %55 = vector.load %arg7[%c0_110, %c1_111, %c384_112] : memref<16x16x1152xf32, #tpu.memory_space<vmem>>, vector<16x15x128xf32>
    tpu.vector_store %arg7[%c0_110, %c1_111, %c384_112], %54 {strides = array<i32>} : memref<16x16x1152xf32, #tpu.memory_space<vmem>>, vector<16x15x128xf32>,
    %c0_113 = arith.constant 0 : index
    %c0_114 = arith.constant 0 : index
    %c0_115 = arith.constant 0 : index
    %56 = vector.load %arg8[%c0_113, %c0_114, %c0_115] : memref<16x16x128xf32, #tpu.memory_space<vmem>>, vector<16x16x128xf32>
    %c0_116 = arith.constant 0 : index
    %c0_117 = arith.constant 0 : index
    %c512_118 = arith.constant 512 : index
    %57 = vector.load %arg7[%c0_116, %c0_117, %c512_118] : memref<16x16x1152xf32, #tpu.memory_space<vmem>>, vector<16x16x128xf32>
    tpu.vector_store %arg7[%c0_116, %c0_117, %c512_118], %56 {strides = array<i32>} : memref<16x16x1152xf32, #tpu.memory_space<vmem>>, vector<16x16x128xf32>,
    %c0_119 = arith.constant 0 : index
    %c1_120 = arith.constant 1 : index
    %c0_121 = arith.constant 0 : index
    %58 = vector.load %arg8[%c0_119, %c1_120, %c0_121] : memref<16x16x128xf32, #tpu.memory_space<vmem>>, vector<16x15x128xf32>
    %c0_122 = arith.constant 0 : index
    %c0_123 = arith.constant 0 : index
    %c640_124 = arith.constant 640 : index
    %59 = vector.load %arg7[%c0_122, %c0_123, %c640_124] : memref<16x16x1152xf32, #tpu.memory_space<vmem>>, vector<16x15x128xf32>
    tpu.vector_store %arg7[%c0_122, %c0_123, %c640_124], %58 {strides = array<i32>} : memref<16x16x1152xf32, #tpu.memory_space<vmem>>, vector<16x15x128xf32>,
    %c1_125 = arith.constant 1 : index
    %c0_126 = arith.constant 0 : index
    %c0_127 = arith.constant 0 : index
    %60 = vector.load %arg8[%c1_125, %c0_126, %c0_127] : memref<16x16x128xf32, #tpu.memory_space<vmem>>, vector<15x15x128xf32>
    %c0_128 = arith.constant 0 : index
    %c1_129 = arith.constant 1 : index
    %c768_130 = arith.constant 768 : index
    %61 = vector.load %arg7[%c0_128, %c1_129, %c768_130] : memref<16x16x1152xf32, #tpu.memory_space<vmem>>, vector<15x15x128xf32>
    tpu.vector_store %arg7[%c0_128, %c1_129, %c768_130], %60 {strides = array<i32>} : memref<16x16x1152xf32, #tpu.memory_space<vmem>>, vector<15x15x128xf32>,
    %c1_131 = arith.constant 1 : index
    %c0_132 = arith.constant 0 : index
    %c0_133 = arith.constant 0 : index
    %62 = vector.load %arg8[%c1_131, %c0_132, %c0_133] : memref<16x16x128xf32, #tpu.memory_space<vmem>>, vector<15x16x128xf32>
    %c0_134 = arith.constant 0 : index
    %c0_135 = arith.constant 0 : index
    %c896_136 = arith.constant 896 : index
    %63 = vector.load %arg7[%c0_134, %c0_135, %c896_136] : memref<16x16x1152xf32, #tpu.memory_space<vmem>>, vector<15x16x128xf32>
    tpu.vector_store %arg7[%c0_134, %c0_135, %c896_136], %62 {strides = array<i32>} : memref<16x16x1152xf32, #tpu.memory_space<vmem>>, vector<15x16x128xf32>,
    %c1_137 = arith.constant 1 : index
    %c1_138 = arith.constant 1 : index
    %c0_139 = arith.constant 0 : index
    %64 = vector.load %arg8[%c1_137, %c1_138, %c0_139] : memref<16x16x128xf32, #tpu.memory_space<vmem>>, vector<15x15x128xf32>
    %c0_140 = arith.constant 0 : index
    %c0_141 = arith.constant 0 : index
    %c1024_142 = arith.constant 1024 : index
    %65 = vector.load %arg7[%c0_140, %c0_141, %c1024_142] : memref<16x16x1152xf32, #tpu.memory_space<vmem>>, vector<15x15x128xf32>
    tpu.vector_store %arg7[%c0_140, %c0_141, %c1024_142], %64 {strides = array<i32>} : memref<16x16x1152xf32, #tpu.memory_space<vmem>>, vector<15x15x128xf32>,
    %c0_143 = arith.constant 0 : index
    %c0_144 = arith.constant 0 : index
    %c0_145 = arith.constant 0 : index
    %66 = vector.load %arg7[%c0_143, %c0_144, %c0_145] : memref<16x16x1152xf32, #tpu.memory_space<vmem>>, vector<16x16x1152xf32>
    %67 = vector.shape_cast %66 : vector<16x16x1152xf32> to vector<256x1152xf32>
    %c0_146 = arith.constant 0 : index
    %c0_147 = arith.constant 0 : index
    %68 = vector.load %arg4[%c0_146, %c0_147] : memref<1152x128xf32, #tpu.memory_space<vmem>>, vector<1152x128xf32>
    %cst_148 = arith.constant dense<0.000000e+00> : vector<256x128xf32>
    %69 = tpu.matmul %67, %68, %cst_148 {dimension_numbers = #tpu.dot_dimension_numbers<[1], [0], [0], [1], [0, 0, 1, 1], [], []>} : vector<256x1152xf32>, vector<1152x128xf32>, vector<256x128xf32> -> vector<256x128xf32>
    %c0_149 = arith.constant 0 : index
    %c0_150 = arith.constant 0 : index
    %70 = vector.load %arg5[%c0_149, %c0_150] : memref<1x128xf32, #tpu.memory_space<vmem>>, vector<1x128xf32>
    %71 = vector.broadcast %70 : vector<1x128xf32> to vector<256x128xf32>
    %72 = arith.addf %69, %71 : vector<256x128xf32>
    %73 = vector.shape_cast %72 : vector<256x128xf32> to vector<16x16x128xf32>
    %c0_151 = arith.constant 0 : index
    %c0_152 = arith.constant 0 : index
    %c0_153 = arith.constant 0 : index
    %c0_154 = arith.constant 0 : index
    %74 = vector.load %arg1[%c0_151, %c0_152, %c0_153, %c0_154] : memref<1x16x16x128xf32, #tpu.memory_space<vmem>>, vector<1x16x16x128xf32>
    %75 = vector.shape_cast %74 : vector<1x16x16x128xf32> to vector<16x16x128xf32>
    %76 = arith.addf %73, %75 : vector<16x16x128xf32>
    %cst_155 = arith.constant 0.000000e+00 : f32
    %77 = vector.broadcast %cst_155 : f32 to vector<16x16x128xf32>
    %78 = arith.maximumf %76, %77 : vector<16x16x128xf32>
    %c0_156 = arith.constant 0 : index
    %c0_157 = arith.constant 0 : index
    %c0_158 = arith.constant 0 : index
    %c0_159 = arith.constant 0 : index
    %79 = vector.load %arg6[%c0_156, %c0_157, %c0_158, %c0_159] : memref<1x16x16x128xf32, #tpu.memory_space<vmem>>, vector<1x16x16x128xf32>
    %80 = vector.shape_cast %79 : vector<1x16x16x128xf32> to vector<16x16x128xf32>
    %81 = vector.shape_cast %78 : vector<16x16x128xf32> to vector<1x16x16x128xf32>
    tpu.vector_store %arg6[%c0_156, %c0_157, %c0_158, %c0_159], %81 {strides = array<i32>} : memref<1x16x16x128xf32, #tpu.memory_space<vmem>>, vector<1x16x16x128xf32>,
    return
  }
  func.func @transform_0(%arg0: i32) -> (i32, i32, i32, i32) {
    %c0_i32 = arith.constant 0 : i32
    %c0_i32_0 = arith.constant 0 : i32
    %c0_i32_1 = arith.constant 0 : i32
    %c0_i32_2 = arith.constant 0 : i32
    return %arg0, %c0_i32, %c0_i32_0, %c0_i32_1 : i32, i32, i32, i32
  }
  func.func @transform_1(%arg0: i32) -> (i32, i32) {
    %c0_i32 = arith.constant 0 : i32
    %c0_i32_0 = arith.constant 0 : i32
    %c0_i32_1 = arith.constant 0 : i32
    return %c0_i32, %c0_i32_0 : i32, i32
  }
  func.func @transform_2(%arg0: i32) -> (i32, i32) {
    %c0_i32 = arith.constant 0 : i32
    %c0_i32_0 = arith.constant 0 : i32
    %c0_i32_1 = arith.constant 0 : i32
    return %c0_i32, %c0_i32_0 : i32, i32
  }
  func.func @transform_3(%arg0: i32) -> (i32, i32) {
    %c0_i32 = arith.constant 0 : i32
    %c0_i32_0 = arith.constant 0 : i32
    %c0_i32_1 = arith.constant 0 : i32
    return %c0_i32, %c0_i32_0 : i32, i32
  }
  func.func @transform_4(%arg0: i32) -> (i32, i32) {
    %c0_i32 = arith.constant 0 : i32
    %c0_i32_0 = arith.constant 0 : i32
    %c0_i32_1 = arith.constant 0 : i32
    return %c0_i32, %c0_i32_0 : i32, i32
  }
  func.func @transform_5(%arg0: i32) -> (i32, i32, i32, i32) {
    %c0_i32 = arith.constant 0 : i32
    %c0_i32_0 = arith.constant 0 : i32
    %c0_i32_1 = arith.constant 0 : i32
    %c0_i32_2 = arith.constant 0 : i32
    return %arg0, %c0_i32, %c0_i32_0, %c0_i32_1 : i32, i32, i32, i32
  }
}

</mosaic_0001>

<bundles_post_ra>
// kernel: tpu_custom_call.1
= control target key start
LH: loop header
LB: loop body
LE: loop exit
PB: predicated region body
PF: predicated region fallthrough
CT: control target
= control target key end

     0   :  { %10 = vsyncpa [#allocation5], 0  ;;  %s8914_s0 = inlined_call_operand.hbm [shape: f32[2,16,16,128], index: 0, kind: input, shape index: {}]   ;;  %s8915_s1 = inlined_call_operand.hbm [shape: f32[1152,128], index: 1, kind: input, shape index: {}]   ;;  %s8916_s2 = inlined_call_operand.vmem [shape: f32[1,128], index: 2, kind: input, shape index: {}]   ;;  %s8917_s3 = inlined_call_operand.hbm [shape: f32[1152,128], index: 3, kind: input, shape index: {}]   ;;  %s8918_s4 = inlined_call_operand.vmem [shape: f32[1,128], index: 4, kind: input, shape index: {}]   ;;  %s8919_s5 = inlined_call_operand.hbm [shape: f32[2,16,16,128], index: 5, kind: output, shape index: {}]  }
   0x1   :  { %12 = vsyncpa [#allocation5 + $0x1], 0 }
   0x2   :  { %13 = vsyncpa [#allocation8], 0 }
   0x3   :  { %14 = vsyncpa [#allocation6], 0 }
   0x4   :  { %16 = vsyncpa [#allocation6 + $0x1], 0  ;;  %s7138_s18 = smov 0   ;;  %s7140_s19 = smov 0  }
   0x5   :  { %s7142_s20 = smov 0   ;;  %s7144_s21 = smov 0  }
   0x6 LB: > { %s7159_s22 = sadd.s32 4294967295, %s7096_s21   ;;  %s5559_s23 = sadd.s32 4294967294, %s7096_s21   ;;  %s7096_s21 = sphi %s7144_s21, %s8939_s21   ;;  %s7092_s20 = sphi %s7142_s20, %s8938_s20   ;;  %s7088_s19 = sphi %s7140_s19, %s8937_s19   ;;  %s7084_s18 = sphi %s7138_s18, %s8936_s18  }
   0x7   : > { %p42_p0 = scmp.ne.s32.totalorder %s7088_s19, %s7084_s18  ;;  %p8920_p1 = scmp.eq.s32.totalorder %s7159_s22, 0 }
   0x8   : > { %p156_p3 = scmp.eq.s32.totalorder %s5559_s23, 1  ;;  %p5560_p5 = scmp.ge.s32.totalorder %s7096_s21, 1 }
   0x9   : > { %p7168_p4 = por %p8920_p1, %p42_p0  ;;  %p163_p7 = scmp.lt.s32.totalorder %s7096_s21, 3 }
   0xa   : > { %p7173_p6 = por %p156_p3, %p42_p0  ;;  %s7098_s27 = smov [#allocation7]  }
   0xb   : > { %s8923_s24 = scalar_select %p7168_p4, 1, 0 }
   0xc   : > { %s8924_s25 = scalar_select %p7173_p6, 1, 0 }
   0xd   : > { %p7178_p8 = pnand %p5560_p5, %p163_p7  ;;  %s175_s28 = sshll.u32 %s7098_s27, 4  ;;  %s7182_s28 = int_to_ptr.vmem [resolvable:$true] %s175_s28 }
   0xe   : > { %s7099_s30 = smov [#allocation9]   ;;  %s6940_s9 = scalar_lea.hbm %s8915_s1, 18432 }
   0xf   : > { %p6851_p9 = pneg %p7178_p8  ;;  %s191_s6 = sshll.u32 %s7099_s30, 4  ;;  %s7193_s6 = int_to_ptr.vmem [resolvable:$true] %s191_s6 }
  0x10   : > { %p6941_p12 = scmp.ne.s32.totalorder %s8915_s1, %s6940_s9  ;;  %p6947_p5 = scmp.lt.u32.totalorder %s6940_s9, %s8915_s1 }
  0x11   : > { %p7189_p11 = pnand %p6851_p9, %p8920_p1 }
  0x13   : > { %p6942_p13 = pneg %p7189_p11 }
  0x15   : > { %p6943_p0 = pnand %p6942_p13, %p6941_p12 }
  0x17   : > { %p6944_p3 = pneg %p6943_p0 }
  0x19   : > { %p6949_p7 = pnand %p6947_p5, %p6944_p3 }
  0x1b   : > { %6952 = shalt.err (!%p6949_p7)
}
  0x1c   : > { %s6953_s14 = scalar_lea.vmem %s7182_s28, 18432  ;;  %p6961_p2 = scmp.lt.s32.totalorder %s7182_s28, %s7182_s28 }
  0x1d   : > { %p6954_p9 = scmp.ne.s32.totalorder %s7182_s28, %s6953_s14  ;;  %p6962_p12 = scmp.lt.s32.totalorder %s6953_s14, %s6953_s14 }
  0x1f   : > { %p6956_p10 = pnand %p6954_p9, %p6942_p13  ;;  %p6963_p0 = por %p6962_p12, %p6961_p2 }
  0x21   : > { %p6957_p1 = pneg %p6956_p10 }
  0x23   : > { %p6964_p6 = pnand %p6963_p0, %p6957_p1 }
  0x25   : > { %6967 = shalt.err (!%p6964_p6)
}
  0x26   : > { %s7100_s15 = smov 128   ;;  %s7101_s16 = smov 8  }
  0x27   : > { %6854 = dma.hbm_to_vmem [thread:$0]  (!%p7189_p11), %s8915_s1, 18432, %s7182_s28, [#allocation8], %s7100_s15, %s7100_s15, %s7101_s16  }
  0x28   : > { %s6968_s7 = scalar_lea.hbm %s8917_s3, 18432 }
  0x29   : > { %p6969_p1 = scmp.ne.s32.totalorder %s8917_s3, %s6968_s7  ;;  %p6975_p10 = scmp.lt.u32.totalorder %s6968_s7, %s8917_s3 }
  0x2b   : > { %p6971_p2 = pnand %p6969_p1, %p6942_p13 }
  0x2d   : > { %p6972_p6 = pneg %p6971_p2 }
  0x2f   : > { %p6977_p3 = pnand %p6975_p10, %p6972_p6 }
  0x31   : > { %6980 = shalt.err (!%p6977_p3)
}
  0x32   : > { %s6981_s28 = scalar_lea.vmem %s7193_s6, 18432  ;;  %p6989_p12 = scmp.lt.s32.totalorder %s7193_s6, %s7193_s6 }
  0x33   : > { %p6982_p5 = scmp.ne.s32.totalorder %s7193_s6, %s6981_s28  ;;  %p6990_p0 = scmp.lt.s32.totalorder %s6981_s28, %s6981_s28 }
  0x35   : > { %p6984_p7 = pnand %p6982_p5, %p6942_p13  ;;  %p6991_p1 = por %p6990_p0, %p6989_p12 }
  0x37   : > { %p6985_p9 = pneg %p6984_p7 }
  0x39   : > { %p6992_p2 = pnand %p6991_p1, %p6985_p9 }
  0x3b   : > { %6995 = shalt.err (!%p6992_p2)
}
  0x3c   : > { %6857 = dma.hbm_to_vmem [thread:$0]  (!%p7189_p11), %s8917_s3, 18432, %s7193_s6, [#allocation8], %s7100_s15, %s7100_s15, %s7101_s16  }
  0x3d   : > { %s7254_s29 = sadd.s32 1, %s7096_s21   ;;  %s29_s14 = sadd.s32 1, %s7092_s20 }
  0x3e   : > { %s26_s17 = ssub.s32 %s7096_s21, %s7254_s29  ;;  %p36_p13 = scmp.ne.s32.totalorder %s7092_s20, %s7088_s19 }
  0x3f   : > { %p27_p6 = scmp.eq.s32.totalorder %s26_s17, 0  ;;  %p37_p10 = scmp.eq.s32.totalorder %s7096_s21, 0 }
  0x40   : > { %p8927_p3 = scmp.eq.s32.totalorder %s7159_s22, 1  ;;  %p6868_p7 = scmp.lt.s32.totalorder %s7096_s21, 2 }
  0x41   : > { %s7270_s27 = scalar_select %p27_p6, %s7092_s20, %s29_s14  }
  0x42   : > { %p7264_p5 = por %p8927_p3, %p36_p13  ;;  %p38_p9 = por %p37_p10, %p36_p13 }
  0x43   : > { %s208_s30 = sand.u32 1, %s7092_s20   ;;  %s5669_s6 = sshll.u32 %s7096_s21, 12 }
  0x44   : > { %s8928_s23 = scalar_select %p7264_p5, 1, 0 }
  0x45   : > { %s5564_s7 = sshll.u32 %s208_s30, 8  ;;  %s7277_s10 = scalar_lea.hbm %s8914_s0, %s5669_s6 }
  0x46   : > { %s212_s11 = scalar_lea.vmem [#allocation4], %s5564_s7  ;;  %p7281_p11 = pnand %p6868_p7, %p38_p9 }
  0x47   : > { %s219_s28 = sshll.u32 %s212_s11, 4  ;;  %s7285_s13 = scalar_lea.sflag [#allocation5], %s208_s30  ;;  %s7279_s28 = int_to_ptr.vmem [resolvable:$true] %s219_s28 }
  0x48   : > { %s6996_s14 = scalar_lea.hbm %s7277_s10, 4096  ;;  %p6998_p0 = pneg %p7281_p11 }
  0x49   : > { %p6997_p12 = scmp.ne.s32.totalorder %s7277_s10, %s6996_s14  ;;  %s7001_s6 = scalar_lea.hbm %s8914_s0, 8192 }
  0x4a   : > { %p7002_p13 = scmp.lt.u32.totalorder %s7277_s10, %s8914_s0  ;;  %p7003_p6 = scmp.lt.u32.totalorder %s7001_s6, %s6996_s14 }
  0x4b   : > { %p6999_p1 = pnand %p6998_p0, %p6997_p12  ;;  %p7005_p3 = scmp.lt.u32.totalorder %s6996_s14, %s7277_s10 }
  0x4c   : > { %p7004_p10 = por %p7003_p6, %p7002_p13 }
  0x4d   : > { %p7000_p2 = pneg %p6999_p1 }
  0x4e   : > { %p7006_p7 = por %p7005_p3, %p7004_p10 }
  0x50   : > { %p7007_p9 = pnand %p7006_p7, %p7000_p2 }
  0x52   : > { %7010 = shalt.err (!%p7007_p9)
}
  0x53   : > { %s7011_s30 = scalar_lea.vmem %s7279_s28, 4096  ;;  %s7102_s11 = smov [#allocation4]  }
  0x54   : > { %p7012_p12 = scmp.ne.s32.totalorder %s7279_s28, %s7011_s30  ;;  %s7016_s17 = sshll.u32 %s7102_s11, 4  ;;  %s7017_s17 = int_to_ptr.vmem [resolvable:$false] %s7016_s17 }
  0x55   : > { %s7018_s7 = scalar_lea.vmem %s7017_s17, 8192  ;;  %p7019_p4 = scmp.lt.s32.totalorder %s7279_s28, %s7017_s17 }
  0x56   : > { %p7014_p1 = pnand %p7012_p12, %p6998_p0  ;;  %p7020_p13 = scmp.lt.s32.totalorder %s7018_s7, %s7011_s30 }
  0x58   : > { %p7015_p5 = pneg %p7014_p1  ;;  %p7021_p6 = por %p7020_p13, %p7019_p4 }
  0x5a   : > { %p7022_p10 = pnand %p7021_p6, %p7015_p5 }
  0x5c   : > { %7025 = shalt.err (!%p7022_p10)
}
  0x5d   : > { %6861 = dma.hbm_to_vmem [thread:$0]  (!%p7281_p11), %s7277_s10, 4096, %s7279_s28, %s7285_s13, %s7100_s15, %s7100_s15, %s7101_s16  }
  0x5e   : > { %231 = sbr.rel (%p7178_p8) target bundleno = 1539 (0x603), region = 40  ;;  %s7319_s14 = sand.u32 (!%p7178_p8), 1, %s7088_s19  }
  0x5f   : > { %s5568_s6 = sshll.u32 (!%p7178_p8), %s7319_s14, 8  ;;  %s234_s8 = scalar_lea.sflag (!%p7178_p8), [#allocation5], %s7319_s14 }
  0x60   : > { %s7325_s12 = scalar_lea.vmem (!%p7178_p8), [#allocation4], %s5568_s6  ;;  %p8930_p4 = scmp.ne.s32.totalorder (!%p7178_p8), %s8923_s24, 0 }
  0x65   : > { %7071 = dma.done.wait (%p8930_p4), %s234_s8, 4096  }
  0x66   : > { %7073 = vsyncadd (%p8930_p4), %s234_s8, 4294963200  ;;  %p8931_p5 = scmp.eq.s32.totalorder %s7159_s22, 0 }
  0x68   : > { %7075 = dma.done.wait (%p8931_p5), [#allocation8], 36864   ;;  %p8932_p8 = pmov %p8931_p5 }
  0x69   : > { %v7103_v0 = vmov 0.0|0.0   ;;  %v7104_v1 = vmov 0.0   ;;  %v1546_v2 = vld [vmem:[#allocation7] sm:$0xff]  ;;  %v1547_v3 = vld [vmem:[#allocation7 + $0x8] sm:$0xff]  ;;  %v1548_v4 = vld [vmem:[#allocation7 + $0x10] sm:$0xff]  ;;  %vm441_vm0 = vcmask 1040384  }
  0x6a   : > { %7077 = vsyncadd (%p8932_p8), [#allocation8], 4294930432  ;;  %5927 = vmatprep.subr.bf16.mxu0 %v7103_v0  ;;  %273 = vst [vmem:[#allocation2 + $0x8] sm:$0xff] %v7104_v1  ;;  %1761 = vmatprep.mubr.f32.mxu0 %v7104_v1  ;;  %v5928_v5 = vpack.c.bf16 %v1547_v3, %v1546_v2  ;;  %v1549_v6 = vld [vmem:[#allocation7 + $0x18] sm:$0xff]  ;;  %v1550_v8 = vld [vmem:[#allocation7 + $0x20] sm:$0xff]  ;;  %s8747_s13 = scalar_lea.vmem [#allocation10], %s5568_s6 }
  0x6b   : > { %272 = vst [vmem:[#allocation2] sm:$0xff] %v7104_v1  ;;  %277 = vst [vmem:[#allocation2 + $0x58] sm:$0xff] %v7104_v1  ;;  %v5931_v7 = vpack.c.bf16 %v1549_v6, %v1548_v4  ;;  %v1551_v9 = vld [vmem:[#allocation7 + $0x28] sm:$0xff]  ;;  %v1552_v11 = vld [vmem:[#allocation7 + $0x30] sm:$0xff]  ;;  %s5670_s9 = sshll.u32 %s7159_s22, 12  ;;  %s5467_s30 = sshll.u32 %s8747_s13, 4  ;;  %s8868_s30 = int_to_ptr.vmem [resolvable:$true] %s5467_s30 }
  0x6c   : > { %279 = vst [vmem:[#allocation2 + $0x8a0] sm:$0xff] %v7104_v1  ;;  %284 = vst [vmem:[#allocation2 + $0x8f8] sm:$0xff] %v7104_v1  ;;  %5929 = vmatpush1.bf16.msra.mxu0 %v5928_v5  ;;  %v5934_v10 = vpack.c.bf16 %v1551_v9, %v1550_v8  ;;  %v1553_v12 = vld [vmem:[#allocation7 + $0x38] sm:$0xff]  ;;  %v7441_v14 = vld [vmem:[%s7325_s12] sm:$0xff]  ;;  %s8866_s7 = scalar_lea.hbm %s8919_s5, %s5670_s9  ;;  %s5454_s22 = scalar_lea.sflag [#allocation6], %s7319_s14 }
  0x6d   : > { %286 = vst [vmem:[#allocation2 + $0x90] sm:$0x1] %v7104_v1  ;;  %287 = vst [vmem:[#allocation2 + $0x120] sm:$0x1] %v7104_v1  ;;  %5930 = vmatprep.subr.bf16.mxu0 %v7103_v0  ;;  %v5937_v13 = vpack.c.bf16 %v1553_v12, %v1552_v11  ;;  %v1554_v15 = vld [vmem:[#allocation7 + $0x40] sm:$0xff]  ;;  %v1555_v16 = vld [vmem:[#allocation7 + $0x48] sm:$0xff] }
  0x6e   : > { %288 = vst [vmem:[#allocation2 + $0x1b0] sm:$0x1] %v7104_v1  ;;  %289 = vst [vmem:[#allocation2 + $0x240] sm:$0x1] %v7104_v1  ;;  %v7445_v17 = vrot.slane %v7441_v14, 7  ;;  %v7448_v18 = vld [vmem:[%s7325_s12 + $0x10] sm:$0xff]  ;;  %v5940_v20 = vpack.c.bf16 %v1555_v16, %v1554_v15 }
  0x6f   : > { %290 = vst [vmem:[#allocation2 + $0x2d0] sm:$0x1] %v7104_v1  ;;  %291 = vst [vmem:[#allocation2 + $0x360] sm:$0x1] %v7104_v1  ;;  %v7452_v19 = vrot.slane %v7448_v18, 7  ;;  %v7456_v21 = vld [vmem:[%s7325_s12 + $0x20] sm:$0xff] }
  0x70   : > { %292 = vst [vmem:[#allocation2 + $0x3f0] sm:$0x1] %v7104_v1  ;;  %293 = vst [vmem:[#allocation2 + $0x480] sm:$0x1] %v7104_v1  ;;  %5932 = vmatpush1.bf16.msra.mxu0 %v5931_v7  ;;  %v1556_v22 = vld [vmem:[#allocation7 + $0x50] sm:$0xff]  ;;  %v1557_v23 = vld [vmem:[#allocation7 + $0x58] sm:$0xff] }
  0x71   : > { %294 = vst [vmem:[#allocation2 + $0x510] sm:$0x1] %v7104_v1  ;;  %295 = vst [vmem:[#allocation2 + $0x5a0] sm:$0x1] %v7104_v1  ;;  %5933 = vmatprep.subr.bf16.mxu0 %v7103_v0  ;;  %v7461_v24 = vrot.slane %v7456_v21, 7  ;;  %v7464_v25 = vld [vmem:[%s7325_s12 + $0x30] sm:$0xff]  ;;  %v5943_v28 = vpack.c.bf16 %v1557_v23, %v1556_v22 }
  0x72   : > { %296 = vst [vmem:[#allocation2 + $0x630] sm:$0x1] %v7104_v1  ;;  %297 = vst [vmem:[#allocation2 + $0x6c0] sm:$0x1] %v7104_v1  ;;  %v7468_v26 = vrot.slane %v7464_v25, 7  ;;  %v7472_v27 = vld [vmem:[%s7325_s12 + $0x40] sm:$0xff] }
  0x73   : > { %298 = vst [vmem:[#allocation2 + $0x750] sm:$0x1] %v7104_v1  ;;  %299 = vst [vmem:[#allocation2 + $0x7e0] sm:$0x1] %v7104_v1  ;;  %v7477_v29 = vrot.slane %v7472_v27, 7  ;;  %v1558_v30 = vld [vmem:[#allocation7 + $0x60] sm:$0xff] }
  0x74   : > { %300 = vst [vmem:[#allocation2 + $0x870] sm:$0x1] %v7104_v1  ;;  %301 = vst [vmem:[#allocation2 + $0x18] sm:$0x1] %v7104_v1  ;;  %5935 = vmatpush1.bf16.msra.mxu0 %v5934_v10  ;;  %v1559_v31 = vld [vmem:[#allocation7 + $0x68] sm:$0xff]  ;;  %v7482_v32 = vld [vmem:[%s7325_s12 + $0x50] sm:$0xff] }
  0x75   : > { %302 = vst [vmem:[#allocation2 + $0xa8] sm:$0x1] %v7104_v1  ;;  %303 = vst [vmem:[#allocation2 + $0x138] sm:$0x1] %v7104_v1  ;;  %5936 = vmatprep.subr.bf16.mxu0 %v7103_v0  ;;  %v7486_v33 = vrot.slane %v7482_v32, 7  ;;  %v7490_v34 = vld [vmem:[%s7325_s12 + $0x60] sm:$0xff]  ;;  %v5946_v35 = vpack.c.bf16 %v1559_v31, %v1558_v30 }
  0x76   : > { %304 = vst [vmem:[#allocation2 + $0x1c8] sm:$0x1] %v7104_v1  ;;  %305 = vst [vmem:[#allocation2 + $0x258] sm:$0x1] %v7104_v1  ;;  %v7494_v36 = vrot.slane %v7490_v34, 7  ;;  %v1560_v37 = vld [vmem:[#allocation7 + $0x70] sm:$0xff] }
  0x77   : > { %306 = vst [vmem:[#allocation2 + $0x2e8] sm:$0x1] %v7104_v1  ;;  %307 = vst [vmem:[#allocation2 + $0x378] sm:$0x1] %v7104_v1  ;;  %v1561_v38 = vld [vmem:[#allocation7 + $0x78] sm:$0xff]  ;;  %v7499_v39 = vld [vmem:[%s7325_s12 + $0x70] sm:$0xff] }
  0x78   : > { %308 = vst [vmem:[#allocation2 + $0x408] sm:$0x1] %v7104_v1  ;;  %309 = vst [vmem:[#allocation2 + $0x498] sm:$0x1] %v7104_v1  ;;  %5938 = vmatpush1.bf16.msra.mxu0 %v5937_v13  ;;  %v7503_v40 = vrot.slane %v7499_v39, 7  ;;  %v7507_v41 = vld [vmem:[%s7325_s12 + $0x80] sm:$0xff]  ;;  %v5949_v42 = vpack.c.bf16 %v1561_v38, %v1560_v37 }
  0x79   : > { %310 = vst [vmem:[#allocation2 + $0x528] sm:$0x1] %v7104_v1  ;;  %311 = vst [vmem:[#allocation2 + $0x5b8] sm:$0x1] %v7104_v1  ;;  %5939 = vmatprep.subr.bf16.mxu0 %v7103_v0  ;;  %v7511_v43 = vrot.slane %v7507_v41, 7  ;;  %v1562_v44 = vld [vmem:[#allocation7 + $0x80] sm:$0xff] }
  0x7a   : > { %312 = vst [vmem:[#allocation2 + $0x648] sm:$0x1] %v7104_v1  ;;  %313 = vst [vmem:[#allocation2 + $0x6d8] sm:$0x1] %v7104_v1  ;;  %v1563_v45 = vld [vmem:[#allocation7 + $0x88] sm:$0xff]  ;;  %v7516_v46 = vld [vmem:[%s7325_s12 + $0x90] sm:$0xff] }
  0x7b   : > { %314 = vst [vmem:[#allocation2 + $0x768] sm:$0x1] %v7104_v1  ;;  %315 = vst [vmem:[#allocation2 + $0x7f8] sm:$0x1] %v7104_v1  ;;  %v7520_v47 = vrot.slane %v7516_v46, 7  ;;  %v7524_v48 = vld [vmem:[%s7325_s12 + $0xa0] sm:$0xff]  ;;  %v5952_v49 = vpack.c.bf16 %v1563_v45, %v1562_v44 }
  0x7c   : > { %316 = vst [vmem:[#allocation2 + $0x888] sm:$0x1] %v7104_v1  ;;  %317 = vst [vmem:[#allocation2 + $0x30] sm:$0x1] %v7104_v1  ;;  %5941 = vmatpush1.bf16.msra.mxu0 %v5940_v20  ;;  %v1564_v50 = vld [vmem:[#allocation7 + $0x90] sm:$0xff]  ;;  %v7528_v51 = vrot.slane %v7524_v48, 7 }
  0x7d   : > { %318 = vst [vmem:[#allocation2 + $0xc0] sm:$0x1] %v7104_v1  ;;  %319 = vst [vmem:[#allocation2 + $0x150] sm:$0x1] %v7104_v1  ;;  %5942 = vmatprep.subr.bf16.mxu0 %v7103_v0  ;;  %v1565_v52 = vld [vmem:[#allocation7 + $0x98] sm:$0xff]  ;;  %v7533_v53 = vld [vmem:[%s7325_s12 + $0xb0] sm:$0xff] }
  0x7e   : > { %320 = vst [vmem:[#allocation2 + $0x1e0] sm:$0x1] %v7104_v1  ;;  %321 = vst [vmem:[#allocation2 + $0x270] sm:$0x1] %v7104_v1  ;;  %v7536_v54 = vld [vmem:[%s7325_s12 + $0xc0] sm:$0xff]  ;;  %v7540_v55 = vrot.slane %v7533_v53, 7  ;;  %v5955_v57 = vpack.c.bf16 %v1565_v52, %v1564_v50 }
  0x7f   : > { %322 = vst [vmem:[#allocation2 + $0x300] sm:$0x1] %v7104_v1  ;;  %323 = vst [vmem:[#allocation2 + $0x390] sm:$0x1] %v7104_v1  ;;  %v7543_v56 = vrot.slane %v7536_v54, 7  ;;  %v1566_v58 = vld [vmem:[#allocation7 + $0xa0] sm:$0xff] }
  0x80   : > { %324 = vst [vmem:[#allocation2 + $0x420] sm:$0x1] %v7104_v1  ;;  %325 = vst [vmem:[#allocation2 + $0x4b0] sm:$0x1] %v7104_v1  ;;  %5944 = vmatpush1.bf16.msra.mxu0 %v5943_v28  ;;  %v1567_v59 = vld [vmem:[#allocation7 + $0xa8] sm:$0xff]  ;;  %v7552_v61 = vld [vmem:[%s7325_s12 + $0xd0] sm:$0xff] }
  0x81   : > { %326 = vst [vmem:[#allocation2 + $0x540] sm:$0x1] %v7104_v1  ;;  %327 = vst [vmem:[#allocation2 + $0x5d0] sm:$0x1] %v7104_v1  ;;  %5945 = vmatprep.subr.bf16.mxu0 %v7103_v0  ;;  %v5958_v60 = vpack.c.bf16 %v1567_v59, %v1566_v58  ;;  %v1568_v62 = vld [vmem:[#allocation7 + $0xb0] sm:$0xff]  ;;  %v1569_v63 = vld [vmem:[#allocation7 + $0xb8] sm:$0xff] }
  0x82   : > { %328 = vst [vmem:[#allocation2 + $0x660] sm:$0x1] %v7104_v1  ;;  %329 = vst [vmem:[#allocation2 + $0x6f0] sm:$0x1] %v7104_v1  ;;  %v7556_v2 = vrot.slane %v7552_v61, 7  ;;  %v5961_v3 = vpack.c.bf16 %v1569_v63, %v1568_v62  ;;  %v1570_v4 = vld [vmem:[#allocation7 + $0xc0] sm:$0xff] }
  0x83   : > { %330 = vst [vmem:[#allocation2 + $0x780] sm:$0x1] %v7104_v1  ;;  %331 = vst [vmem:[#allocation2 + $0x810] sm:$0x1] %v7104_v1  ;;  %v1571_v5 = vld [vmem:[#allocation7 + $0xc8] sm:$0xff]  ;;  %v7562_v7 = vld [vmem:[%s7325_s12 + $0xe0] sm:$0xff] }
  0x84   : > { %334 = vst [vmem:[#allocation2 + $0xef] sm:$0x1] %v7104_v1  ;;  %335 = vst [vmem:[#allocation2 + $0x17f] sm:$0x1] %v7104_v1  ;;  %5947 = vmatpush1.bf16.msra.mxu0 %v5946_v35  ;;  %v5964_v6 = vpack.c.bf16 %v1571_v5, %v1570_v4  ;;  %v1572_v8 = vld [vmem:[#allocation7 + $0xd0] sm:$0xff]  ;;  %v1573_v9 = vld [vmem:[#allocation7 + $0xd8] sm:$0xff] }
  0x85   : > { %336 = vst [vmem:[#allocation2 + $0x20f] sm:$0x1] %v7104_v1  ;;  %337 = vst [vmem:[#allocation2 + $0x29f] sm:$0x1] %v7104_v1  ;;  %5948 = vmatprep.subr.bf16.mxu0 %v7103_v0  ;;  %v7566_v10 = vrot.slane %v7562_v7, 7  ;;  %v5967_v11 = vpack.c.bf16 %v1573_v9, %v1572_v8  ;;  %v1574_v12 = vld [vmem:[#allocation7 + $0xe0] sm:$0xff] }
  0x86   : > { %338 = vst [vmem:[#allocation2 + $0x32f] sm:$0x1] %v7104_v1  ;;  %339 = vst [vmem:[#allocation2 + $0x3bf] sm:$0x1] %v7104_v1  ;;  %v1575_v13 = vld [vmem:[#allocation7 + $0xe8] sm:$0xff]  ;;  %v1576_v16 = vld [vmem:[#allocation7 + $0xf0] sm:$0xff] }
  0x87   : > { %340 = vst [vmem:[#allocation2 + $0x44f] sm:$0x1] %v7104_v1  ;;  %341 = vst [vmem:[#allocation2 + $0x4df] sm:$0x1] %v7104_v1  ;;  %v5970_v15 = vpack.c.bf16 %v1575_v13, %v1574_v12  ;;  %v1577_v20 = vld [vmem:[#allocation7 + $0xf8] sm:$0xff]  ;;  %v1578_v23 = vld [vmem:[#allocation7 + $0x100] sm:$0xff] }
  0x88   : > { %342 = vst [vmem:[#allocation2 + $0x56f] sm:$0x1] %v7104_v1  ;;  %343 = vst [vmem:[#allocation2 + $0x5ff] sm:$0x1] %v7104_v1  ;;  %5950 = vmatpush1.bf16.msra.mxu0 %v5949_v42  ;;  %v5973_v22 = vpack.c.bf16 %v1577_v20, %v1576_v16  ;;  %v1579_v28 = vld [vmem:[#allocation7 + $0x108] sm:$0xff]  ;;  %v1580_v35 = vld [vmem:[#allocation7 + $0x110] sm:$0xff] }
  0x89   : > { %344 = vst [vmem:[#allocation2 + $0x68f] sm:$0x1] %v7104_v1  ;;  %345 = vst [vmem:[#allocation2 + $0x71f] sm:$0x1] %v7104_v1  ;;  %5951 = vmatprep.subr.bf16.mxu0 %v7103_v0  ;;  %v5976_v31 = vpack.c.bf16 %v1579_v28, %v1578_v23  ;;  %v1581_v37 = vld [vmem:[#allocation7 + $0x118] sm:$0xff]  ;;  %v1582_v44 = vld [vmem:[#allocation7 + $0x120] sm:$0xff] }
  0x8a   : > { %346 = vst [vmem:[#allocation2 + $0x7af] sm:$0x1] %v7104_v1  ;;  %347 = vst [vmem:[#allocation2 + $0x83f] sm:$0x1] %v7104_v1  ;;  %v5979_v38 = vpack.c.bf16 %v1581_v37, %v1580_v35  ;;  %v382_v42 = vld [vmem:[%s7325_s12 + $0x8] sm:$0x7f] }
  0x8b   : > { %348 = vst [vmem:[#allocation2 + $0x8cf] sm:$0x1] %v7104_v1  ;;  %349 = vst [vmem:[#allocation2 + $0x77] sm:$0x1] %v7104_v1  ;;  %v1583_v45 = vld [vmem:[#allocation7 + $0x128] sm:$0xff]  ;;  %v443_v52 = vrot.slane %v382_v42, 7 }
  0x8c   : > { %350 = vst [vmem:[#allocation2 + $0x107] sm:$0x1] %v7104_v1  ;;  %351 = vst [vmem:[#allocation2 + $0x197] sm:$0x1] %v7104_v1  ;;  %5953 = vmatpush1.bf16.msra.mxu0 %v5952_v49  ;;  %v609_v49 = vld [vmem:[%s7325_s12 + $0x9] sm:$0x7f] }
  0x8d   : > { %352 = vst [vmem:[#allocation2 + $0x227] sm:$0x1] %v7104_v1  ;;  %353 = vst [vmem:[#allocation2 + $0x2b7] sm:$0x1] %v7104_v1  ;;  %5954 = vmatprep.subr.bf16.mxu0 %v7103_v0  ;;  %v549_v58 = vld [vmem:[%s7325_s12 + $0x8] sm:$0xff]  ;;  %v1584_v59 = vld [vmem:[#allocation7 + $0x130] sm:$0xff] }
  0x8e   : > { %354 = vst [vmem:[#allocation2 + $0x347] sm:$0x1] %v7104_v1  ;;  %355 = vst [vmem:[#allocation2 + $0x3d7] sm:$0x1] %v7104_v1  ;;  %v1586_v63 = vld [vmem:[#allocation7 + $0x140] sm:$0xff]  ;;  %v551_v9 = vld [vmem:[%s7325_s12 + $0x18] sm:$0xff] }
  0x8f   : > { %356 = vst [vmem:[#allocation2 + $0x467] sm:$0x1] %v7104_v1  ;;  %357 = vst [vmem:[#allocation2 + $0x4f7] sm:$0x1] %v7104_v1  ;;  %v611_v4 = vld [vmem:[%s7325_s12 + $0x19] sm:$0x7f] }
  0x90   : > { %358 = vst [vmem:[#allocation2 + $0x587] sm:$0x1] %v7104_v1  ;;  %359 = vst [vmem:[#allocation2 + $0x617] sm:$0x1] %v7104_v1  ;;  %5956 = vmatpush1.bf16.msra.mxu0 %v5955_v57  ;;  %v5982_v57 = vpack.c.bf16 %v1583_v45, %v1582_v44  ;;  %v1589_v12 = vld [vmem:[#allocation7 + $0x158] sm:$0xff]  ;;  %v1591_v20 = vld [vmem:[#allocation7 + $0x168] sm:$0xff] }
  0x91   : > { %360 = vst [vmem:[#allocation2 + $0x6a7] sm:$0x1] %v7104_v1  ;;  %361 = vst [vmem:[#allocation2 + $0x737] sm:$0x1] %v7104_v1  ;;  %5957 = vmatprep.subr.bf16.mxu0 %v7103_v0  ;;  %v386_v16 = vld [vmem:[%s7325_s12 + $0x28] sm:$0x7f] }
  0x92   : > { %362 = vst [vmem:[#allocation2 + $0x7c7] sm:$0x1] %v7104_v1  ;;  %363 = vst [vmem:[#allocation2 + $0x857] sm:$0x1] %v7104_v1  ;;  %v449_v28 = vrot.slane %v386_v16, 7  ;;  %v1592_v35 = vld [vmem:[#allocation7 + $0x170] sm:$0xff] }
  0x93   : > { %364 = vst [vmem:[#allocation2 + $0x8e7] sm:$0x1] %v7104_v1  ;;  %365 = vst [vmem:[#allocation2 + $0x8f] sm:$0x1] %v7104_v1  ;;  %v1593_v37 = vld [vmem:[#allocation7 + $0x178] sm:$0xff]  ;;  %v1595_v45 = vld [vmem:[#allocation7 + $0x188] sm:$0xff] }
  0x94   : > { %366 = vst [vmem:[#allocation2 + $0x11f] sm:$0x1] %v7104_v1  ;;  %367 = vst [vmem:[#allocation2 + $0x1af] sm:$0x1] %v7104_v1  ;;  %5959 = vmatpush1.bf16.msra.mxu0 %v5958_v60  ;;  %v1585_v60 = vld [vmem:[#allocation7 + $0x138] sm:$0xff]  ;;  %v5997_v42 = vpack.c.bf16 %v1593_v37, %v1592_v35  ;;  %v1603_v16 = vld [vmem:[#allocation7 + $0x1c8] sm:$0xff] }
  0x95   : > { %368 = vst [vmem:[#allocation2 + $0x23f] sm:$0x1] %v7104_v1  ;;  %369 = vst [vmem:[#allocation2 + $0x2cf] sm:$0x1] %v7104_v1  ;;  %5960 = vmatprep.subr.bf16.mxu0 %v7103_v0  ;;  %v5985_v62 = vpack.c.bf16 %v1585_v60, %v1584_v59  ;;  %v388_v44 = vld [vmem:[%s7325_s12 + $0x38] sm:$0x7f] }
  0x96   : > { %370 = vst [vmem:[#allocation2 + $0x35f] sm:$0x1] %v7104_v1  ;;  %371 = vst [vmem:[#allocation2 + $0x3ef] sm:$0x1] %v7104_v1  ;;  %v1596_v59 = vld [vmem:[#allocation7 + $0x190] sm:$0xff]  ;;  %v1597_v60 = vld [vmem:[#allocation7 + $0x198] sm:$0xff] }
  0x97   : > { %372 = vst [vmem:[#allocation2 + $0x47f] sm:$0x1] %v7104_v1  ;;  %373 = vst [vmem:[#allocation2 + $0x50f] sm:$0x1] %v7104_v1  ;;  %s7026_s6 = scalar_lea.vmem %s8868_s30, 4096  ;;  %p8933_p0 = scmp.ne.s32.totalorder %s8928_s23, 0 }
  0x98   : > { %374 = vst [vmem:[#allocation2 + $0x59f] sm:$0x1] %v7104_v1  ;;  %375 = vst [vmem:[#allocation2 + $0x62f] sm:$0x1] %v7104_v1  ;;  %5962 = vmatpush1.bf16.msra.mxu0 %v5961_v3  ;;  %v1587_v3 = vld [vmem:[#allocation7 + $0x148] sm:$0xff]  ;;  %p7027_p11 = scmp.ne.s32.totalorder %s8868_s30, %s7026_s6  ;;  %s7105_s8 = smov [#allocation10]  }
  0x99   : > { %376 = vst [vmem:[#allocation2 + $0x6bf] sm:$0x1] %v7104_v1  ;;  %377 = vst [vmem:[#allocation2 + $0x74f] sm:$0x1] %v7104_v1  ;;  %5963 = vmatprep.subr.bf16.mxu0 %v7103_v0  ;;  %v5988_v8 = vpack.c.bf16 %v1587_v3, %v1586_v63  ;;  %v1599_v63 = vld [vmem:[#allocation7 + $0x1a8] sm:$0xff] }
  0x9a   : > { %378 = vst [vmem:[#allocation2 + $0x7df] sm:$0x1] %v7104_v1  ;;  %379 = vst [vmem:[#allocation2 + $0x86f] sm:$0x1] %v7104_v1  ;;  %v617_v3 = vld [vmem:[%s7325_s12 + $0x49] sm:$0x7f]  ;;  %p7028_p2 = pnand %p7027_p11, %p8933_p0 }
  0x9b   : > { %285 = vst [vmem:[#allocation2] sm:$0x1] %v7104_v1  ;;  %332 = vst [vmem:[#allocation2 + $0x8a0] sm:$0x1] %v7104_v1 }
  0x9c   : > { %333 = vst [vmem:[#allocation2 + $0x5f] sm:$0x1] %v7104_v1  ;;  %380 = vst [vmem:[#allocation2 + $0x8ff] sm:$0x1] %v7104_v1  ;;  %5965 = vmatpush1.bf16.msra.mxu0 %v5964_v6  ;;  %p7029_p3 = pneg %p7028_p2 }
  0x9d   : > { %518 = vst [vmem:[#allocation2 + $0x90] sm:$0xfe] %v7445_v17  ;;  %812 = vst [vmem:[#allocation2 + $0x18] sm:$0xfe] %v7445_v17  ;;  %5966 = vmatprep.subr.bf16.mxu0 %v7103_v0 }
  0x9e   : > { %520 = vst [vmem:[#allocation2 + $0x120] sm:$0xfe] %v7452_v19  ;;  %814 = vst [vmem:[#allocation2 + $0xa8] sm:$0xfe] %v7452_v19 }
  0x9f   : > { %522 = vst [vmem:[#allocation2 + $0x1b0] sm:$0xfe] %v7461_v24  ;;  %816 = vst [vmem:[#allocation2 + $0x138] sm:$0xfe] %v7461_v24 }
  0xa0   : > { %524 = vst [vmem:[#allocation2 + $0x240] sm:$0xfe] %v7468_v26  ;;  %818 = vst [vmem:[#allocation2 + $0x1c8] sm:$0xfe] %v7468_v26  ;;  %5968 = vmatpush1.bf16.msra.mxu0 %v5967_v11  ;;  %v1588_v11 = vld [vmem:[#allocation7 + $0x150] sm:$0xff] }
  0xa1   : > { %526 = vst [vmem:[#allocation2 + $0x2d0] sm:$0xfe] %v7477_v29  ;;  %820 = vst [vmem:[#allocation2 + $0x258] sm:$0xfe] %v7477_v29  ;;  %5969 = vmatprep.subr.bf16.mxu0 %v7103_v0 }
  0xa2   : > { %528 = vst [vmem:[#allocation2 + $0x360] sm:$0xfe] %v7486_v33  ;;  %822 = vst [vmem:[#allocation2 + $0x2e8] sm:$0xfe] %v7486_v33  ;;  %v1258_v30 = vld [vmem:[#allocation2] sm:$0xff] }
  0xa3   : > { %530 = vst [vmem:[#allocation2 + $0x3f0] sm:$0xfe] %v7494_v36  ;;  %824 = vst [vmem:[#allocation2 + $0x378] sm:$0xfe] %v7494_v36 }
  0xa4   : > { %532 = vst [vmem:[#allocation2 + $0x480] sm:$0xfe] %v7503_v40  ;;  %826 = vst [vmem:[#allocation2 + $0x408] sm:$0xfe] %v7503_v40  ;;  %5971 = vmatpush1.bf16.msra.mxu0 %v5970_v15  ;;  %v1276_v50 = vld [vmem:[#allocation2 + $0x90] sm:$0xff]  ;;  %v5991_v15 = vpack.c.bf16 %v1589_v12, %v1588_v11  ;;  %v1601_v11 = vld [vmem:[#allocation7 + $0x1b8] sm:$0xff] }
  0xa5   : > { %534 = vst [vmem:[#allocation2 + $0x510] sm:$0xfe] %v7511_v43  ;;  %828 = vst [vmem:[#allocation2 + $0x498] sm:$0xfe] %v7511_v43  ;;  %5972 = vmatprep.subr.bf16.mxu0 %v7103_v0  ;;  %v1294_v5 = vld [vmem:[#allocation2 + $0x120] sm:$0xff] }
  0xa6   : > { %536 = vst [vmem:[#allocation2 + $0x5a0] sm:$0xfe] %v7520_v47  ;;  %830 = vst [vmem:[#allocation2 + $0x528] sm:$0xfe] %v7520_v47  ;;  %v1312_v23 = vld [vmem:[#allocation2 + $0x1b0] sm:$0xff] }
  0xa7   : > { %538 = vst [vmem:[#allocation2 + $0x630] sm:$0xfe] %v7528_v51  ;;  %832 = vst [vmem:[#allocation2 + $0x5b8] sm:$0xfe] %v7528_v51 }
  0xa8   : > { %540 = vst [vmem:[#allocation2 + $0x6c0] sm:$0xfe] %v7540_v55  ;;  %542 = vst [vmem:[#allocation2 + $0x750] sm:$0xfe] %v7543_v56  ;;  %5974 = vmatpush1.bf16.msra.mxu0 %v5973_v22  ;;  %v613_v22 = vld [vmem:[%s7325_s12 + $0x29] sm:$0x7f] }
  0xa9   : > { %834 = vst [vmem:[#allocation2 + $0x648] sm:$0xfe] %v7540_v55  ;;  %836 = vst [vmem:[#allocation2 + $0x6d8] sm:$0xfe] %v7543_v56  ;;  %5975 = vmatprep.subr.bf16.mxu0 %v7103_v0 }
  0xaa   : > { %544 = vst [vmem:[#allocation2 + $0x7e0] sm:$0xfe] %v7556_v2  ;;  %838 = vst [vmem:[#allocation2 + $0x768] sm:$0xfe] %v7556_v2 }
  0xab   : > { %546 = vst [vmem:[#allocation2 + $0x870] sm:$0xfe] %v7566_v10  ;;  %840 = vst [vmem:[#allocation2 + $0x7f8] sm:$0xfe] %v7566_v10  ;;  %1762 = vmatmul.mubr.f32.vlgmr.msra.gmra.mrb[0].mxu0 %v1258_v30 }
  0xac   : > { %5977 = vmatpush1.bf16.msra.mxu0 %v5976_v31  ;;  %1766 = vmatprep.mubr.f32.mxu0 %v7104_v1  ;;  %639 = vst [vmem:[#allocation2 + $0xe8] sm:$0x7f] %v609_v49  ;;  %641 = vst [vmem:[#allocation2 + $0x178] sm:$0x7f] %v611_v4  ;;  %v553_v31 = vld [vmem:[%s7325_s12 + $0x28] sm:$0xff]  ;;  %v1348_v4 = vld [vmem:[#allocation2 + $0x2d0] sm:$0xff] }
  0xad   : > { %5978 = vmatprep.subr.bf16.mxu0 %v7103_v0  ;;  %643 = vst [vmem:[#allocation2 + $0x208] sm:$0x7f] %v613_v22  ;;  %v615_v49 = vld [vmem:[%s7325_s12 + $0x39] sm:$0x7f]  ;;  %647 = vst [vmem:[#allocation2 + $0x328] sm:$0x7f] %v617_v3 }
  0xae   : > { %645 = vst [vmem:[#allocation2 + $0x298] sm:$0x7f] %v615_v49  ;;  %v625_v3 = vld [vmem:[%s7325_s12 + $0x89] sm:$0x7f] }
  0xaf   : > { %1767 = vmatmul.mubr.f32.gmra.mrb[2].mxu0 %v7104_v1  ;;  %v444_v1 = vsel %vm441_vm0, %v7445_v17, %v443_v52  ;;  %v452_v52 = vrot.slane %v388_v44, 7  ;;  %v621_v44 = vld [vmem:[%s7325_s12 + $0x69] sm:$0x7f]  ;;  %655 = vst [vmem:[#allocation2 + $0x568] sm:$0x7f] %v625_v3 }
  0xb0   : > { %1771 = vmatprep.mubr.f32.mxu0 %v7441_v14  ;;  %5980 = vmatpush1.bf16.msra.mxu0 %v5979_v38  ;;  %v384_v14 = vld [vmem:[%s7325_s12 + $0x18] sm:$0x7f]  ;;  %v450_v38 = vsel %vm441_vm0, %v7461_v24, %v449_v28  ;;  %651 = vst [vmem:[#allocation2 + $0x448] sm:$0x7f] %v621_v44 }
  0xb1   : > { %5981 = vmatprep.subr.bf16.mxu0 %v7103_v0  ;;  %v446_v6 = vrot.slane %v384_v14, 7  ;;  %v390_v14 = vld [vmem:[%s7325_s12 + $0x48] sm:$0x7f]  ;;  %v559_v28 = vld [vmem:[%s7325_s12 + $0x58] sm:$0xff] }
  0xb2   : > { %v408_v44 = vld [vmem:[%s7325_s12 + $0xd8] sm:$0x7f] }
  0xb3   : > { %1772 = vmatmul.mubr.f32.gmra.mrb[4].mxu0 %v1276_v50  ;;  %v447_v13 = vsel %vm441_vm0, %v7452_v19, %v446_v6  ;;  %v1330_v50 = vld [vmem:[#allocation2 + $0x240] sm:$0xff] }
  0xb4   : > { %1776 = vmatprep.mubr.f32.mxu0 %v549_v58  ;;  %5983 = vmatpush1.bf16.msra.mxu0 %v5982_v57  ;;  %v555_v58 = vld [vmem:[%s7325_s12 + $0x38] sm:$0xff] }
  0xb5   : > { %5984 = vmatprep.subr.bf16.mxu0 %v7103_v0 }
  0xb7   : > { %1777 = vmatmul.mubr.f32.gmra.mrb[6].mxu0 %v444_v1  ;;  %v453_v1 = vsel %vm441_vm0, %v7468_v26, %v452_v52  ;;  %v1608_v52 = vld [vmem:[#allocation7 + $0x1f0] sm:$0xff] }
  0xb8   : > { %1781 = vmatprep.mubr.f32.mxu0 %v7448_v18  ;;  %5986 = vmatpush1.bf16.msra.mxu0 %v5985_v62  ;;  %v1590_v18 = vld [vmem:[#allocation7 + $0x160] sm:$0xff]  ;;  %v6003_v62 = vpack.c.bf16 %v1597_v60, %v1596_v59  ;;  %v623_v60 = vld [vmem:[%s7325_s12 + $0x79] sm:$0x7f] }
  0xb9   : > { %5987 = vmatprep.subr.bf16.mxu0 %v7103_v0  ;;  %v5994_v30 = vpack.c.bf16 %v1591_v20, %v1590_v18  ;;  %v619_v18 = vld [vmem:[%s7325_s12 + $0x59] sm:$0x7f]  ;;  %v1366_v20 = vld [vmem:[#allocation2 + $0x360] sm:$0xff]  ;;  %653 = vst [vmem:[#allocation2 + $0x4d8] sm:$0x7f] %v623_v60  ;;  %v577_v60 = vld [vmem:[%s7325_s12 + $0xe8] sm:$0xff] }
  0xba   : > { %649 = vst [vmem:[#allocation2 + $0x3b8] sm:$0x7f] %v619_v18 }
  0xbb   : > { %1782 = vmatmul.mubr.f32.gmra.mrb[8].mxu0 %v1294_v5  ;;  %v455_v5 = vrot.slane %v390_v14, 7  ;;  %v563_v14 = vld [vmem:[%s7325_s12 + $0x78] sm:$0xff] }
  0xbc   : > { %1786 = vmatprep.mubr.f32.mxu0 %v551_v9  ;;  %5989 = vmatpush1.bf16.msra.mxu0 %v5988_v8  ;;  %v557_v8 = vld [vmem:[%s7325_s12 + $0x48] sm:$0xff]  ;;  %v1600_v9 = vld [vmem:[#allocation7 + $0x1b0] sm:$0xff] }
  0xbd   : > { %5990 = vmatprep.subr.bf16.mxu0 %v7103_v0  ;;  %v456_v12 = vsel %vm441_vm0, %v7477_v29, %v455_v5  ;;  %v565_v5 = vld [vmem:[%s7325_s12 + $0x88] sm:$0xff] }
  0xbf   : > { %1787 = vmatmul.mubr.f32.gmra.mrb[10].mxu0 %v447_v13  ;;  %v6009_v13 = vpack.c.bf16 %v1601_v11, %v1600_v9  ;;  %v627_v9 = vld [vmem:[%s7325_s12 + $0x99] sm:$0x7f]  ;;  %v1438_v11 = vld [vmem:[#allocation2 + $0x5a0] sm:$0xff] }
  0xc0   : > { %1791 = vmatprep.mubr.f32.mxu0 %v7456_v21  ;;  %5992 = vmatpush1.bf16.msra.mxu0 %v5991_v15  ;;  %v1594_v21 = vld [vmem:[#allocation7 + $0x180] sm:$0xff]  ;;  %v392_v15 = vld [vmem:[%s7325_s12 + $0x58] sm:$0x7f]  ;;  %657 = vst [vmem:[#allocation2 + $0x5f8] sm:$0x7f] %v627_v9  ;;  %v6912_v9 = vld [vmem:[#allocation2 + $0x8] sm:$0xff] }
  0xc1   : > { %5993 = vmatprep.subr.bf16.mxu0 %v7103_v0  ;;  %v6000_v57 = vpack.c.bf16 %v1595_v45, %v1594_v21  ;;  %v458_v22 = vrot.slane %v392_v15, 7  ;;  %v1384_v21 = vld [vmem:[#allocation2 + $0x3f0] sm:$0xff]  ;;  %v402_v15 = vld [vmem:[%s7325_s12 + $0xa8] sm:$0x7f] }
  0xc2   : > { %v473_v18 = vrot.slane %v402_v15, 7  ;;  %v1614_v15 = vld [vmem:[#allocation7 + $0x220] sm:$0xff] }
  0xc3   : > { %1792 = vmatmul.mubr.f32.gmra.mrb[12].mxu0 %v1312_v23  ;;  %v459_v35 = vsel %vm441_vm0, %v7486_v33, %v458_v22  ;;  %v404_v22 = vld [vmem:[%s7325_s12 + $0xb8] sm:$0x7f] }
  0xc4   : > { %1796 = vmatprep.mubr.f32.mxu0 %v553_v31  ;;  %5995 = vmatpush1.bf16.msra.mxu0 %v5994_v30  ;;  %v1604_v30 = vld [vmem:[#allocation7 + $0x1d0] sm:$0xff]  ;;  %v1605_v31 = vld [vmem:[#allocation7 + $0x1d8] sm:$0xff] }
  0xc5   : > { %5996 = vmatprep.subr.bf16.mxu0 %v7103_v0  ;;  %v6015_v37 = vpack.c.bf16 %v1605_v31, %v1604_v30  ;;  %v476_v30 = vrot.slane %v404_v22, 7  ;;  %v1617_v22 = vld [vmem:[#allocation7 + $0x238] sm:$0xff] }
  0xc7   : > { %1797 = vmatmul.mubr.f32.gmra.mrb[14].mxu0 %v450_v38  ;;  %v394_v38 = vld [vmem:[%s7325_s12 + $0x68] sm:$0x7f]  ;;  %v477_v31 = vsel %vm441_vm0, %v7540_v55, %v476_v30  ;;  %v1297_v30 = vld [vmem:[#allocation2 + $0x138] sm:$0xff] }
  0xc8   : > { %1801 = vmatprep.mubr.f32.mxu0 %v7464_v25  ;;  %5998 = vmatpush1.bf16.msra.mxu0 %v5997_v42  ;;  %v1598_v25 = vld [vmem:[#allocation7 + $0x1a0] sm:$0xff]  ;;  %v1607_v42 = vld [vmem:[#allocation7 + $0x1e8] sm:$0xff]  ;;  %v461_v45 = vrot.slane %v394_v38, 7  ;;  %v1492_v38 = vld [vmem:[#allocation2 + $0x750] sm:$0xff] }
  0xc9   : > { %5999 = vmatprep.subr.bf16.mxu0 %v7103_v0  ;;  %v6006_v6 = vpack.c.bf16 %v1599_v63, %v1598_v25  ;;  %v398_v63 = vld [vmem:[%s7325_s12 + $0x88] sm:$0x7f] }
  0xcb   : > { %1802 = vmatmul.mubr.f32.gmra.mrb[16].mxu0 %v1330_v50  ;;  %v561_v50 = vld [vmem:[%s7325_s12 + $0x68] sm:$0xff] }
  0xcc   : > { %1806 = vmatprep.mubr.f32.mxu0 %v555_v58  ;;  %6001 = vmatpush1.bf16.msra.mxu0 %v6000_v57  ;;  %v1609_v57 = vld [vmem:[#allocation7 + $0x1f8] sm:$0xff]  ;;  %v462_v58 = vsel %vm441_vm0, %v7494_v36, %v461_v45  ;;  %v7673_v45 = vld [vmem:[%s7325_s12 + $0xf0] sm:$0xff] }
  0xcd   : > { %6002 = vmatprep.subr.bf16.mxu0 %v7103_v0  ;;  %v6021_v59 = vpack.c.bf16 %v1609_v57, %v1608_v52  ;;  %v575_v52 = vld [vmem:[%s7325_s12 + $0xd8] sm:$0xff] }
  0xcf   : > { %1807 = vmatmul.mubr.f32.gmra.mrb[18].mxu0 %v453_v1  ;;  %v1402_v1 = vld [vmem:[#allocation2 + $0x480] sm:$0xff] }
  0xd0   : > { %1811 = vmatprep.mubr.f32.mxu0 %v7472_v27  ;;  %6004 = vmatpush1.bf16.msra.mxu0 %v6003_v62  ;;  %v1602_v27 = vld [vmem:[#allocation7 + $0x1c0] sm:$0xff] }
  0xd1   : > { %6005 = vmatprep.subr.bf16.mxu0 %v7103_v0  ;;  %v6012_v23 = vpack.c.bf16 %v1603_v16, %v1602_v27  ;;  %v629_v27 = vld [vmem:[%s7325_s12 + $0xa9] sm:$0x7f]  ;;  %v1456_v16 = vld [vmem:[#allocation2 + $0x630] sm:$0xff] }
  0xd2   : > { %659 = vst [vmem:[#allocation2 + $0x688] sm:$0x7f] %v629_v27  ;;  %v1615_v27 = vld [vmem:[#allocation7 + $0x228] sm:$0xff] }
  0xd3   : > { %1812 = vmatmul.mubr.f32.gmra.mrb[20].mxu0 %v1348_v4  ;;  %v467_v4 = vrot.slane %v398_v63, 7  ;;  %v1611_v63 = vld [vmem:[#allocation7 + $0x208] sm:$0xff] }
  0xd4   : > { %1816 = vmatprep.mubr.f32.mxu0 %v557_v8  ;;  %6007 = vmatpush1.bf16.msra.mxu0 %v6006_v6  ;;  %v400_v8 = vld [vmem:[%s7325_s12 + $0x98] sm:$0x7f] }
  0xd5   : > { %6008 = vmatprep.subr.bf16.mxu0 %v7103_v0  ;;  %v468_v6 = vsel %vm441_vm0, %v7511_v43, %v467_v4 }
  0xd7   : > { %1817 = vmatmul.mubr.f32.gmra.mrb[22].mxu0 %v456_v12  ;;  %v470_v12 = vrot.slane %v400_v8, 7  ;;  %v671_v8 = vld [vmem:[%s7325_s12 + $0x18] sm:$0x7f] }
  0xd8   : > { %1821 = vmatprep.mubr.f32.mxu0 %v7482_v32  ;;  %6010 = vmatpush1.bf16.msra.mxu0 %v6009_v13  ;;  %v1606_v32 = vld [vmem:[#allocation7 + $0x1e0] sm:$0xff] }
  0xd9   : > { %6011 = vmatprep.subr.bf16.mxu0 %v7103_v0  ;;  %v6018_v49 = vpack.c.bf16 %v1607_v42, %v1606_v32  ;;  %v471_v13 = vsel %vm441_vm0, %v7520_v47, %v470_v12  ;;  %v573_v32 = vld [vmem:[%s7325_s12 + $0xc8] sm:$0xff] }
  0xda   : > { %v1279_v12 = vld [vmem:[#allocation2 + $0xa8] sm:$0xff] }
  0xdb   : > { %1822 = vmatmul.mubr.f32.gmra.mrb[24].mxu0 %v1366_v20  ;;  %v474_v20 = vsel %vm441_vm0, %v7528_v51, %v473_v18  ;;  %v6030_v18 = vpack.c.bf16 %v1615_v27, %v1614_v15 }
  0xdc   : > { %1826 = vmatprep.mubr.f32.mxu0 %v559_v28  ;;  %6013 = vmatpush1.bf16.msra.mxu0 %v6012_v23  ;;  %v631_v23 = vld [vmem:[%s7325_s12 + $0xb9] sm:$0x7f]  ;;  %v1474_v28 = vld [vmem:[#allocation2 + $0x6c0] sm:$0xff] }
  0xdd   : > { %6014 = vmatprep.subr.bf16.mxu0 %v7103_v0  ;;  %661 = vst [vmem:[#allocation2 + $0x718] sm:$0x7f] %v631_v23  ;;  %v673_v23 = vld [vmem:[%s7325_s12 + $0x28] sm:$0x7f] }
  0xdf   : > { %1827 = vmatmul.mubr.f32.gmra.mrb[26].mxu0 %v459_v35  ;;  %v406_v35 = vld [vmem:[%s7325_s12 + $0xc8] sm:$0x7f] }
  0xe0   : > { %1831 = vmatprep.mubr.f32.mxu0 %v7490_v34  ;;  %6016 = vmatpush1.bf16.msra.mxu0 %v6015_v37  ;;  %v396_v34 = vld [vmem:[%s7325_s12 + $0x78] sm:$0x7f]  ;;  %v633_v37 = vld [vmem:[%s7325_s12 + $0xc9] sm:$0x7f] }
  0xe1   : > { %6017 = vmatprep.subr.bf16.mxu0 %v7103_v0  ;;  %v464_v62 = vrot.slane %v396_v34, 7  ;;  %663 = vst [vmem:[#allocation2 + $0x7a8] sm:$0x7f] %v633_v37  ;;  %v1619_v37 = vld [vmem:[#allocation7 + $0x248] sm:$0xff] }
  0xe3   : > { %1832 = vmatmul.mubr.f32.gmra.mrb[28].mxu0 %v1384_v21  ;;  %v465_v25 = vsel %vm441_vm0, %v7503_v40, %v464_v62  ;;  %v635_v21 = vld [vmem:[%s7325_s12 + $0xd9] sm:$0x7f] }
  0xe4   : > { %1836 = vmatprep.mubr.f32.mxu0 %v561_v50  ;;  %6019 = vmatpush1.bf16.msra.mxu0 %v6018_v49  ;;  %665 = vst [vmem:[#allocation2 + $0x838] sm:$0x7f] %v635_v21  ;;  %v482_v49 = vrot.slane %v408_v44, 7  ;;  %v777_v50 = vrot.slane %v7673_v45, 7  ;;  %v1621_v44 = vld [vmem:[#allocation7 + $0x258] sm:$0xff]  ;;  %v1643_v45 = vld [vmem:[#allocation7 + $0x308] sm:$0xff] }
  0xe5   : > { %6020 = vmatprep.subr.bf16.mxu0 %v7103_v0  ;;  %v675_v21 = vld [vmem:[%s7325_s12 + $0x38] sm:$0x7f] }
  0xe6   : > { %842 = vst [vmem:[#allocation2 + $0x888] sm:$0xfe] %v777_v50  ;;  %v483_v57 = vsel %vm441_vm0, %v7556_v2, %v482_v49  ;;  %v1315_v49 = vld [vmem:[#allocation2 + $0x1c8] sm:$0xff] }
  0xe7   : > { %1837 = vmatmul.mubr.f32.gmra.mrb[30].mxu0 %v462_v58  ;;  %v410_v58 = vld [vmem:[%s7325_s12 + $0xe8] sm:$0x7f] }
  0xe8   : > { %1841 = vmatprep.mubr.f32.mxu0 %v7499_v39  ;;  %6022 = vmatpush1.bf16.msra.mxu0 %v6021_v59  ;;  %v1420_v39 = vld [vmem:[#allocation2 + $0x510] sm:$0xff]  ;;  %v637_v59 = vld [vmem:[%s7325_s12 + $0xe9] sm:$0x7f]  ;;  %v485_v34 = vrot.slane %v410_v58, 7  ;;  %v1622_v58 = vld [vmem:[#allocation7 + $0x260] sm:$0xff] }
  0xe9   : > { %6023 = vmatprep.subr.bf16.mxu0 %v7103_v0  ;;  %667 = vst [vmem:[#allocation2 + $0x8c8] sm:$0x7f] %v637_v59  ;;  %v1623_v59 = vld [vmem:[#allocation7 + $0x268] sm:$0xff] }
  0xea   : > { %v486_v62 = vsel %vm441_vm0, %v7566_v10, %v485_v34  ;;  %v6042_v34 = vpack.c.bf16 %v1623_v59, %v1622_v58 }
  0xeb   : > { %1842 = vmatmul.mubr.f32.gmra.mrb[32].mxu0 %v1402_v1  ;;  %v669_v1 = vld [vmem:[%s7325_s12 + $0x8] sm:$0x7f] }
  0xec   : > { %1846 = vmatprep.mubr.f32.mxu0 %v563_v14  ;;  %v1261_v14 = vld [vmem:[#allocation2 + $0x18] sm:$0xff]  ;;  %v733_v3 = vrot.slane %v669_v1, 7  ;;  %v1624_v1 = vld [vmem:[#allocation7 + $0x270] sm:$0xff] }
  0xef   : > { %1847 = vmatmul.mubr.f32.gmra.mrb[34].mxu0 %v465_v25  ;;  %v1610_v25 = vld [vmem:[#allocation7 + $0x200] sm:$0xff] }
  0xf0   : > { %1851 = vmatprep.mubr.f32.mxu0 %v7507_v41  ;;  %v567_v41 = vld [vmem:[%s7325_s12 + $0x98] sm:$0xff]  ;;  %v6024_v4 = vpack.c.bf16 %v1611_v63, %v1610_v25  ;;  %v1323_v25 = vld [vmem:[#allocation2 + $0x208] sm:$0xff] }
  0xf1   : > { %v1333_v63 = vld [vmem:[#allocation2 + $0x258] sm:$0xff] }
  0xf3   : > { %1852 = vmatmul.mubr.f32.gmra.mrb[36].mxu0 %v1420_v39  ;;  %v909_v39 = vld [vmem:[%s7325_s12 + $0x9] sm:$0x7f] }
  0xf4   : > { %1856 = vmatprep.mubr.f32.mxu0 %v565_v5  ;;  %941 = vst [vmem:[#allocation2 + $0x70] sm:$0x7f] %v909_v39  ;;  %v1612_v5 = vld [vmem:[#allocation7 + $0x210] sm:$0xff] }
  0xf7   : > { %1857 = vmatmul.mubr.f32.gmra.mrb[38].mxu0 %v468_v6  ;;  %v1613_v6 = vld [vmem:[#allocation7 + $0x218] sm:$0xff] }
  0xf8   : > { %1861 = vmatprep.mubr.f32.mxu0 %v7516_v46  ;;  %v569_v46 = vld [vmem:[%s7325_s12 + $0xa8] sm:$0xff] }
  0xfb   : > { %1862 = vmatmul.mubr.f32.gmra.mrb[40].mxu0 %v1438_v11  ;;  %v1269_v11 = vld [vmem:[#allocation2 + $0x58] sm:$0xff] }
  0xfc   : > { %1866 = vmatprep.mubr.f32.mxu0 %v567_v41  ;;  %v6027_v41 = vpack.c.bf16 %v1613_v6, %v1612_v5  ;;  %v7726_v5 = vld [vmem:[%s7325_s12 + $0x31] sm:$0xff] }
  0xff   : > { %1867 = vmatmul.mubr.f32.gmra.mrb[42].mxu0 %v471_v13  ;;  %v736_v13 = vrot.slane %v671_v8, 7 }
 0x100   : > { %1871 = vmatprep.mubr.f32.mxu0 %v7524_v48  ;;  %v571_v48 = vld [vmem:[%s7325_s12 + $0xb8] sm:$0xff] }
 0x103   : > { %1872 = vmatmul.mubr.f32.gmra.mrb[44].mxu0 %v1456_v16  ;;  %v911_v16 = vld [vmem:[%s7325_s12 + $0x19] sm:$0x7f] }
 0x104   : > { %1876 = vmatprep.mubr.f32.mxu0 %v569_v46  ;;  %943 = vst [vmem:[#allocation2 + $0x100] sm:$0x7f] %v911_v16  ;;  %v737_v46 = vsel %vm441_vm0, %v7452_v19, %v736_v13  ;;  %v913_v19 = vld [vmem:[%s7325_s12 + $0x29] sm:$0x7f]  ;;  %v1630_v16 = vld [vmem:[#allocation7 + $0x2a0] sm:$0xff] }
 0x105   : > { %945 = vst [vmem:[#allocation2 + $0x190] sm:$0x7f] %v913_v19  ;;  %v1351_v13 = vld [vmem:[#allocation2 + $0x2e8] sm:$0xff]  ;;  %v1634_v19 = vld [vmem:[#allocation7 + $0x2c0] sm:$0xff] }
 0x107   : > { %1877 = vmatmul.mubr.f32.gmra.mrb[46].mxu0 %v474_v20  ;;  %v1616_v20 = vld [vmem:[#allocation7 + $0x230] sm:$0xff] }
 0x108   : > { %1881 = vmatprep.mubr.f32.mxu0 %v7533_v53  ;;  %v479_v53 = vrot.slane %v406_v35, 7  ;;  %v1618_v35 = vld [vmem:[#allocation7 + $0x240] sm:$0xff] }
 0x10a   : > { %v480_v42 = vsel %vm441_vm0, %v7543_v56, %v479_v53  ;;  %v6036_v53 = vpack.c.bf16 %v1619_v37, %v1618_v35 }
 0x10b   : > { %1882 = vmatmul.mubr.f32.gmra.mrb[48].mxu0 %v1474_v28  ;;  %v1287_v28 = vld [vmem:[#allocation2 + $0xe8] sm:$0xff] }
 0x10c   : > { %1886 = vmatprep.mubr.f32.mxu0 %v571_v48  ;;  %v6033_v48 = vpack.c.bf16 %v1617_v22, %v1616_v20 }
 0x10f   : > { %1887 = vmatmul.mubr.f32.gmra.mrb[50].mxu0 %v477_v31  ;;  %v739_v31 = vrot.slane %v673_v23, 7  ;;  %v1632_v23 = vld [vmem:[#allocation7 + $0x2b0] sm:$0xff] }
 0x110   : > { %1891 = vmatprep.mubr.f32.mxu0 %v7536_v54  ;;  %v1510_v54 = vld [vmem:[#allocation2 + $0x7e0] sm:$0xff] }
 0x113   : > { %1892 = vmatmul.mubr.f32.gmra.mrb[52].mxu0 %v1492_v38  ;;  %v7706_v38 = vld [vmem:[%s7325_s12 + $0x11] sm:$0xff] }
 0x114   : > { %1896 = vmatprep.mubr.f32.mxu0 %v573_v32  ;;  %v740_v32 = vsel %vm441_vm0, %v7461_v24, %v739_v31  ;;  %v915_v24 = vld [vmem:[%s7325_s12 + $0x39] sm:$0x7f] }
 0x115   : > { %947 = vst [vmem:[#allocation2 + $0x220] sm:$0x7f] %v915_v24  ;;  %v1369_v31 = vld [vmem:[#allocation2 + $0x378] sm:$0xff]  ;;  %v1638_v24 = vld [vmem:[#allocation7 + $0x2e0] sm:$0xff] }
 0x117   : > { %1897 = vmatmul.mubr.f32.gmra.mrb[54].mxu0 %v480_v42  ;;  %v1620_v42 = vld [vmem:[#allocation7 + $0x250] sm:$0xff] }
 0x118   : > { %1901 = vmatprep.mubr.f32.mxu0 %v7552_v61  ;;  %v1528_v61 = vld [vmem:[#allocation2 + $0x870] sm:$0xff] }
 0x11b   : > { %1902 = vmatmul.mubr.f32.gmra.mrb[56].mxu0 %v1510_v54  ;;  %v1305_v54 = vld [vmem:[#allocation2 + $0x178] sm:$0xff] }
 0x11c   : > { %1906 = vmatprep.mubr.f32.mxu0 %v575_v52  ;;  %v6039_v52 = vpack.c.bf16 %v1621_v44, %v1620_v42 }
 0x11f   : > { %1907 = vmatmul.mubr.f32.gmra.mrb[58].mxu0 %v483_v57  ;;  %v742_v57 = vrot.slane %v675_v21, 7  ;;  %v1636_v21 = vld [vmem:[#allocation7 + $0x2d0] sm:$0xff] }
 0x120   : > { %1911 = vmatprep.mubr.f32.mxu0 %v7562_v7  ;;  %v734_v7 = vsel %vm441_vm0, %v7445_v17, %v733_v3  ;;  %v7696_v17 = vld [vmem:[%s7325_s12 + $0x1] sm:$0xff] }
 0x123   : > { %1912 = vmatmul.mubr.f32.gmra.mrb[60].mxu0 %v1528_v61  ;;  %v7716_v61 = vld [vmem:[%s7325_s12 + $0x21] sm:$0xff] }
 0x124   : > { %1916 = vmatprep.mubr.f32.mxu0 %v577_v60  ;;  %v743_v60 = vsel %vm441_vm0, %v7468_v26, %v742_v57  ;;  %v917_v26 = vld [vmem:[%s7325_s12 + $0x49] sm:$0x7f] }
 0x125   : > { %949 = vst [vmem:[#allocation2 + $0x2b0] sm:$0x7f] %v917_v26  ;;  %v1387_v57 = vld [vmem:[#allocation2 + $0x408] sm:$0xff] }
 0x126   : > { %v925_v26 = vld [vmem:[%s7325_s12 + $0x89] sm:$0x7f] }
 0x127   : > { %1917 = vmatmul.mubr.f32.gmra.mrb[62].mxu0 %v486_v62  ;;  %v1625_v62 = vld [vmem:[#allocation7 + $0x278] sm:$0xff]  ;;  %957 = vst [vmem:[#allocation2 + $0x4f0] sm:$0x7f] %v925_v26 }
 0x128   : > { %1986 = vmatprep.mubr.f32.mxu0 %v1261_v14  ;;  %v677_v14 = vld [vmem:[%s7325_s12 + $0x48] sm:$0x7f]  ;;  %v6045_v3 = vpack.c.bf16 %v1625_v62, %v1624_v1  ;;  %v1681_v26 = vld [vmem:[#allocation7 + $0x438] sm:$0xff] }
 0x129   : > { %v745_v39 = vrot.slane %v677_v14, 7  ;;  %v1640_v14 = vld [vmem:[#allocation7 + $0x2f0] sm:$0xff] }
 0x12b   : > { %1987 = vmatmul.mubr.f32.vlgmr.msra.gmra.mrb[0].mxu0 %v6912_v9  ;;  %v746_v8 = vsel %vm441_vm0, %v7477_v29, %v745_v39  ;;  %v1628_v9 = vld [vmem:[#allocation7 + $0x290] sm:$0xff]  ;;  %v919_v29 = vld [vmem:[%s7325_s12 + $0x59] sm:$0x7f] }
 0x12c   : > { %6025 = vmatpush1.bf16.msra.mxu0 %v6024_v4  ;;  %1991 = vmatprep.mubr.f32.mxu0 %v734_v7  ;;  %v1626_v4 = vld [vmem:[#allocation7 + $0x280] sm:$0xff]  ;;  %v1627_v7 = vld [vmem:[#allocation7 + $0x288] sm:$0xff]  ;;  %951 = vst [vmem:[#allocation2 + $0x340] sm:$0x7f] %v919_v29 }
 0x12d   : > { %6026 = vmatprep.subr.bf16.mxu0 %v7103_v0  ;;  %v6048_v6 = vpack.c.bf16 %v1627_v7, %v1626_v4  ;;  %v1405_v4 = vld [vmem:[#allocation2 + $0x498] sm:$0xff]  ;;  %v929_v29 = vld [vmem:[%s7325_s12 + $0xa9] sm:$0x7f] }
 0x12e   : > { %961 = vst [vmem:[#allocation2 + $0x610] sm:$0x7f] %v929_v29  ;;  %v1685_v29 = vld [vmem:[#allocation7 + $0x458] sm:$0xff] }
 0x12f   : > { %1992 = vmatmul.mubr.f32.gmra.mrb[2].mxu0 %v1269_v11  ;;  %v1629_v11 = vld [vmem:[#allocation7 + $0x298] sm:$0xff] }
 0x130   : > { %1996 = vmatprep.mubr.f32.mxu0 %v1279_v12  ;;  %6028 = vmatpush1.bf16.msra.mxu0 %v6027_v41  ;;  %v679_v12 = vld [vmem:[%s7325_s12 + $0x58] sm:$0x7f]  ;;  %v6051_v15 = vpack.c.bf16 %v1629_v11, %v1628_v9  ;;  %v1423_v11 = vld [vmem:[#allocation2 + $0x528] sm:$0xff] }
 0x131   : > { %6029 = vmatprep.subr.bf16.mxu0 %v7103_v0  ;;  %v1341_v41 = vld [vmem:[#allocation2 + $0x298] sm:$0xff]  ;;  %v748_v27 = vrot.slane %v679_v12, 7 }
 0x132   : > { %v1413_v9 = vld [vmem:[#allocation2 + $0x4d8] sm:$0xff] }
 0x133   : > { %1997 = vmatmul.mubr.f32.gmra.mrb[4].mxu0 %v7696_v17  ;;  %v749_v22 = vsel %vm441_vm0, %v7486_v33, %v748_v27  ;;  %v921_v33 = vld [vmem:[%s7325_s12 + $0x69] sm:$0x7f] }
 0x134   : > { %2001 = vmatprep.mubr.f32.mxu0 %v737_v46  ;;  %6031 = vmatpush1.bf16.msra.mxu0 %v6030_v18  ;;  %v1631_v18 = vld [vmem:[#allocation7 + $0x2a8] sm:$0xff]  ;;  %953 = vst [vmem:[#allocation2 + $0x3d0] sm:$0x7f] %v921_v33 }
 0x135   : > { %6032 = vmatprep.subr.bf16.mxu0 %v7103_v0  ;;  %v7736_v46 = vld [vmem:[%s7325_s12 + $0x41] sm:$0xff]  ;;  %v6054_v20 = vpack.c.bf16 %v1631_v18, %v1630_v16  ;;  %v1441_v16 = vld [vmem:[#allocation2 + $0x5b8] sm:$0xff]  ;;  %v933_v33 = vld [vmem:[%s7325_s12 + $0xc9] sm:$0x7f] }
 0x136   : > { %v1431_v27 = vld [vmem:[#allocation2 + $0x568] sm:$0xff]  ;;  %965 = vst [vmem:[#allocation2 + $0x730] sm:$0x7f] %v933_v33  ;;  %v1689_v33 = vld [vmem:[#allocation7 + $0x478] sm:$0xff] }
 0x137   : > { %2002 = vmatmul.mubr.f32.gmra.mrb[6].mxu0 %v1287_v28  ;;  %v1633_v28 = vld [vmem:[#allocation7 + $0x2b8] sm:$0xff] }
 0x138   : > { %2006 = vmatprep.mubr.f32.mxu0 %v1297_v30  ;;  %6034 = vmatpush1.bf16.msra.mxu0 %v6033_v48  ;;  %v681_v30 = vld [vmem:[%s7325_s12 + $0x68] sm:$0x7f]  ;;  %v6057_v35 = vpack.c.bf16 %v1633_v28, %v1632_v23  ;;  %v1449_v23 = vld [vmem:[#allocation2 + $0x5f8] sm:$0xff] }
 0x139   : > { %6035 = vmatprep.subr.bf16.mxu0 %v7103_v0  ;;  %v1359_v48 = vld [vmem:[#allocation2 + $0x328] sm:$0xff]  ;;  %v751_v37 = vrot.slane %v681_v30, 7 }
 0x13a   : > { %v1459_v28 = vld [vmem:[#allocation2 + $0x648] sm:$0xff] }
 0x13b   : > { %2007 = vmatmul.mubr.f32.gmra.mrb[8].mxu0 %v7706_v38  ;;  %v752_v44 = vsel %vm441_vm0, %v7494_v36, %v751_v37  ;;  %v923_v36 = vld [vmem:[%s7325_s12 + $0x79] sm:$0x7f]  ;;  %v1467_v37 = vld [vmem:[#allocation2 + $0x688] sm:$0xff] }
 0x13c   : > { %2011 = vmatprep.mubr.f32.mxu0 %v740_v32  ;;  %6037 = vmatpush1.bf16.msra.mxu0 %v6036_v53  ;;  %v1635_v53 = vld [vmem:[#allocation7 + $0x2c8] sm:$0xff]  ;;  %v7746_v32 = vld [vmem:[%s7325_s12 + $0x51] sm:$0xff]  ;;  %955 = vst [vmem:[#allocation2 + $0x460] sm:$0x7f] %v923_v36  ;;  %v935_v36 = vld [vmem:[%s7325_s12 + $0xd9] sm:$0x7f] }
 0x13d   : > { %6038 = vmatprep.subr.bf16.mxu0 %v7103_v0  ;;  %v6060_v42 = vpack.c.bf16 %v1635_v53, %v1634_v19  ;;  %v1477_v19 = vld [vmem:[#allocation2 + $0x6d8] sm:$0xff]  ;;  %967 = vst [vmem:[#allocation2 + $0x7c0] sm:$0x7f] %v935_v36 }
 0x13f   : > { %2012 = vmatmul.mubr.f32.gmra.mrb[10].mxu0 %v1305_v54  ;;  %v1637_v54 = vld [vmem:[#allocation7 + $0x2d8] sm:$0xff] }
 0x140   : > { %2016 = vmatprep.mubr.f32.mxu0 %v1315_v49  ;;  %6040 = vmatpush1.bf16.msra.mxu0 %v6039_v52  ;;  %v683_v49 = vld [vmem:[%s7325_s12 + $0x78] sm:$0x7f]  ;;  %v6063_v58 = vpack.c.bf16 %v1637_v54, %v1636_v21  ;;  %v1674_v21 = vld [vmem:[#allocation7 + $0x400] sm:$0xff]  ;;  %v1675_v54 = vld [vmem:[#allocation7 + $0x408] sm:$0xff] }
 0x141   : > { %6041 = vmatprep.subr.bf16.mxu0 %v7103_v0  ;;  %v1377_v52 = vld [vmem:[#allocation2 + $0x3b8] sm:$0xff]  ;;  %v754_v59 = vrot.slane %v683_v49, 7  ;;  %v6119_v49 = vpack.c.bf16 %v1675_v54, %v1674_v21  ;;  %v844_v21 = vld [vmem:[%s7325_s12] sm:$0xff] }
 0x143   : > { %2017 = vmatmul.mubr.f32.gmra.mrb[12].mxu0 %v7716_v61  ;;  %v755_v62 = vsel %vm441_vm0, %v7503_v40, %v754_v59  ;;  %v7766_v40 = vld [vmem:[%s7325_s12 + $0x71] sm:$0xff]  ;;  %6120 = vmatprep.subr.bf16.mxu1 %v6119_v49 }
 0x144   : > { %2021 = vmatprep.mubr.f32.mxu0 %v743_v60  ;;  %6043 = vmatpush1.bf16.msra.mxu0 %v6042_v34  ;;  %v1639_v34 = vld [vmem:[#allocation7 + $0x2e8] sm:$0xff]  ;;  %v1676_v59 = vld [vmem:[#allocation7 + $0x410] sm:$0xff] }
 0x145   : > { %6044 = vmatprep.subr.bf16.mxu0 %v7103_v0  ;;  %v7756_v60 = vld [vmem:[%s7325_s12 + $0x61] sm:$0xff]  ;;  %v6066_v1 = vpack.c.bf16 %v1639_v34, %v1638_v24  ;;  %6122 = vmatpush3.bf16.msra.mxu1 %v6119_v49  ;;  %v1677_v24 = vld [vmem:[#allocation7 + $0x418] sm:$0xff]  ;;  %v1272_v49 = vld [vmem:[#allocation2 + $0x70] sm:$0xff] }
 0x146   : > { %v6123_v34 = vpack.c.bf16 %v1677_v24, %v1676_v59  ;;  %v5632_v59 = vld [vmem:[%s7325_s12 + $0x11] sm:$0xff] }
 0x147   : > { %2022 = vmatmul.mubr.f32.gmra.mrb[14].mxu0 %v1323_v25  ;;  %v1641_v25 = vld [vmem:[#allocation7 + $0x2f8] sm:$0xff]  ;;  %5799 = vmatprep.mubr.f32.mxu1 %v5632_v59  ;;  %v1344_v59 = vld [vmem:[#allocation2 + $0x2b0] sm:$0xff] }
 0x148   : > { %2026 = vmatprep.mubr.f32.mxu0 %v1333_v63  ;;  %6046 = vmatpush1.bf16.msra.mxu0 %v6045_v3  ;;  %v685_v63 = vld [vmem:[%s7325_s12 + $0x88] sm:$0x7f]  ;;  %v6069_v39 = vpack.c.bf16 %v1641_v25, %v1640_v14 }
 0x149   : > { %6047 = vmatprep.subr.bf16.mxu0 %v7103_v0  ;;  %v1395_v3 = vld [vmem:[#allocation2 + $0x448] sm:$0xff]  ;;  %v757_v7 = vrot.slane %v685_v63, 7  ;;  %6124 = vmatprep.subr.bf16.mxu1 %v6123_v34 }
 0x14a   : > { %6126 = vmatpush3.bf16.msra.mxu1 %v6123_v34  ;;  %v1679_v14 = vld [vmem:[#allocation7 + $0x428] sm:$0xff] }
 0x14b   : > { %2027 = vmatmul.mubr.f32.gmra.mrb[16].mxu0 %v7726_v5  ;;  %v697_v25 = vld [vmem:[%s7325_s12 + $0xe8] sm:$0x7f] }
 0x14c   : > { %2031 = vmatprep.mubr.f32.mxu0 %v746_v8  ;;  %6049 = vmatpush1.bf16.msra.mxu0 %v6048_v6  ;;  %v758_v6 = vsel %vm441_vm0, %v7511_v43, %v757_v7  ;;  %v687_v8 = vld [vmem:[%s7325_s12 + $0x98] sm:$0x7f]  ;;  %v1680_v7 = vld [vmem:[#allocation7 + $0x430] sm:$0xff]  ;;  %v845_v34 = vld [vmem:[%s7325_s12 + $0x8] sm:$0xff] }
 0x14d   : > { %6050 = vmatprep.subr.bf16.mxu0 %v7103_v0  ;;  %v760_v12 = vrot.slane %v687_v8, 7  ;;  %v6131_v8 = vpack.c.bf16 %v1681_v26, %v1680_v7  ;;  %v5634_v7 = vld [vmem:[%s7325_s12 + $0x21] sm:$0xff] }
 0x14f   : > { %2032 = vmatmul.mubr.f32.gmra.mrb[18].mxu0 %v1341_v41  ;;  %v927_v41 = vld [vmem:[%s7325_s12 + $0x99] sm:$0x7f]  ;;  %v761_v43 = vsel %vm441_vm0, %v7520_v47, %v760_v12  ;;  %v1683_v12 = vld [vmem:[#allocation7 + $0x448] sm:$0xff] }
 0x150   : > { %2036 = vmatprep.mubr.f32.mxu0 %v1351_v13  ;;  %6052 = vmatpush1.bf16.msra.mxu0 %v6051_v15  ;;  %959 = vst [vmem:[#allocation2 + $0x580] sm:$0x7f] %v927_v41  ;;  %v7775_v13 = vld [vmem:[%s7325_s12 + $0x81] sm:$0xff]  ;;  %v691_v47 = vld [vmem:[%s7325_s12 + $0xb8] sm:$0x7f] }
 0x151   : > { %6053 = vmatprep.subr.bf16.mxu0 %v7103_v0  ;;  %v689_v15 = vld [vmem:[%s7325_s12 + $0xa8] sm:$0x7f]  ;;  %v766_v30 = vrot.slane %v691_v47, 7  ;;  %v699_v41 = vld [vmem:[%s7325_s12 + $0xf8] sm:$0x7f] }
 0x152   : > { %v763_v18 = vrot.slane %v689_v15, 7  ;;  %v1521_v15 = vld [vmem:[#allocation2 + $0x838] sm:$0xff]  ;;  %v7823_v47 = vld [vmem:[%s7325_s12 + $0xe1] sm:$0xff] }
 0x153   : > { %2037 = vmatmul.mubr.f32.gmra.mrb[20].mxu0 %v7736_v46 }
 0x154   : > { %2041 = vmatprep.mubr.f32.mxu0 %v749_v22  ;;  %6055 = vmatpush1.bf16.msra.mxu0 %v6054_v20  ;;  %v7783_v20 = vld [vmem:[%s7325_s12 + $0x91] sm:$0xff]  ;;  %v764_v22 = vsel %vm441_vm0, %v7528_v51, %v763_v18  ;;  %v693_v51 = vld [vmem:[%s7325_s12 + $0xc8] sm:$0x7f] }
 0x155   : > { %6056 = vmatprep.subr.bf16.mxu0 %v7103_v0  ;;  %v769_v53 = vrot.slane %v693_v51, 7  ;;  %v1684_v18 = vld [vmem:[#allocation7 + $0x450] sm:$0xff] }
 0x157   : > { %2042 = vmatmul.mubr.f32.gmra.mrb[22].mxu0 %v1359_v48  ;;  %v931_v48 = vld [vmem:[%s7325_s12 + $0xb9] sm:$0x7f] }
 0x158   : > { %2046 = vmatprep.mubr.f32.mxu0 %v1369_v31  ;;  %6058 = vmatpush1.bf16.msra.mxu0 %v6057_v35  ;;  %963 = vst [vmem:[#allocation2 + $0x6a0] sm:$0x7f] %v931_v48  ;;  %v7791_v31 = vld [vmem:[%s7325_s12 + $0xa1] sm:$0xff]  ;;  %v767_v35 = vsel %vm441_vm0, %v7540_v55, %v766_v30  ;;  %v695_v55 = vld [vmem:[%s7325_s12 + $0xd8] sm:$0x7f] }
 0x159   : > { %6059 = vmatprep.subr.bf16.mxu0 %v7103_v0  ;;  %v1686_v30 = vld [vmem:[#allocation7 + $0x460] sm:$0xff]  ;;  %v1687_v48 = vld [vmem:[#allocation7 + $0x468] sm:$0xff] }
 0x15a   : > { %v6143_v51 = vpack.c.bf16 %v1687_v48, %v1686_v30  ;;  %v1655_v30 = vld [vmem:[#allocation7 + $0x368] sm:$0xff]  ;;  %v7883_v48 = vld [vmem:[%s7325_s12 + $0x50] sm:$0xff] }
 0x15b   : > { %2047 = vmatmul.mubr.f32.gmra.mrb[24].mxu0 %v7746_v32 }
 0x15c   : > { %2051 = vmatprep.mubr.f32.mxu0 %v752_v44  ;;  %6061 = vmatpush1.bf16.msra.mxu0 %v6060_v42  ;;  %v7799_v42 = vld [vmem:[%s7325_s12 + $0xb1] sm:$0xff]  ;;  %v770_v44 = vsel %vm441_vm0, %v7543_v56, %v769_v53  ;;  %v7807_v56 = vld [vmem:[%s7325_s12 + $0xc1] sm:$0xff] }
 0x15d   : > { %6062 = vmatprep.subr.bf16.mxu0 %v7103_v0  ;;  %v1642_v53 = vld [vmem:[#allocation7 + $0x300] sm:$0xff] }
 0x15e   : > { %v6072_v54 = vpack.c.bf16 %v1643_v45, %v1642_v53  ;;  %v1657_v53 = vld [vmem:[#allocation7 + $0x378] sm:$0xff]  ;;  %v1045_v45 = vrot.slane %v7883_v48, 7 }
 0x15f   : > { %2052 = vmatmul.mubr.f32.gmra.mrb[26].mxu0 %v1377_v52  ;;  %v1485_v52 = vld [vmem:[#allocation2 + $0x718] sm:$0xff] }
 0x160   : > { %2056 = vmatprep.mubr.f32.mxu0 %v1387_v57  ;;  %6064 = vmatpush1.bf16.msra.mxu0 %v6063_v58  ;;  %v1495_v57 = vld [vmem:[#allocation2 + $0x768] sm:$0xff]  ;;  %v772_v58 = vrot.slane %v695_v55, 7  ;;  %v7839_v55 = vld [vmem:[%s7325_s12 + $0x20] sm:$0xff]  ;;  %1116 = vst [vmem:[#allocation2 + $0x270] sm:$0xfe] %v1045_v45 }
 0x161   : > { %6065 = vmatprep.subr.bf16.mxu0 %v7103_v0 }
 0x163   : > { %2057 = vmatmul.mubr.f32.gmra.mrb[28].mxu0 %v7756_v60 }
 0x164   : > { %2061 = vmatprep.mubr.f32.mxu0 %v755_v62  ;;  %6067 = vmatpush1.bf16.msra.mxu0 %v6066_v1  ;;  %v773_v1 = vsel %vm441_vm0, %v7556_v2, %v772_v58  ;;  %v1678_v62 = vld [vmem:[#allocation7 + $0x420] sm:$0xff]  ;;  %v7815_v2 = vld [vmem:[%s7325_s12 + $0xd1] sm:$0xff]  ;;  %v1036_v58 = vrot.slane %v7839_v55, 7 }
 0x165   : > { %6068 = vmatprep.subr.bf16.mxu0 %v7103_v0  ;;  %v6127_v63 = vpack.c.bf16 %v1679_v14, %v1678_v62  ;;  %v1647_v62 = vld [vmem:[#allocation7 + $0x328] sm:$0xff] }
 0x166   : > { %1110 = vst [vmem:[#allocation2 + $0xc0] sm:$0xfe] %v1036_v58 }
 0x167   : > { %2062 = vmatmul.mubr.f32.gmra.mrb[30].mxu0 %v1395_v3  ;;  %v1503_v3 = vld [vmem:[#allocation2 + $0x7a8] sm:$0xff]  ;;  %6128 = vmatprep.subr.bf16.mxu1 %v6127_v63 }
 0x168   : > { %2066 = vmatprep.mubr.f32.mxu0 %v1405_v4  ;;  %6070 = vmatpush1.bf16.msra.mxu0 %v6069_v39  ;;  %v1513_v39 = vld [vmem:[#allocation2 + $0x7f8] sm:$0xff]  ;;  %v775_v4 = vrot.slane %v697_v25, 7  ;;  %v7851_v25 = vld [vmem:[%s7325_s12 + $0x30] sm:$0xff] }
 0x169   : > { %6071 = vmatprep.subr.bf16.mxu0 %v7103_v0  ;;  %6130 = vmatpush3.bf16.msra.mxu1 %v6127_v63  ;;  %v1290_v63 = vld [vmem:[#allocation2 + $0x100] sm:$0xff] }
 0x16a   : > { %6132 = vmatprep.subr.bf16.mxu1 %v6131_v8 }
 0x16b   : > { %2067 = vmatmul.mubr.f32.gmra.mrb[32].mxu0 %v7766_v40 }
 0x16c   : > { %2071 = vmatprep.mubr.f32.mxu0 %v758_v6  ;;  %v937_v6 = vld [vmem:[%s7325_s12 + $0xe9] sm:$0x7f] }
 0x16d   : > { %969 = vst [vmem:[#allocation2 + $0x850] sm:$0x7f] %v937_v6  ;;  %6134 = vmatpush3.bf16.msra.mxu1 %v6131_v8  ;;  %v7861_v6 = vld [vmem:[%s7325_s12 + $0x18] sm:$0xff] }
 0x16f   : > { %2072 = vmatmul.mubr.f32.gmra.mrb[34].mxu0 %v1413_v9  ;;  %v776_v9 = vsel %vm441_vm0, %v7566_v10, %v775_v4  ;;  %v939_v10 = vld [vmem:[%s7325_s12 + $0xf9] sm:$0x7f]  ;;  %v1039_v4 = vrot.slane %v7851_v25, 7 }
 0x170   : > { %2076 = vmatprep.mubr.f32.mxu0 %v1423_v11  ;;  %v1682_v11 = vld [vmem:[#allocation7 + $0x440] sm:$0xff]  ;;  %971 = vst [vmem:[#allocation2 + $0x8e0] sm:$0x7f] %v939_v10 }
 0x171   : > { %1112 = vst [vmem:[#allocation2 + $0x150] sm:$0xfe] %v1039_v4 }
 0x173   : > { %2077 = vmatmul.mubr.f32.gmra.mrb[36].mxu0 %v7775_v13 }
 0x174   : > { %2081 = vmatprep.mubr.f32.mxu0 %v761_v43  ;;  %v6135_v43 = vpack.c.bf16 %v1683_v12, %v1682_v11  ;;  %v1651_v11 = vld [vmem:[#allocation7 + $0x348] sm:$0xff]  ;;  %v7867_v12 = vld [vmem:[%s7325_s12 + $0x40] sm:$0xff] }
 0x176   : > { %6136 = vmatprep.subr.bf16.mxu1 %v6135_v43 }
 0x177   : > { %2082 = vmatmul.mubr.f32.gmra.mrb[38].mxu0 %v1431_v27  ;;  %v1531_v27 = vld [vmem:[#allocation2 + $0x888] sm:$0xff]  ;;  %6138 = vmatpush3.bf16.msra.mxu1 %v6135_v43  ;;  %v1308_v43 = vld [vmem:[#allocation2 + $0x190] sm:$0xff] }
 0x178   : > { %2086 = vmatprep.mubr.f32.mxu0 %v1441_v16  ;;  %v778_v16 = vrot.slane %v699_v41, 7 }
 0x17b   : > { %2087 = vmatmul.mubr.f32.gmra.mrb[40].mxu0 %v7783_v20 }
 0x17c   : > { %2091 = vmatprep.mubr.f32.mxu0 %v764_v22  ;;  %v6139_v22 = vpack.c.bf16 %v1685_v29, %v1684_v18  ;;  %v5636_v18 = vld [vmem:[%s7325_s12 + $0x31] sm:$0xff] }
 0x17e   : > { %6140 = vmatprep.subr.bf16.mxu1 %v6139_v22 }
 0x17f   : > { %2092 = vmatmul.mubr.f32.gmra.mrb[42].mxu0 %v1449_v23  ;;  %v7826_v23 = vld [vmem:[%s7325_s12 + $0x10] sm:$0xff]  ;;  %6142 = vmatpush3.bf16.msra.mxu1 %v6139_v22  ;;  %v7877_v22 = vld [vmem:[%s7325_s12 + $0x28] sm:$0xff] }
 0x180   : > { %2096 = vmatprep.mubr.f32.mxu0 %v1459_v28  ;;  %v779_v28 = vsel %vm441_vm0, %v777_v50, %v778_v16  ;;  %6144 = vmatprep.subr.bf16.mxu1 %v6143_v51  ;;  %v1688_v50 = vld [vmem:[#allocation7 + $0x470] sm:$0xff]  ;;  %v1042_v16 = vrot.slane %v7867_v12, 7 }
 0x182   : > { %1114 = vst [vmem:[#allocation2 + $0x1e0] sm:$0xfe] %v1042_v16 }
 0x183   : > { %2097 = vmatmul.mubr.f32.gmra.mrb[44].mxu0 %v7791_v31  ;;  %6146 = vmatpush3.bf16.msra.mxu1 %v6143_v51 }
 0x184   : > { %2101 = vmatprep.mubr.f32.mxu0 %v767_v35  ;;  %v1033_v35 = vrot.slane %v7826_v23, 7 }
 0x186   : > { %1108 = vst [vmem:[#allocation2 + $0x30] sm:$0xfe] %v1033_v35 }
 0x187   : > { %2102 = vmatmul.mubr.f32.gmra.mrb[46].mxu0 %v1467_v37  ;;  %v5633_v37 = vld [vmem:[%s7325_s12 + $0x19] sm:$0x7f] }
 0x188   : > { %2106 = vmatprep.mubr.f32.mxu0 %v1477_v19  ;;  %v1539_v19 = vld [vmem:[#allocation2 + $0x8c8] sm:$0xff]  ;;  %1229 = vst [vmem:[#allocation2 + $0x88] sm:$0x7f] %v5633_v37  ;;  %v1326_v37 = vld [vmem:[#allocation2 + $0x220] sm:$0xff] }
 0x18b   : > { %2107 = vmatmul.mubr.f32.gmra.mrb[48].mxu0 %v7799_v42 }
 0x18c   : > { %2111 = vmatprep.mubr.f32.mxu0 %v770_v44  ;;  %v6147_v44 = vpack.c.bf16 %v1689_v33, %v1688_v50  ;;  %v5638_v50 = vld [vmem:[%s7325_s12 + $0x41] sm:$0xff] }
 0x18e   : > { %6148 = vmatprep.subr.bf16.mxu1 %v6147_v44 }
 0x18f   : > { %2112 = vmatmul.mubr.f32.gmra.mrb[50].mxu0 %v1485_v52  ;;  %v1644_v52 = vld [vmem:[#allocation7 + $0x310] sm:$0xff]  ;;  %6150 = vmatpush3.bf16.msra.mxu1 %v6147_v44  ;;  %v1275_v24 = vld [vmem:[#allocation2 + $0x88] sm:$0xff]  ;;  %v7893_v44 = vld [vmem:[%s7325_s12 + $0x38] sm:$0xff] }
 0x190   : > { %2116 = vmatprep.mubr.f32.mxu0 %v1495_v57  ;;  %v1645_v57 = vld [vmem:[#allocation7 + $0x318] sm:$0xff]  ;;  %6151 = vmatprep.subr.bf16.mxu1 %v7103_v0 }
 0x191   : > { %v6075_v36 = vpack.c.bf16 %v1645_v57, %v1644_v52  ;;  %v7899_v52 = vld [vmem:[%s7325_s12 + $0x60] sm:$0xff] }
 0x192   : > { %5800 = vmatmul.mubr.f32.vlgmr.msra.gmra.mrb[0].mxu1 %v1275_v24  ;;  %v1660_v24 = vld [vmem:[#allocation7 + $0x390] sm:$0xff] }
 0x193   : > { %2117 = vmatmul.mubr.f32.gmra.mrb[52].mxu0 %v7807_v56  ;;  %5802 = vmatprep.mubr.f32.mxu1 %v5634_v7 }
 0x194   : > { %2121 = vmatprep.mubr.f32.mxu0 %v773_v1  ;;  %v1646_v1 = vld [vmem:[#allocation7 + $0x320] sm:$0xff] }
 0x195   : > { %v6078_v14 = vpack.c.bf16 %v1647_v62, %v1646_v1  ;;  %v7909_v62 = vld [vmem:[%s7325_s12 + $0x48] sm:$0xff] }
 0x197   : > { %2122 = vmatmul.mubr.f32.gmra.mrb[54].mxu0 %v1503_v3  ;;  %v1648_v3 = vld [vmem:[#allocation7 + $0x330] sm:$0xff] }
 0x198   : > { %2126 = vmatprep.mubr.f32.mxu0 %v1513_v39  ;;  %v1649_v39 = vld [vmem:[#allocation7 + $0x338] sm:$0xff] }
 0x199   : > { %v6081_v8 = vpack.c.bf16 %v1649_v39, %v1648_v3  ;;  %v1663_v3 = vld [vmem:[#allocation7 + $0x3a8] sm:$0xff]  ;;  %v7915_v39 = vld [vmem:[%s7325_s12 + $0x70] sm:$0xff] }
 0x19b   : > { %2127 = vmatmul.mubr.f32.gmra.mrb[56].mxu0 %v7815_v2 }
 0x19c   : > { %2131 = vmatprep.mubr.f32.mxu0 %v776_v9  ;;  %v1650_v9 = vld [vmem:[#allocation7 + $0x340] sm:$0xff] }
 0x19d   : > { %v6084_v41 = vpack.c.bf16 %v1651_v11, %v1650_v9  ;;  %v1051_v9 = vrot.slane %v7915_v39, 7  ;;  %v5642_v11 = vld [vmem:[%s7325_s12 + $0x61] sm:$0xff] }
 0x19f   : > { %2132 = vmatmul.mubr.f32.gmra.mrb[58].mxu0 %v1521_v15  ;;  %v1652_v15 = vld [vmem:[#allocation7 + $0x350] sm:$0xff]  ;;  %1120 = vst [vmem:[#allocation2 + $0x390] sm:$0xfe] %v1051_v9 }
 0x1a0   : > { %2136 = vmatprep.mubr.f32.mxu0 %v1531_v27  ;;  %v1653_v27 = vld [vmem:[#allocation7 + $0x358] sm:$0xff] }
 0x1a1   : > { %v6087_v10 = vpack.c.bf16 %v1653_v27, %v1652_v15  ;;  %v1666_v27 = vld [vmem:[#allocation7 + $0x3c0] sm:$0xff] }
 0x1a3   : > { %2137 = vmatmul.mubr.f32.gmra.mrb[60].mxu0 %v7823_v47 }
 0x1a4   : > { %2141 = vmatprep.mubr.f32.mxu0 %v779_v28  ;;  %v1654_v28 = vld [vmem:[#allocation7 + $0x360] sm:$0xff] }
 0x1a5   : > { %v6090_v51 = vpack.c.bf16 %v1655_v30, %v1654_v28  ;;  %v1668_v28 = vld [vmem:[#allocation7 + $0x3d0] sm:$0xff]  ;;  %v1669_v30 = vld [vmem:[#allocation7 + $0x3d8] sm:$0xff] }
 0x1a7   : > { %2142 = vmatmul.mubr.f32.gmra.mrb[62].mxu0 %v1539_v19  ;;  %v1656_v19 = vld [vmem:[#allocation7 + $0x370] sm:$0xff] }
 0x1a8   : > { %2211 = vmatprep.mubr.f32.mxu0 %v7696_v17  ;;  %v5635_v17 = vld [vmem:[%s7325_s12 + $0x29] sm:$0x7f] }
 0x1a9   : > { %1231 = vst [vmem:[#allocation2 + $0x118] sm:$0x7f] %v5635_v17  ;;  %v1661_v17 = vld [vmem:[#allocation7 + $0x398] sm:$0xff] }
 0x1ab   : > { %2212 = vmatmul.mubr.f32.vlgmr.msra.gmra.mrb[0].mxu0 %v844_v21  ;;  %v6093_v21 = vpack.c.bf16 %v1657_v53, %v1656_v19  ;;  %v7941_v53 = vld [vmem:[%s7325_s12 + $0x68] sm:$0xff] }
 0x1ac   : > { %6073 = vmatpush1.bf16.msra.mxu0 %v6072_v54  ;;  %2216 = vmatprep.mubr.f32.mxu0 %v1272_v49  ;;  %v1658_v54 = vld [vmem:[#allocation7 + $0x380] sm:$0xff]  ;;  %v1659_v49 = vld [vmem:[#allocation7 + $0x388] sm:$0xff] }
 0x1ad   : > { %6074 = vmatprep.subr.bf16.mxu0 %v7103_v0  ;;  %v6096_v57 = vpack.c.bf16 %v1659_v49, %v1658_v54  ;;  %v1398_v49 = vld [vmem:[#allocation2 + $0x460] sm:$0xff] }
 0x1af   : > { %2217 = vmatmul.mubr.f32.gmra.mrb[2].mxu0 %v845_v34  ;;  %v1048_v34 = vrot.slane %v7899_v52, 7 }
 0x1b0   : > { %2221 = vmatprep.mubr.f32.mxu0 %v7706_v38  ;;  %6076 = vmatpush1.bf16.msra.mxu0 %v6075_v36  ;;  %v1293_v26 = vld [vmem:[#allocation2 + $0x118] sm:$0xff] }
 0x1b1   : > { %6077 = vmatprep.subr.bf16.mxu0 %v7103_v0  ;;  %v5637_v38 = vld [vmem:[%s7325_s12 + $0x39] sm:$0x7f]  ;;  %5803 = vmatmul.mubr.f32.gmra.mrb[2].mxu1 %v1293_v26  ;;  %v5640_v36 = vld [vmem:[%s7325_s12 + $0x51] sm:$0xff]  ;;  %1118 = vst [vmem:[#allocation2 + $0x300] sm:$0xfe] %v1048_v34  ;;  %v1362_v26 = vld [vmem:[#allocation2 + $0x340] sm:$0xff] }
 0x1b2   : > { %1233 = vst [vmem:[#allocation2 + $0x1a8] sm:$0x7f] %v5637_v38  ;;  %5805 = vmatprep.mubr.f32.mxu1 %v5636_v18  ;;  %v1664_v38 = vld [vmem:[#allocation7 + $0x3b0] sm:$0xff]  ;;  %v1667_v18 = vld [vmem:[#allocation7 + $0x3c8] sm:$0xff] }
 0x1b3   : > { %2222 = vmatmul.mubr.f32.gmra.mrb[4].mxu0 %v7826_v23 }
 0x1b4   : > { %2226 = vmatprep.mubr.f32.mxu0 %v1290_v63  ;;  %6079 = vmatpush1.bf16.msra.mxu0 %v6078_v14  ;;  %v6099_v14 = vpack.c.bf16 %v1661_v17, %v1660_v24  ;;  %v1662_v63 = vld [vmem:[#allocation7 + $0x3a0] sm:$0xff] }
 0x1b5   : > { %6080 = vmatprep.subr.bf16.mxu0 %v7103_v0  ;;  %v6102_v7 = vpack.c.bf16 %v1663_v3, %v1662_v63  ;;  %v5646_v17 = vld [vmem:[%s7325_s12 + $0x81] sm:$0xff]  ;;  %v1416_v63 = vld [vmem:[#allocation2 + $0x4f0] sm:$0xff] }
 0x1b7   : > { %2227 = vmatmul.mubr.f32.gmra.mrb[6].mxu0 %v7861_v6 }
 0x1b8   : > { %2231 = vmatprep.mubr.f32.mxu0 %v7716_v61  ;;  %6082 = vmatpush1.bf16.msra.mxu0 %v6081_v8  ;;  %v5639_v61 = vld [vmem:[%s7325_s12 + $0x49] sm:$0x7f]  ;;  %v1665_v8 = vld [vmem:[#allocation7 + $0x3b8] sm:$0xff] }
 0x1b9   : > { %6083 = vmatprep.subr.bf16.mxu0 %v7103_v0  ;;  %v1311_v29 = vld [vmem:[#allocation2 + $0x1a8] sm:$0xff]  ;;  %1235 = vst [vmem:[#allocation2 + $0x238] sm:$0x7f] %v5639_v61  ;;  %v6105_v15 = vpack.c.bf16 %v1665_v8, %v1664_v38  ;;  %v6108_v61 = vpack.c.bf16 %v1667_v18, %v1666_v27  ;;  %v7977_v8 = vld [vmem:[%s7325_s12 + $0xb0] sm:$0xff]  ;;  %v5653_v27 = vld [vmem:[%s7325_s12 + $0xb9] sm:$0x7f] }
 0x1ba   : > { %5806 = vmatmul.mubr.f32.gmra.mrb[4].mxu1 %v1311_v29  ;;  %v7931_v29 = vld [vmem:[%s7325_s12 + $0x80] sm:$0xff]  ;;  %v5651_v38 = vld [vmem:[%s7325_s12 + $0xa9] sm:$0x7f]  ;;  %1249 = vst [vmem:[#allocation2 + $0x628] sm:$0x7f] %v5653_v27 }
 0x1bb   : > { %2232 = vmatmul.mubr.f32.gmra.mrb[8].mxu0 %v7839_v55  ;;  %5808 = vmatprep.mubr.f32.mxu1 %v5638_v50  ;;  %v6111_v50 = vpack.c.bf16 %v1669_v30, %v1668_v28  ;;  %1247 = vst [vmem:[#allocation2 + $0x598] sm:$0x7f] %v5651_v38  ;;  %v7991_v18 = vld [vmem:[%s7325_s12 + $0xc0] sm:$0xff]  ;;  %v5652_v28 = vld [vmem:[%s7325_s12 + $0xb1] sm:$0xff] }
 0x1bc   : > { %2236 = vmatprep.mubr.f32.mxu0 %v1308_v43  ;;  %6085 = vmatpush1.bf16.msra.mxu0 %v6084_v41  ;;  %v7925_v43 = vld [vmem:[%s7325_s12 + $0x58] sm:$0xff] }
 0x1bd   : > { %6086 = vmatprep.subr.bf16.mxu0 %v7103_v0 }
 0x1bf   : > { %2237 = vmatmul.mubr.f32.gmra.mrb[10].mxu0 %v7877_v22 }
 0x1c0   : > { %2241 = vmatprep.mubr.f32.mxu0 %v7726_v5  ;;  %6088 = vmatpush1.bf16.msra.mxu0 %v6087_v10  ;;  %v1329_v33 = vld [vmem:[#allocation2 + $0x238] sm:$0xff]  ;;  %v1380_v10 = vld [vmem:[#allocation2 + $0x3d0] sm:$0xff] }
 0x1c1   : > { %6089 = vmatprep.subr.bf16.mxu0 %v7103_v0  ;;  %v5641_v5 = vld [vmem:[%s7325_s12 + $0x59] sm:$0x7f]  ;;  %5809 = vmatmul.mubr.f32.gmra.mrb[6].mxu1 %v1329_v33  ;;  %v1670_v33 = vld [vmem:[#allocation7 + $0x3e0] sm:$0xff]  ;;  %v1455_v30 = vld [vmem:[#allocation2 + $0x628] sm:$0xff] }
 0x1c2   : > { %1237 = vst [vmem:[#allocation2 + $0x2c8] sm:$0x7f] %v5641_v5  ;;  %5811 = vmatprep.mubr.f32.mxu1 %v5640_v36  ;;  %v1671_v5 = vld [vmem:[#allocation7 + $0x3e8] sm:$0xff] }
 0x1c3   : > { %2242 = vmatmul.mubr.f32.gmra.mrb[12].mxu0 %v7851_v25  ;;  %v6114_v54 = vpack.c.bf16 %v1671_v5, %v1670_v33  ;;  %v5654_v33 = vld [vmem:[%s7325_s12 + $0xc1] sm:$0xff] }
 0x1c4   : > { %2246 = vmatprep.mubr.f32.mxu0 %v1326_v37  ;;  %6091 = vmatpush1.bf16.msra.mxu0 %v6090_v51  ;;  %v1054_v51 = vrot.slane %v7931_v29, 7  ;;  %v5644_v37 = vld [vmem:[%s7325_s12 + $0x71] sm:$0xff] }
 0x1c5   : > { %6092 = vmatprep.subr.bf16.mxu0 %v7103_v0 }
 0x1c6   : > { %1122 = vst [vmem:[#allocation2 + $0x420] sm:$0xfe] %v1054_v51 }
 0x1c7   : > { %2247 = vmatmul.mubr.f32.gmra.mrb[14].mxu0 %v7893_v44 }
 0x1c8   : > { %2251 = vmatprep.mubr.f32.mxu0 %v7736_v46  ;;  %6094 = vmatpush1.bf16.msra.mxu0 %v6093_v21  ;;  %v5643_v46 = vld [vmem:[%s7325_s12 + $0x69] sm:$0x7f]  ;;  %v7947_v21 = vld [vmem:[%s7325_s12 + $0x90] sm:$0xff] }
 0x1c9   : > { %6095 = vmatprep.subr.bf16.mxu0 %v7103_v0  ;;  %v1347_v1 = vld [vmem:[#allocation2 + $0x2c8] sm:$0xff]  ;;  %1239 = vst [vmem:[#allocation2 + $0x358] sm:$0x7f] %v5643_v46  ;;  %v1057_v24 = vrot.slane %v7947_v21, 7 }
 0x1ca   : > { %5812 = vmatmul.mubr.f32.gmra.mrb[8].mxu1 %v1347_v1  ;;  %v7957_v1 = vld [vmem:[%s7325_s12 + $0x78] sm:$0xff] }
 0x1cb   : > { %2252 = vmatmul.mubr.f32.gmra.mrb[16].mxu0 %v7867_v12  ;;  %5814 = vmatprep.mubr.f32.mxu1 %v5642_v11  ;;  %1124 = vst [vmem:[#allocation2 + $0x4b0] sm:$0xfe] %v1057_v24  ;;  %v1434_v11 = vld [vmem:[#allocation2 + $0x580] sm:$0xff] }
 0x1cc   : > { %2256 = vmatprep.mubr.f32.mxu0 %v1344_v59  ;;  %6097 = vmatpush1.bf16.msra.mxu0 %v6096_v57  ;;  %v1672_v57 = vld [vmem:[#allocation7 + $0x3f0] sm:$0xff]  ;;  %v1673_v59 = vld [vmem:[#allocation7 + $0x3f8] sm:$0xff] }
 0x1cd   : > { %6098 = vmatprep.subr.bf16.mxu0 %v7103_v0  ;;  %v6117_v46 = vpack.c.bf16 %v1673_v59, %v1672_v57  ;;  %v1488_v57 = vld [vmem:[#allocation2 + $0x730] sm:$0xff] }
 0x1cf   : > { %2257 = vmatmul.mubr.f32.gmra.mrb[18].mxu0 %v7909_v62 }
 0x1d0   : > { %2261 = vmatprep.mubr.f32.mxu0 %v7746_v32  ;;  %6100 = vmatpush1.bf16.msra.mxu0 %v6099_v14  ;;  %v1365_v41 = vld [vmem:[#allocation2 + $0x358] sm:$0xff]  ;;  %v7963_v14 = vld [vmem:[%s7325_s12 + $0xa0] sm:$0xff] }
 0x1d1   : > { %6101 = vmatprep.subr.bf16.mxu0 %v7103_v0  ;;  %v5645_v32 = vld [vmem:[%s7325_s12 + $0x79] sm:$0x7f]  ;;  %5815 = vmatmul.mubr.f32.gmra.mrb[10].mxu1 %v1365_v41  ;;  %v1060_v3 = vrot.slane %v7963_v14, 7  ;;  %v1063_v41 = vrot.slane %v7977_v8, 7 }
 0x1d2   : > { %1241 = vst [vmem:[#allocation2 + $0x3e8] sm:$0x7f] %v5645_v32  ;;  %5817 = vmatprep.mubr.f32.mxu1 %v5644_v37  ;;  %v5650_v32 = vld [vmem:[%s7325_s12 + $0xa1] sm:$0xff]  ;;  %v5655_v37 = vld [vmem:[%s7325_s12 + $0xc9] sm:$0x7f] }
 0x1d3   : > { %2262 = vmatmul.mubr.f32.gmra.mrb[20].mxu0 %v7883_v48  ;;  %1126 = vst [vmem:[#allocation2 + $0x540] sm:$0xfe] %v1060_v3  ;;  %1128 = vst [vmem:[#allocation2 + $0x5d0] sm:$0xfe] %v1063_v41 }
 0x1d4   : > { %2266 = vmatprep.mubr.f32.mxu0 %v1362_v26  ;;  %6103 = vmatpush1.bf16.msra.mxu0 %v6102_v7  ;;  %v5648_v7 = vld [vmem:[%s7325_s12 + $0x91] sm:$0xff]  ;;  %1251 = vst [vmem:[#allocation2 + $0x6b8] sm:$0x7f] %v5655_v37 }
 0x1d5   : > { %6104 = vmatprep.subr.bf16.mxu0 %v7103_v0  ;;  %v6914_v37 = vld [vmem:[%s7325_s12 + $0xf0] sm:$0xff] }
 0x1d7   : > { %2267 = vmatmul.mubr.f32.gmra.mrb[22].mxu0 %v7925_v43 }
 0x1d8   : > { %2271 = vmatprep.mubr.f32.mxu0 %v7756_v60  ;;  %6106 = vmatpush1.bf16.msra.mxu0 %v6105_v15  ;;  %v5647_v60 = vld [vmem:[%s7325_s12 + $0x89] sm:$0x7f]  ;;  %v1437_v15 = vld [vmem:[#allocation2 + $0x598] sm:$0xff] }
 0x1d9   : > { %6107 = vmatprep.subr.bf16.mxu0 %v7103_v0  ;;  %v1383_v19 = vld [vmem:[#allocation2 + $0x3e8] sm:$0xff]  ;;  %1243 = vst [vmem:[#allocation2 + $0x478] sm:$0x7f] %v5647_v60  ;;  %v1470_v60 = vld [vmem:[#allocation2 + $0x6a0] sm:$0xff] }
 0x1da   : > { %5818 = vmatmul.mubr.f32.gmra.mrb[12].mxu1 %v1383_v19  ;;  %v8005_v19 = vld [vmem:[%s7325_s12 + $0xd0] sm:$0xff] }
 0x1db   : > { %2272 = vmatmul.mubr.f32.gmra.mrb[24].mxu0 %v7899_v52  ;;  %5820 = vmatprep.mubr.f32.mxu1 %v5646_v17  ;;  %v1473_v5 = vld [vmem:[#allocation2 + $0x6b8] sm:$0xff] }
 0x1dc   : > { %2276 = vmatprep.mubr.f32.mxu0 %v1380_v10  ;;  %6109 = vmatpush1.bf16.msra.mxu0 %v6108_v61  ;;  %v1452_v61 = vld [vmem:[#allocation2 + $0x610] sm:$0xff]  ;;  %v1066_v10 = vrot.slane %v7991_v18, 7 }
 0x1dd   : > { %6110 = vmatprep.subr.bf16.mxu0 %v7103_v0  ;;  %v5656_v17 = vld [vmem:[%s7325_s12 + $0xd1] sm:$0xff] }
 0x1de   : > { %1130 = vst [vmem:[#allocation2 + $0x660] sm:$0xfe] %v1066_v10 }
 0x1df   : > { %2277 = vmatmul.mubr.f32.gmra.mrb[26].mxu0 %v7941_v53 }
 0x1e0   : > { %2281 = vmatprep.mubr.f32.mxu0 %v7766_v40  ;;  %6112 = vmatpush1.bf16.msra.mxu0 %v6111_v50  ;;  %v1401_v36 = vld [vmem:[#allocation2 + $0x478] sm:$0xff]  ;;  %v1069_v50 = vrot.slane %v8005_v19, 7 }
 0x1e1   : > { %6113 = vmatprep.subr.bf16.mxu0 %v7103_v0  ;;  %v5649_v40 = vld [vmem:[%s7325_s12 + $0x99] sm:$0x7f]  ;;  %5821 = vmatmul.mubr.f32.gmra.mrb[14].mxu1 %v1401_v36 }
 0x1e2   : > { %1245 = vst [vmem:[#allocation2 + $0x508] sm:$0x7f] %v5649_v40  ;;  %5823 = vmatprep.mubr.f32.mxu1 %v5648_v7  ;;  %1132 = vst [vmem:[#allocation2 + $0x6f0] sm:$0xfe] %v1069_v50  ;;  %v5659_v40 = vld [vmem:[%s7325_s12 + $0xe9] sm:$0x7f] }
 0x1e3   : > { %2282 = vmatmul.mubr.f32.gmra.mrb[28].mxu0 %v7915_v39  ;;  %1255 = vst [vmem:[#allocation2 + $0x7d8] sm:$0x7f] %v5659_v40 }
 0x1e4   : > { %2286 = vmatprep.mubr.f32.mxu0 %v1398_v49  ;;  %6115 = vmatpush1.bf16.msra.mxu0 %v6114_v54  ;;  %v5657_v54 = vld [vmem:[%s7325_s12 + $0xd9] sm:$0x7f]  ;;  %v8019_v49 = vld [vmem:[%s7325_s12 + $0xe0] sm:$0xff] }
 0x1e5   : > { %6116 = vmatprep.subr.bf16.mxu0 %v7103_v0  ;;  %1253 = vst [vmem:[#allocation2 + $0x748] sm:$0x7f] %v5657_v54  ;;  %v1072_v59 = vrot.slane %v8019_v49, 7  ;;  %v4050_v54 = vld [vmem:[#allocation9 + $0x8] sm:$0xff] }
 0x1e7   : > { %2287 = vmatmul.mubr.f32.gmra.mrb[30].mxu0 %v7957_v1  ;;  %1134 = vst [vmem:[#allocation2 + $0x780] sm:$0xfe] %v1072_v59 }
 0x1e8   : > { %2291 = vmatprep.mubr.f32.mxu0 %v7775_v13  ;;  %6118 = vmatpush1.bf16.msra.mxu0 %v6117_v46  ;;  %v7972_v13 = vld [vmem:[%s7325_s12 + $0x88] sm:$0xff]  ;;  %v8033_v46 = vld [vmem:[%s7325_s12 + $0xf0] sm:$0xff] }
 0x1e9   : > { %v1419_v26 = vld [vmem:[#allocation2 + $0x508] sm:$0xff]  ;;  %v1075_v7 = vrot.slane %v8033_v46, 7 }
 0x1ea   : > { %5824 = vmatmul.mubr.f32.gmra.mrb[16].mxu1 %v1419_v26  ;;  %v5658_v26 = vld [vmem:[%s7325_s12 + $0xe1] sm:$0xff]  ;;  %v1509_v38 = vld [vmem:[#allocation2 + $0x7d8] sm:$0xff] }
 0x1eb   : > { %2292 = vmatmul.mubr.f32.gmra.mrb[32].mxu0 %v7931_v29  ;;  %5826 = vmatprep.mubr.f32.mxu1 %v5650_v32  ;;  %1136 = vst [vmem:[#allocation2 + $0x810] sm:$0xfe] %v1075_v7  ;;  %v8042_v32 = vld [vmem:[%s7325_s12 + $0xd8] sm:$0xff] }
 0x1ec   : > { %2296 = vmatprep.mubr.f32.mxu0 %v1416_v63  ;;  %v1491_v36 = vld [vmem:[#allocation2 + $0x748] sm:$0xff]  ;;  %v1506_v63 = vld [vmem:[#allocation2 + $0x7c0] sm:$0xff] }
 0x1ee   : > { %5827 = vmatmul.mubr.f32.gmra.mrb[18].mxu1 %v1437_v15  ;;  %v938_v15 = vld [vmem:[%s7325_s12 + $0xf1] sm:$0xff] }
 0x1ef   : > { %2297 = vmatmul.mubr.f32.gmra.mrb[34].mxu0 %v7972_v13  ;;  %5829 = vmatprep.mubr.f32.mxu1 %v5652_v28  ;;  %v8051_v28 = vld [vmem:[#allocation2 + $0x8] sm:$0xff] }
 0x1f0   : > { %2301 = vmatprep.mubr.f32.mxu0 %v7783_v20  ;;  %v7986_v20 = vld [vmem:[%s7325_s12 + $0x98] sm:$0xff] }
 0x1f2   : > { %5830 = vmatmul.mubr.f32.gmra.mrb[20].mxu1 %v1455_v30  ;;  %v1542_v30 = vld [vmem:[#allocation2 + $0x8e0] sm:$0xff] }
 0x1f3   : > { %2302 = vmatmul.mubr.f32.gmra.mrb[36].mxu0 %v7947_v21  ;;  %5832 = vmatprep.mubr.f32.mxu1 %v5654_v33  ;;  %v5573_v33 = vld [vmem:[%s7325_s12 + $0x18] sm:$0x7f] }
 0x1f4   : > { %2306 = vmatprep.mubr.f32.mxu0 %v1434_v11  ;;  %v5661_v11 = vld [vmem:[%s7325_s12 + $0xf9] sm:$0x7f] }
 0x1f5   : > { %1257 = vst [vmem:[#allocation2 + $0x868] sm:$0x7f] %v5661_v11  ;;  %v4054_v11 = vld [vmem:[#allocation9 + $0x28] sm:$0xff] }
 0x1f6   : > { %5833 = vmatmul.mubr.f32.gmra.mrb[22].mxu1 %v1473_v5  ;;  %v4049_v5 = vld [vmem:[#allocation9] sm:$0xff] }
 0x1f7   : > { %2307 = vmatmul.mubr.f32.gmra.mrb[38].mxu0 %v7986_v20  ;;  %5835 = vmatprep.mubr.f32.mxu1 %v5656_v17  ;;  %v1264_v17 = vld [vmem:[#allocation2 + $0x30] sm:$0xff]  ;;  %v6152_v40 = vpack.c.bf16 %v4050_v54, %v4049_v5  ;;  %v5577_v54 = vld [vmem:[%s7325_s12 + $0x38] sm:$0x7f] }
 0x1f8   : > { %2311 = vmatprep.mubr.f32.mxu0 %v7791_v31  ;;  %v8000_v31 = vld [vmem:[%s7325_s12 + $0xa8] sm:$0xff] }
 0x1f9   : > { %6153 = vmatpush1.bf16.msra.mxu1 %v6152_v40  ;;  %v1300_v40 = vld [vmem:[#allocation2 + $0x150] sm:$0xff] }
 0x1fa   : > { %5836 = vmatmul.mubr.f32.gmra.mrb[24].mxu1 %v1491_v36  ;;  %v1034_v36 = vrot.slane %v5573_v33, 7  ;;  %6154 = vmatprep.subr.bf16.mxu1 %v7103_v0 }
 0x1fb   : > { %2312 = vmatmul.mubr.f32.gmra.mrb[40].mxu0 %v7963_v14  ;;  %5838 = vmatprep.mubr.f32.mxu1 %v5658_v26 }
 0x1fc   : > { %2316 = vmatprep.mubr.f32.mxu0 %v1452_v61  ;;  %v1527_v27 = vld [vmem:[#allocation2 + $0x868] sm:$0xff] }
 0x1fd   : > { %v8049_v61 = vld [vmem:[%s7325_s12 + $0xe8] sm:$0xff] }
 0x1fe   : > { %5839 = vmatmul.mubr.f32.gmra.mrb[26].mxu1 %v1509_v38  ;;  %v4053_v38 = vld [vmem:[#allocation9 + $0x20] sm:$0xff] }
 0x1ff   : > { %2317 = vmatmul.mubr.f32.gmra.mrb[42].mxu0 %v8000_v31  ;;  %5841 = vmatprep.mubr.f32.mxu1 %v938_v15 }
 0x200   : > { %2321 = vmatprep.mubr.f32.mxu0 %v7799_v42  ;;  %v8014_v42 = vld [vmem:[%s7325_s12 + $0xb8] sm:$0xff] }
 0x202   : > { %5842 = vmatmul.mubr.f32.gmra.mrb[28].mxu1 %v1527_v27  ;;  %v6158_v27 = vpack.c.bf16 %v4054_v11, %v4053_v38  ;;  %v5579_v38 = vld [vmem:[%s7325_s12 + $0x48] sm:$0x7f] }
 0x203   : > { %2322 = vmatmul.mubr.f32.gmra.mrb[44].mxu0 %v7977_v8  ;;  %5844 = vmatprep.mubr.f32.mxu1 %v8051_v28 }
 0x204   : > { %2326 = vmatprep.mubr.f32.mxu0 %v1470_v60  ;;  %v8057_v60 = vld [vmem:[%s7325_s12 + $0xf8] sm:$0xff] }
 0x207   : > { %2327 = vmatmul.mubr.f32.gmra.mrb[46].mxu0 %v8014_v42 }
 0x208   : > { %2331 = vmatprep.mubr.f32.mxu0 %v7807_v56  ;;  %v8028_v56 = vld [vmem:[%s7325_s12 + $0xc8] sm:$0xff] }
 0x20b   : > { %2332 = vmatmul.mubr.f32.gmra.mrb[48].mxu0 %v7991_v18 }
 0x20c   : > { %2336 = vmatprep.mubr.f32.mxu0 %v1488_v57  ;;  %v4051_v57 = vld [vmem:[#allocation9 + $0x10] sm:$0xff] }
 0x20f   : > { %2337 = vmatmul.mubr.f32.gmra.mrb[50].mxu0 %v8028_v56 }
 0x210   : > { %2341 = vmatprep.mubr.f32.mxu0 %v7815_v2  ;;  %v1524_v2 = vld [vmem:[#allocation2 + $0x850] sm:$0xff] }
 0x213   : > { %2342 = vmatmul.mubr.f32.gmra.mrb[52].mxu0 %v8005_v19 }
 0x214   : > { %2346 = vmatprep.mubr.f32.mxu0 %v1506_v63  ;;  %v4052_v63 = vld [vmem:[#allocation9 + $0x18] sm:$0xff] }
 0x215   : > { %v6155_v26 = vpack.c.bf16 %v4052_v63, %v4051_v57  ;;  %v1040_v63 = vrot.slane %v5577_v54, 7 }
 0x217   : > { %2347 = vmatmul.mubr.f32.gmra.mrb[54].mxu0 %v8042_v32  ;;  %6156 = vmatpush1.bf16.msra.mxu1 %v6155_v26 }
 0x218   : > { %2351 = vmatprep.mubr.f32.mxu0 %v7823_v47  ;;  %v1545_v47 = vld [vmem:[#allocation2 + $0x8f8] sm:$0xff]  ;;  %6157 = vmatprep.subr.bf16.mxu1 %v7103_v0 }
 0x219   : > { %5845 = vmatmul.mubr.f32.gmra.mrb[30].mxu1 %v1545_v47  ;;  %v1282_v47 = vld [vmem:[#allocation2 + $0xc0] sm:$0xff] }
 0x21a   : > { %4264 = vmatprep.mubr.f32.mxu1 %v8051_v28 }
 0x21b   : > { %2352 = vmatmul.mubr.f32.gmra.mrb[56].mxu0 %v8019_v49  ;;  %6159 = vmatpush1.bf16.msra.mxu1 %v6158_v27  ;;  %v1318_v27 = vld [vmem:[#allocation2 + $0x1e0] sm:$0xff] }
 0x21c   : > { %2356 = vmatprep.mubr.f32.mxu0 %v1524_v2  ;;  %v5575_v2 = vld [vmem:[%s7325_s12 + $0x28] sm:$0x7f]  ;;  %6160 = vmatprep.subr.bf16.mxu1 %v7103_v0 }
 0x21d   : > { %v1037_v33 = vrot.slane %v5575_v2, 7  ;;  %v4064_v2 = vld [vmem:[#allocation9 + $0x78] sm:$0xff] }
 0x21f   : > { %2357 = vmatmul.mubr.f32.gmra.mrb[58].mxu0 %v8049_v61 }
 0x220   : > { %2361 = vmatprep.mubr.f32.mxu0 %v938_v15  ;;  %v1035_v15 = vsel %vm441_vm0, %v1033_v35, %v1034_v36  ;;  %v4058_v35 = vld [vmem:[#allocation9 + $0x48] sm:$0xff]  ;;  %v4060_v36 = vld [vmem:[#allocation9 + $0x58] sm:$0xff] }
 0x223   : > { %2362 = vmatmul.mubr.f32.gmra.mrb[60].mxu0 %v6914_v37  ;;  %v4056_v37 = vld [vmem:[#allocation9 + $0x38] sm:$0xff] }
 0x224   : > { %2366 = vmatprep.mubr.f32.mxu0 %v1542_v30  ;;  %v4055_v30 = vld [vmem:[#allocation9 + $0x30] sm:$0xff] }
 0x225   : > { %v6161_v5 = vpack.c.bf16 %v4056_v37, %v4055_v30  ;;  %v1043_v30 = vrot.slane %v5579_v38, 7 }
 0x227   : > { %2367 = vmatmul.mubr.f32.gmra.mrb[62].mxu0 %v8057_v60  ;;  %6162 = vmatpush1.bf16.msra.mxu1 %v6161_v5  ;;  %v4067_v5 = vld [vmem:[#allocation9 + $0x90] sm:$0xff] }
 0x228   : > { %2436 = vmatprep.mubr.f32.mxu0 %v7826_v23  ;;  %v4057_v23 = vld [vmem:[#allocation9 + $0x40] sm:$0xff]  ;;  %6163 = vmatprep.subr.bf16.mxu1 %v7103_v0 }
 0x229   : > { %v6164_v57 = vpack.c.bf16 %v4058_v35, %v4057_v23  ;;  %v4068_v23 = vld [vmem:[#allocation9 + $0x98] sm:$0xff]  ;;  %v1336_v35 = vld [vmem:[#allocation2 + $0x270] sm:$0xff] }
 0x22a   : > { %v6179_v54 = vpack.c.bf16 %v4068_v23, %v4067_v5  ;;  %v5595_v5 = vld [vmem:[%s7325_s12 + $0xc8] sm:$0x7f] }
 0x22b   : > { %2437 = vmatmul.mubr.f32.vlgmr.msra.gmra.mrb[0].mxu0 %v1264_v17  ;;  %v4059_v17 = vld [vmem:[#allocation9 + $0x50] sm:$0xff]  ;;  %6165 = vmatpush1.bf16.msra.mxu1 %v6164_v57  ;;  %v5583_v57 = vld [vmem:[%s7325_s12 + $0x68] sm:$0x7f] }
 0x22c   : > { %2441 = vmatprep.mubr.f32.mxu0 %v7861_v6  ;;  %v1038_v6 = vsel %vm441_vm0, %v1036_v58, %v1037_v33  ;;  %v6167_v26 = vpack.c.bf16 %v4060_v36, %v4059_v17  ;;  %6166 = vmatprep.subr.bf16.mxu1 %v7103_v0  ;;  %v4062_v58 = vld [vmem:[#allocation9 + $0x68] sm:$0xff]  ;;  %v4071_v36 = vld [vmem:[#allocation9 + $0xb0] sm:$0xff] }
 0x22f   : > { %2442 = vmatmul.mubr.f32.gmra.mrb[2].mxu0 %v1035_v15  ;;  %6168 = vmatpush1.bf16.msra.mxu1 %v6167_v26  ;;  %v4063_v15 = vld [vmem:[#allocation9 + $0x70] sm:$0xff]  ;;  %v1049_v26 = vrot.slane %v5583_v57, 7  ;;  %v4180_v57 = vld [vmem:[#allocation9 + $0x418] sm:$0xff] }
 0x230   : > { %2446 = vmatprep.mubr.f32.mxu0 %v7839_v55  ;;  %v4061_v55 = vld [vmem:[#allocation9 + $0x60] sm:$0xff]  ;;  %6169 = vmatprep.subr.bf16.mxu1 %v7103_v0  ;;  %v6173_v37 = vpack.c.bf16 %v4064_v2, %v4063_v15  ;;  %v5591_v15 = vld [vmem:[%s7325_s12 + $0xa8] sm:$0x7f] }
 0x231   : > { %v6170_v11 = vpack.c.bf16 %v4062_v58, %v4061_v55  ;;  %v1372_v55 = vld [vmem:[#allocation2 + $0x390] sm:$0xff]  ;;  %v4074_v2 = vld [vmem:[#allocation9 + $0xc8] sm:$0xff] }
 0x233   : > { %2447 = vmatmul.mubr.f32.gmra.mrb[4].mxu0 %v1282_v47  ;;  %6171 = vmatpush1.bf16.msra.mxu1 %v6170_v11  ;;  %v5581_v47 = vld [vmem:[%s7325_s12 + $0x58] sm:$0x7f] }
 0x234   : > { %2451 = vmatprep.mubr.f32.mxu0 %v7877_v22  ;;  %v1041_v22 = vsel %vm441_vm0, %v1039_v4, %v1040_v63  ;;  %6172 = vmatprep.subr.bf16.mxu1 %v7103_v0  ;;  %v4066_v4 = vld [vmem:[#allocation9 + $0x88] sm:$0xff]  ;;  %v1354_v63 = vld [vmem:[#allocation2 + $0x300] sm:$0xff]  ;;  %v5589_v11 = vld [vmem:[%s7325_s12 + $0x98] sm:$0x7f] }
 0x237   : > { %2452 = vmatmul.mubr.f32.gmra.mrb[6].mxu0 %v1038_v6  ;;  %6174 = vmatpush1.bf16.msra.mxu1 %v6173_v37  ;;  %v1046_v6 = vrot.slane %v5581_v47, 7  ;;  %v5593_v37 = vld [vmem:[%s7325_s12 + $0xb8] sm:$0x7f] }
 0x238   : > { %2456 = vmatprep.mubr.f32.mxu0 %v7851_v25  ;;  %v4065_v25 = vld [vmem:[#allocation9 + $0x80] sm:$0xff]  ;;  %6175 = vmatprep.subr.bf16.mxu1 %v7103_v0  ;;  %v1064_v47 = vrot.slane %v5593_v37, 7  ;;  %v4191_v37 = vld [vmem:[#allocation9 + $0x470] sm:$0xff] }
 0x239   : > { %v6176_v33 = vpack.c.bf16 %v4066_v4, %v4065_v25  ;;  %v4077_v25 = vld [vmem:[#allocation9 + $0xe0] sm:$0xff]  ;;  %v4078_v4 = vld [vmem:[#allocation9 + $0xe8] sm:$0xff] }
 0x23b   : > { %2457 = vmatmul.mubr.f32.gmra.mrb[8].mxu0 %v1300_v40  ;;  %6177 = vmatpush1.bf16.msra.mxu1 %v6176_v33  ;;  %v4072_v40 = vld [vmem:[#allocation9 + $0xb8] sm:$0xff]  ;;  %v6194_v33 = vpack.c.bf16 %v4078_v4, %v4077_v25 }
 0x23c   : > { %2461 = vmatprep.mubr.f32.mxu0 %v7893_v44  ;;  %v1044_v44 = vsel %vm441_vm0, %v1042_v16, %v1043_v30  ;;  %6178 = vmatprep.subr.bf16.mxu1 %v7103_v0  ;;  %v4070_v16 = vld [vmem:[#allocation9 + $0xa8] sm:$0xff]  ;;  %v4075_v30 = vld [vmem:[#allocation9 + $0xd0] sm:$0xff]  ;;  %v4192_v25 = vld [vmem:[#allocation9 + $0x478] sm:$0xff] }
 0x23d   : > { %v8213_v4 = vpack.c.bf16 %v4192_v25, %v4191_v37 }
 0x23f   : > { %2462 = vmatmul.mubr.f32.gmra.mrb[10].mxu0 %v1041_v22  ;;  %6180 = vmatpush1.bf16.msra.mxu1 %v6179_v54  ;;  %v1462_v54 = vld [vmem:[#allocation2 + $0x660] sm:$0xff] }
 0x240   : > { %2466 = vmatprep.mubr.f32.mxu0 %v7867_v12  ;;  %v4069_v12 = vld [vmem:[#allocation9 + $0xa0] sm:$0xff]  ;;  %6181 = vmatprep.subr.bf16.mxu1 %v7103_v0 }
 0x241   : > { %v6182_v17 = vpack.c.bf16 %v4070_v16, %v4069_v12  ;;  %v1067_v12 = vrot.slane %v5595_v5, 7 }
 0x243   : > { %2467 = vmatmul.mubr.f32.gmra.mrb[12].mxu0 %v1318_v27  ;;  %6183 = vmatpush1.bf16.msra.mxu1 %v6182_v17  ;;  %v1061_v27 = vrot.slane %v5591_v15, 7  ;;  %v1068_v17 = vsel %vm441_vm0, %v1066_v10, %v1067_v12  ;;  %v4182_v10 = vld [vmem:[#allocation9 + $0x428] sm:$0xff]  ;;  %v5601_v15 = vld [vmem:[%s7325_s12 + $0xf8] sm:$0x7f] }
 0x244   : > { %2471 = vmatprep.mubr.f32.mxu0 %v7909_v62  ;;  %v1047_v62 = vsel %vm441_vm0, %v1045_v45, %v1046_v6  ;;  %6184 = vmatprep.subr.bf16.mxu1 %v7103_v0  ;;  %v5585_v45 = vld [vmem:[%s7325_s12 + $0x78] sm:$0x7f]  ;;  %v4178_v6 = vld [vmem:[#allocation9 + $0x408] sm:$0xff] }
 0x245   : > { %v1052_v58 = vrot.slane %v5585_v45, 7 }
 0x247   : > { %2472 = vmatmul.mubr.f32.gmra.mrb[14].mxu0 %v1044_v44  ;;  %v1444_v44 = vld [vmem:[#allocation2 + $0x5d0] sm:$0xff] }
 0x248   : > { %2476 = vmatprep.mubr.f32.mxu0 %v7883_v48  ;;  %v1050_v48 = vsel %vm441_vm0, %v1048_v34, %v1049_v26  ;;  %v1390_v34 = vld [vmem:[#allocation2 + $0x420] sm:$0xff] }
 0x24b   : > { %2477 = vmatmul.mubr.f32.gmra.mrb[16].mxu0 %v1336_v35  ;;  %v4177_v35 = vld [vmem:[#allocation9 + $0x400] sm:$0xff] }
 0x24c   : > { %2481 = vmatprep.mubr.f32.mxu0 %v7925_v43  ;;  %v6185_v43 = vpack.c.bf16 %v4072_v40, %v4071_v36  ;;  %v5597_v40 = vld [vmem:[%s7325_s12 + $0xd8] sm:$0x7f] }
 0x24d   : > { %v1070_v26 = vrot.slane %v5597_v40, 7 }
 0x24e   : > { %6186 = vmatpush1.bf16.msra.mxu1 %v6185_v43 }
 0x24f   : > { %2482 = vmatmul.mubr.f32.gmra.mrb[18].mxu0 %v1047_v62  ;;  %6187 = vmatprep.subr.bf16.mxu1 %v7103_v0  ;;  %v4179_v62 = vld [vmem:[#allocation9 + $0x410] sm:$0xff]  ;;  %v1071_v45 = vsel %vm441_vm0, %v1069_v50, %v1070_v26 }
 0x250   : > { %2486 = vmatprep.mubr.f32.mxu0 %v7899_v52  ;;  %v5587_v52 = vld [vmem:[%s7325_s12 + $0x88] sm:$0x7f]  ;;  %v8158_v36 = vpack.c.bf16 %v4180_v57, %v4179_v62  ;;  %v4089_v62 = vld [vmem:[#allocation9 + $0x140] sm:$0xff]  ;;  %v4091_v26 = vld [vmem:[#allocation9 + $0x150] sm:$0xff] }
 0x251   : > { %v1055_v22 = vrot.slane %v5587_v52, 7  ;;  %v4090_v57 = vld [vmem:[#allocation9 + $0x148] sm:$0xff] }
 0x252   : > { %v6212_v40 = vpack.c.bf16 %v4090_v57, %v4089_v62  ;;  %v4106_v62 = vld [vmem:[#allocation9 + $0x1c8] sm:$0xff] }
 0x253   : > { %2487 = vmatmul.mubr.f32.gmra.mrb[20].mxu0 %v1354_v63  ;;  %v1056_v38 = vsel %vm441_vm0, %v1054_v51, %v1055_v22  ;;  %v1426_v51 = vld [vmem:[#allocation2 + $0x540] sm:$0xff]  ;;  %v1480_v63 = vld [vmem:[#allocation2 + $0x6f0] sm:$0xff] }
 0x254   : > { %2491 = vmatprep.mubr.f32.mxu0 %v7941_v53  ;;  %v1053_v53 = vsel %vm441_vm0, %v1051_v9, %v1052_v58  ;;  %v1058_v9 = vrot.slane %v5589_v11, 7  ;;  %v4184_v58 = vld [vmem:[#allocation9 + $0x438] sm:$0xff] }
 0x257   : > { %2492 = vmatmul.mubr.f32.gmra.mrb[22].mxu0 %v1050_v48 }
 0x258   : > { %2496 = vmatprep.mubr.f32.mxu0 %v7915_v39  ;;  %v1408_v39 = vld [vmem:[#allocation2 + $0x4b0] sm:$0xff] }
 0x25b   : > { %2497 = vmatmul.mubr.f32.gmra.mrb[24].mxu0 %v1372_v55  ;;  %v4183_v55 = vld [vmem:[#allocation9 + $0x430] sm:$0xff] }
 0x25c   : > { %2501 = vmatprep.mubr.f32.mxu0 %v7957_v1  ;;  %v1059_v1 = vsel %vm441_vm0, %v1057_v24, %v1058_v9  ;;  %v8178_v52 = vpack.c.bf16 %v4184_v58, %v4183_v55  ;;  %v4187_v9 = vld [vmem:[#allocation9 + $0x450] sm:$0xff]  ;;  %v4093_v58 = vld [vmem:[#allocation9 + $0x160] sm:$0xff] }
 0x25f   : > { %2502 = vmatmul.mubr.f32.gmra.mrb[26].mxu0 %v1053_v53  ;;  %v5599_v53 = vld [vmem:[%s7325_s12 + $0xe8] sm:$0x7f] }
 0x260   : > { %2506 = vmatprep.mubr.f32.mxu0 %v7931_v29  ;;  %v1073_v22 = vrot.slane %v5599_v53, 7  ;;  %v4094_v53 = vld [vmem:[#allocation9 + $0x168] sm:$0xff] }
 0x263   : > { %2507 = vmatmul.mubr.f32.gmra.mrb[28].mxu0 %v1390_v34  ;;  %v1498_v34 = vld [vmem:[#allocation2 + $0x780] sm:$0xff] }
 0x264   : > { %2511 = vmatprep.mubr.f32.mxu0 %v7972_v13  ;;  %v4073_v13 = vld [vmem:[#allocation9 + $0xc0] sm:$0xff] }
 0x265   : > { %v6188_v29 = vpack.c.bf16 %v4074_v2, %v4073_v13  ;;  %v8144_v16 = vpop.f32.mrb[0].mxu1  ;;  %v1516_v2 = vld [vmem:[#allocation2 + $0x810] sm:$0xff] }
 0x267   : > { %2512 = vmatmul.mubr.f32.gmra.mrb[30].mxu0 %v1056_v38  ;;  %6189 = vmatpush1.bf16.msra.mxu1 %v6188_v29  ;;  %v1076_v29 = vrot.slane %v5601_v15, 7 }
 0x268   : > { %2516 = vmatprep.mubr.f32.mxu0 %v7947_v21  ;;  %6190 = vmatprep.subr.bf16.mxu1 %v7103_v0  ;;  %v1062_v21 = vsel %vm441_vm0, %v1060_v3, %v1061_v27  ;;  %v4079_v3 = vld [vmem:[#allocation9 + $0xf0] sm:$0xff] }
 0x26b   : > { %2517 = vmatmul.mubr.f32.gmra.mrb[32].mxu0 %v1408_v39  ;;  %v1074_v39 = vsel %vm441_vm0, %v1072_v59, %v1073_v22  ;;  %v6218_v22 = vpack.c.bf16 %v4094_v53, %v4093_v58  ;;  %v4108_v58 = vld [vmem:[#allocation9 + $0x1d8] sm:$0xff] }
 0x26c   : > { %2521 = vmatprep.mubr.f32.mxu0 %v7986_v20  ;;  %v4076_v20 = vld [vmem:[#allocation9 + $0xd8] sm:$0xff] }
 0x26d   : > { %v6191_v24 = vpack.c.bf16 %v4076_v20, %v4075_v30  ;;  %v4081_v30 = vld [vmem:[#allocation9 + $0x100] sm:$0xff]  ;;  %v4082_v20 = vld [vmem:[#allocation9 + $0x108] sm:$0xff] }
 0x26f   : > { %2522 = vmatmul.mubr.f32.gmra.mrb[34].mxu0 %v1059_v1  ;;  %6192 = vmatpush1.bf16.msra.mxu1 %v6191_v24  ;;  %v4188_v1 = vld [vmem:[#allocation9 + $0x458] sm:$0xff]  ;;  %v6200_v24 = vpack.c.bf16 %v4082_v20, %v4081_v30  ;;  %v4099_v20 = vld [vmem:[#allocation9 + $0x190] sm:$0xff] }
 0x270   : > { %2526 = vmatprep.mubr.f32.mxu0 %v7963_v14  ;;  %6193 = vmatprep.subr.bf16.mxu1 %v7103_v0  ;;  %v1065_v14 = vsel %vm441_vm0, %v1063_v41, %v1064_v47  ;;  %v3761_v41 = vld [vmem:[#allocation2] sm:$0xff]  ;;  %v8196_v13 = vpack.c.bf16 %v4188_v1, %v4187_v9  ;;  %v4084_v47 = vld [vmem:[#allocation9 + $0x118] sm:$0xff] }
 0x273   : > { %2527 = vmatmul.mubr.f32.gmra.mrb[36].mxu0 %v1426_v51  ;;  %6195 = vmatpush1.bf16.msra.mxu1 %v6194_v33 }
 0x274   : > { %2531 = vmatprep.mubr.f32.mxu0 %v8000_v31  ;;  %6196 = vmatprep.subr.bf16.mxu1 %v7103_v0  ;;  %v4080_v31 = vld [vmem:[#allocation9 + $0xf8] sm:$0xff] }
 0x275   : > { %v6197_v23 = vpack.c.bf16 %v4080_v31, %v4079_v3  ;;  %v4085_v3 = vld [vmem:[#allocation9 + $0x120] sm:$0xff]  ;;  %v4086_v31 = vld [vmem:[#allocation9 + $0x128] sm:$0xff] }
 0x277   : > { %2532 = vmatmul.mubr.f32.gmra.mrb[38].mxu0 %v1062_v21  ;;  %6198 = vmatpush1.bf16.msra.mxu1 %v6197_v23  ;;  %v1077_v21 = vsel %vm441_vm0, %v1075_v7, %v1076_v29  ;;  %v4083_v7 = vld [vmem:[#allocation9 + $0x110] sm:$0xff]  ;;  %v6206_v23 = vpack.c.bf16 %v4086_v31, %v4085_v3  ;;  %v4098_v29 = vld [vmem:[#allocation9 + $0x188] sm:$0xff] }
 0x278   : > { %2536 = vmatprep.mubr.f32.mxu0 %v7977_v8  ;;  %6199 = vmatprep.subr.bf16.mxu1 %v7103_v0  ;;  %v8149_v8 = vpop.f32.mrb[1].mxu1  ;;  %v6203_v33 = vpack.c.bf16 %v4084_v47, %v4083_v7  ;;  %v4102_v7 = vld [vmem:[#allocation9 + $0x1a8] sm:$0xff]  ;;  %v4103_v31 = vld [vmem:[#allocation9 + $0x1b0] sm:$0xff] }
 0x27a   : > { %4265 = vmatmul.mubr.f32.vlgmr.msra.gmra.mrb[32].mxu1 %v3761_v41 }
 0x27b   : > { %2537 = vmatmul.mubr.f32.gmra.mrb[40].mxu0 %v1444_v44  ;;  %4269 = vmatprep.mubr.f32.mxu1 %v8051_v28  ;;  %v1534_v44 = vld [vmem:[#allocation2 + $0x8a0] sm:$0xff] }
 0x27c   : > { %2541 = vmatprep.mubr.f32.mxu0 %v8014_v42  ;;  %v8146_v42 = vpack.c.bf16 %v4178_v6, %v4177_v35  ;;  %6201 = vmatpush1.bf16.msra.mxu1 %v6200_v24  ;;  %v4087_v6 = vld [vmem:[#allocation9 + $0x130] sm:$0xff] }
 0x27d   : > { %6202 = vmatprep.subr.bf16.mxu1 %v7103_v0 }
 0x27e   : > { %6344 = vmatprep.subr.bf16.mxu0 %v8146_v42  ;;  %4270 = vmatmul.mubr.f32.gmra.mrb[34].mxu1 %v8051_v28 }
 0x27f   : > { %2542 = vmatmul.mubr.f32.gmra.mrb[42].mxu0 %v1065_v14 }
 0x280   : > { %2546 = vmatprep.mubr.f32.mxu0 %v7991_v18  ;;  %6346 = vmatpush3.bf16.msra.mxu0 %v8146_v42  ;;  %v4181_v18 = vld [vmem:[#allocation9 + $0x420] sm:$0xff] }
 0x281   : > { %6348 = vmatprep.subr.bf16.mxu0 %v8158_v36  ;;  %v8169_v48 = vpack.c.bf16 %v4182_v10, %v4181_v18  ;;  %6204 = vmatpush1.bf16.msra.mxu1 %v6203_v33  ;;  %v4092_v18 = vld [vmem:[#allocation9 + $0x158] sm:$0xff] }
 0x282   : > { %6205 = vmatprep.subr.bf16.mxu1 %v7103_v0 }
 0x283   : > { %2547 = vmatmul.mubr.f32.gmra.mrb[44].mxu0 %v1462_v54  ;;  %v4088_v54 = vld [vmem:[#allocation9 + $0x138] sm:$0xff] }
 0x284   : > { %2551 = vmatprep.mubr.f32.mxu0 %v8028_v56  ;;  %v8164_v56 = vpop.f32.mrb[2].mxu1  ;;  %6350 = vmatpush3.bf16.msra.mxu0 %v8158_v36  ;;  %v6209_v41 = vpack.c.bf16 %v4088_v54, %v4087_v6 }
 0x285   : > { %v8167_v43 = vpop.f32.mrb[3].mxu1  ;;  %6352 = vmatprep.subr.bf16.mxu0 %v8169_v48  ;;  %6207 = vmatpush1.bf16.msra.mxu1 %v6206_v23  ;;  %v4104_v23 = vld [vmem:[#allocation9 + $0x1b8] sm:$0xff] }
 0x286   : > { %6208 = vmatprep.subr.bf16.mxu1 %v7103_v0  ;;  %v6233_v54 = vpack.c.bf16 %v4104_v23, %v4103_v31  ;;  %v4112_v31 = vld [vmem:[#allocation9 + $0x1f8] sm:$0xff] }
 0x287   : > { %2552 = vmatmul.mubr.f32.gmra.mrb[46].mxu0 %v1068_v17 }
 0x288   : > { %2556 = vmatprep.mubr.f32.mxu0 %v8005_v19  ;;  %6354 = vmatpush3.bf16.msra.mxu0 %v8169_v48  ;;  %v4185_v19 = vld [vmem:[#allocation9 + $0x440] sm:$0xff] }
 0x289   : > { %6356 = vmatprep.subr.bf16.mxu0 %v8178_v52  ;;  %6210 = vmatpush1.bf16.msra.mxu1 %v6209_v41  ;;  %v4105_v41 = vld [vmem:[#allocation9 + $0x1c0] sm:$0xff] }
 0x28a   : > { %6211 = vmatprep.subr.bf16.mxu1 %v7103_v0  ;;  %v6236_v57 = vpack.c.bf16 %v4106_v62, %v4105_v41 }
 0x28b   : > { %2557 = vmatmul.mubr.f32.gmra.mrb[48].mxu0 %v1480_v63 }
 0x28c   : > { %2561 = vmatprep.mubr.f32.mxu0 %v8042_v32  ;;  %6358 = vmatpush3.bf16.msra.mxu0 %v8178_v52  ;;  %v4186_v32 = vld [vmem:[#allocation9 + $0x448] sm:$0xff] }
 0x28d   : > { %v8183_v50 = vpop.f32.mrb[4].mxu1  ;;  %v8185_v38 = vpack.c.bf16 %v4186_v32, %v4185_v19  ;;  %6213 = vmatpush1.bf16.msra.mxu1 %v6212_v40  ;;  %v4095_v32 = vld [vmem:[#allocation9 + $0x170] sm:$0xff] }
 0x28e   : > { %v8187_v11 = vpop.f32.mrb[5].mxu1  ;;  %6214 = vmatprep.subr.bf16.mxu1 %v7103_v0 }
 0x28f   : > { %2562 = vmatmul.mubr.f32.gmra.mrb[50].mxu0 %v1071_v45  ;;  %6360 = vmatprep.subr.bf16.mxu0 %v8185_v38  ;;  %v6215_v45 = vpack.c.bf16 %v4092_v18, %v4091_v26  ;;  %v8283_v18 = vld [vmem:[%s8916_s2] ss:$0 sm:$0xff] }
 0x290   : > { %2566 = vmatprep.mubr.f32.mxu0 %v8019_v49  ;;  %6362 = vmatpush3.bf16.msra.mxu0 %v8185_v38  ;;  %v4190_v49 = vld [vmem:[#allocation9 + $0x468] sm:$0xff] }
 0x291   : > { %6364 = vmatprep.subr.bf16.mxu0 %v8196_v13  ;;  %6216 = vmatpush1.bf16.msra.mxu1 %v6215_v45  ;;  %v4107_v45 = vld [vmem:[#allocation9 + $0x1d0] sm:$0xff] }
 0x292   : > { %6217 = vmatprep.subr.bf16.mxu1 %v7103_v0 }
 0x293   : > { %2567 = vmatmul.mubr.f32.gmra.mrb[52].mxu0 %v1498_v34 }
 0x294   : > { %2571 = vmatprep.mubr.f32.mxu0 %v8049_v61  ;;  %6366 = vmatpush3.bf16.msra.mxu0 %v8196_v13  ;;  %v4189_v61 = vld [vmem:[#allocation9 + $0x460] sm:$0xff]  ;;  %v8201_v51 = vpop.f32.mrb[6].mxu1 }
 0x295   : > { %v8203_v59 = vpack.c.bf16 %v4190_v49, %v4189_v61  ;;  %v8205_v27 = vpop.f32.mrb[7].mxu1  ;;  %6219 = vmatpush1.bf16.msra.mxu1 %v6218_v22  ;;  %v6239_v22 = vpack.c.bf16 %v4108_v58, %v4107_v45 }
 0x296   : > { %6220 = vmatprep.subr.bf16.mxu1 %v7103_v0 }
 0x297   : > { %2572 = vmatmul.mubr.f32.gmra.mrb[54].mxu0 %v1074_v39  ;;  %6368 = vmatprep.subr.bf16.mxu0 %v8203_v59  ;;  %v4096_v39 = vld [vmem:[#allocation9 + $0x178] sm:$0xff] }
 0x298   : > { %2576 = vmatprep.mubr.f32.mxu0 %v8033_v46  ;;  %6370 = vmatpush3.bf16.msra.mxu0 %v8203_v59  ;;  %v6221_v1 = vpack.c.bf16 %v4096_v39, %v4095_v32 }
 0x299   : > { %6372 = vmatprep.subr.bf16.mxu0 %v8213_v4 }
 0x29a   : > { %6222 = vmatpush1.bf16.msra.mxu1 %v6221_v1 }
 0x29b   : > { %2577 = vmatmul.mubr.f32.gmra.mrb[56].mxu0 %v1516_v2  ;;  %6223 = vmatprep.subr.bf16.mxu1 %v7103_v0  ;;  %v4097_v2 = vld [vmem:[#allocation9 + $0x180] sm:$0xff] }
 0x29c   : > { %2581 = vmatprep.mubr.f32.mxu0 %v8057_v60  ;;  %6374 = vmatpush3.bf16.msra.mxu0 %v8213_v4  ;;  %v6224_v49 = vpack.c.bf16 %v4098_v29, %v4097_v2  ;;  %v4109_v2 = vld [vmem:[#allocation9 + $0x1e0] sm:$0xff]  ;;  %v4110_v29 = vld [vmem:[#allocation9 + $0x1e8] sm:$0xff] }
 0x29d   : > { %v8218_v60 = vpop.f32.mrb[8].mxu1 }
 0x29e   : > { %v8221_v46 = vpop.f32.mrb[9].mxu1  ;;  %6225 = vmatpush1.bf16.msra.mxu1 %v6224_v49 }
 0x29f   : > { %2582 = vmatmul.mubr.f32.gmra.mrb[58].mxu0 %v1077_v21  ;;  %6226 = vmatprep.subr.bf16.mxu1 %v7103_v0  ;;  %v4100_v21 = vld [vmem:[#allocation9 + $0x198] sm:$0xff] }
 0x2a0   : > { %2586 = vmatprep.mubr.f32.mxu0 %v8051_v28  ;;  %v6227_v37 = vpack.c.bf16 %v4100_v21, %v4099_v20  ;;  %v6242_v20 = vpack.c.bf16 %v4110_v29, %v4109_v2 }
 0x2a2   : > { %6228 = vmatpush1.bf16.msra.mxu1 %v6227_v37 }
 0x2a3   : > { %2587 = vmatmul.mubr.f32.gmra.mrb[60].mxu0 %v1534_v44  ;;  %6229 = vmatprep.subr.bf16.mxu1 %v7103_v0  ;;  %v4101_v44 = vld [vmem:[#allocation9 + $0x1a0] sm:$0xff] }
 0x2a4   : > { %2591 = vmatprep.mubr.f32.mxu0 %v8051_v28  ;;  %v8226_v14 = vpop.f32.mrb[10].mxu1  ;;  %v6230_v33 = vpack.c.bf16 %v4102_v7, %v4101_v44 }
 0x2a5   : > { %v8228_v5 = vpop.f32.mrb[11].mxu1 }
 0x2a6   : > { %6231 = vmatpush1.bf16.msra.mxu1 %v6230_v33 }
 0x2a7   : > { %2592 = vmatmul.mubr.f32.gmra.mrb[62].mxu0 %v8051_v28  ;;  %6232 = vmatprep.subr.bf16.mxu1 %v7103_v0 }
 0x2aa   : > { %6234 = vmatpush1.bf16.msra.mxu1 %v6233_v54 }
 0x2ab   : > { %6235 = vmatprep.subr.bf16.mxu1 %v7103_v0 }
 0x2ad   : > { %v8231_v35 = vpop.f32.mrb[12].mxu1 }
 0x2ae   : > { %v8233_v12 = vpop.f32.mrb[13].mxu1  ;;  %6237 = vmatpush1.bf16.msra.mxu1 %v6236_v57 }
 0x2af   : > { %6238 = vmatprep.subr.bf16.mxu1 %v7103_v0 }
 0x2b2   : > { %6240 = vmatpush1.bf16.msra.mxu1 %v6239_v22 }
 0x2b3   : > { %6241 = vmatprep.subr.bf16.mxu1 %v7103_v0 }
 0x2b4   : > { %v8236_v28 = vpop.f32.mrb[14].mxu1 }
 0x2b5   : > { %v8238_v17 = vpop.f32.mrb[15].mxu1 }
 0x2b6   : > { %6243 = vmatpush1.bf16.msra.mxu1 %v6242_v20 }
 0x2b7   : > { %6244 = vmatprep.subr.bf16.mxu1 %v7103_v0 }
 0x2bd   : > { %v8241_v63 = vpop.f32.mrb[16].mxu1 }
 0x2be   : > { %v8243_v10 = vpop.f32.mrb[17].mxu1 }
 0x2c1   : > { %v8246_v55 = vpop.f32.mrb[18].mxu1 }
 0x2c2   : > { %v8248_v34 = vpop.f32.mrb[19].mxu1 }
 0x2c5   : > { %v8251_v19 = vpop.f32.mrb[20].mxu1 }
 0x2c6   : > { %v8253_v9 = vpop.f32.mrb[21].mxu1 }
 0x2c9   : > { %v8256_v15 = vpop.f32.mrb[22].mxu1 }
 0x2ca   : > { %v8258_v61 = vpop.f32.mrb[23].mxu1 }
 0x2cd   : > { %v8261_v30 = vpop.f32.mrb[24].mxu1 }
 0x2ce   : > { %v8263_v24 = vpop.f32.mrb[25].mxu1 }
 0x2d1   : > { %v8266_v25 = vpop.f32.mrb[26].mxu1 }
 0x2d2   : > { %v8268_v47 = vpop.f32.mrb[27].mxu1 }
 0x2d5   : > { %v8271_v3 = vpop.f32.mrb[28].mxu1 }
 0x2d6   : > { %v8273_v6 = vpop.f32.mrb[29].mxu1 }
 0x2ec   : > { %v8276_v40 = vpop.f32.mrb[30].mxu1 }
 0x2ed   : > { %v8278_v26 = vpop.f32.mrb[31].mxu1 }
 0x2fe   : > { %v2438_v53 = vpop.f32.mrb[0].mxu0 }
 0x2ff   : > { %v6391_v32 = vadd.f32 %v8283_v18, %v2438_v53  ;;  %v2440_v39 = vpop.f32.mrb[1].mxu0 }
 0x301   : > { %v2664_v1 = vadd.f32 %v6391_v32, %v8149_v8  ;;  %v4111_v8 = vld [vmem:[#allocation9 + $0x1f0] sm:$0xff] }
 0x302   : > { %v2443_v49 = vpop.f32.mrb[2].mxu0  ;;  %v6245_v54 = vpack.c.bf16 %v4112_v31, %v4111_v8 }
 0x303   : > { %v2822_v21 = vmax.f32 %v2664_v1, 0.0  ;;  %v6392_v37 = vadd.f32 %v8283_v18, %v2443_v49  ;;  %v2445_v44 = vpop.f32.mrb[3].mxu0 }
 0x304   : > { %6246 = vmatpush1.bf16.msra.mxu1 %v6245_v54 }
 0x305   : > { %2854 = vst [vmem:[#allocation3] sm:$0xff] %v2822_v21  ;;  %v2946_v7 = vrot.slane %v2822_v21, 7  ;;  %3379 = vst [vmem:[#allocation2 + $0x20] sm:$0xff] %v2822_v21  ;;  %v2669_v33 = vadd.f32 %v6392_v37, %v8144_v16  ;;  %4274 = vmatprep.mubr.f32.mxu1 %v2822_v21  ;;  %6247 = vmatprep.subr.bf16.mxu1 %v7103_v0 }
 0x306   : > { %v2448_v23 = vpop.f32.mrb[4].mxu0 }
 0x307   : > { %3021 = vst [vmem:[#allocation2 + $0x90] sm:$0xfe] %v2946_v7  ;;  %3315 = vst [vmem:[#allocation2 + $0x18] sm:$0xfe] %v2946_v7  ;;  %v2823_v41 = vmax.f32 %v2669_v33, 0.0  ;;  %v6393_v62 = vadd.f32 %v8283_v18, %v2448_v23  ;;  %v2450_v57 = vpop.f32.mrb[5].mxu0 }
 0x309   : > { %2855 = vst [vmem:[#allocation3 + $0x8] sm:$0xff] %v2823_v41  ;;  %3380 = vst [vmem:[#allocation2 + $0x68] sm:$0xff] %v2823_v41  ;;  %v2674_v45 = vadd.f32 %v6393_v62, %v8167_v43 }
 0x30a   : > { %v2453_v16 = vpop.f32.mrb[6].mxu0 }
 0x30b   : > { %v2824_v58 = vmax.f32 %v2674_v45, 0.0  ;;  %v6394_v53 = vadd.f32 %v8283_v18, %v2453_v16  ;;  %v2455_v22 = vpop.f32.mrb[7].mxu0 }
 0x30d   : > { %2856 = vst [vmem:[#allocation3 + $0x10] sm:$0xff] %v2824_v58  ;;  %v8296_v32 = vrot.slane %v2824_v58, 7  ;;  %3381 = vst [vmem:[#allocation2 + $0xb0] sm:$0xff] %v2824_v58  ;;  %v2679_v39 = vadd.f32 %v6394_v53, %v8164_v56 }
 0x30e   : > { %3671 = vst [vmem:[#allocation2 + $0x38] sm:$0xff] %v2824_v58  ;;  %v2458_v1 = vpop.f32.mrb[8].mxu0  ;;  %v3779_v2 = vld [vmem:[#allocation2 + $0x90] sm:$0xff] }
 0x30f   : > { %3023 = vst [vmem:[#allocation2 + $0x120] sm:$0xfe] %v8296_v32  ;;  %3317 = vst [vmem:[#allocation2 + $0xa8] sm:$0xfe] %v8296_v32  ;;  %v2825_v43 = vmax.f32 %v2679_v39, 0.0  ;;  %v6395_v29 = vadd.f32 %v8283_v18, %v2458_v1  ;;  %v2460_v49 = vpop.f32.mrb[9].mxu0  ;;  %4275 = vmatmul.mubr.f32.gmra.mrb[36].mxu1 %v3779_v2 }
 0x310   : > { %3611 = vst [vmem:[#allocation2 + $0x30] sm:$0xfe] %v8296_v32  ;;  %v2887_v20 = vld [vmem:[#allocation3 + $0x8] sm:$0x7f]  ;;  %4279 = vmatprep.mubr.f32.mxu1 %v2823_v41 }
 0x311   : > { %v3111_v21 = vld [vmem:[#allocation3 + $0x1] sm:$0xff]  ;;  %v3112_v37 = vld [vmem:[#allocation3 + $0x9] sm:$0x7f]  ;;  %v2947_v44 = vrot.slane %v2887_v20, 7  ;;  %2857 = vst [vmem:[#allocation3 + $0x18] sm:$0xff] %v2825_v43  ;;  %3382 = vst [vmem:[#allocation2 + $0xf8] sm:$0xff] %v2825_v43  ;;  %v2684_v8 = vadd.f32 %v6395_v29, %v8187_v11 }
 0x312   : > { %v3172_v33 = vld [vmem:[#allocation3 + $0x8] sm:$0x7f]  ;;  %3141 = vst [vmem:[#allocation2 + $0xa0] sm:$0xff] %v3111_v21  ;;  %3142 = vst [vmem:[#allocation2 + $0xe8] sm:$0x7f] %v3112_v37  ;;  %v2463_v23 = vpop.f32.mrb[10].mxu0 }
 0x313   : > { %v3412_v56 = vld [vmem:[#allocation3 + $0x9] sm:$0x7f]  ;;  %3443 = vst [vmem:[#allocation2 + $0x28] sm:$0xff] %v3111_v21  ;;  %3672 = vst [vmem:[#allocation2 + $0x80] sm:$0xff] %v2825_v43  ;;  %v3236_v31 = vrot.slane %v3172_v33, 7  ;;  %v2826_v54 = vmax.f32 %v2684_v8, 0.0  ;;  %v6396_v62 = vadd.f32 %v8283_v18, %v2463_v23  ;;  %v2948_v41 = vsel %vm441_vm0, %v2946_v7, %v2947_v44 }
 0x314   : > { %3444 = vst [vmem:[#allocation2 + $0x70] sm:$0x7f] %v3412_v56  ;;  %v2465_v57 = vpop.f32.mrb[11].mxu0  ;;  %4280 = vmatmul.mubr.f32.gmra.mrb[38].mxu1 %v2948_v41 }
 0x315   : > { %v3237_v45 = vsel %vm441_vm0, %v2946_v7, %v3236_v31  ;;  %2858 = vst [vmem:[#allocation3 + $0x20] sm:$0xff] %v2826_v54  ;;  %v8307_v16 = vrot.slane %v2826_v54, 7  ;;  %3383 = vst [vmem:[#allocation2 + $0x140] sm:$0xff] %v2826_v54  ;;  %v2689_v53 = vadd.f32 %v6396_v62, %v8183_v50  ;;  %4284 = vmatprep.mubr.f32.mxu1 %v2824_v58 }
 0x316   : > { %3673 = vst [vmem:[#allocation2 + $0xc8] sm:$0xff] %v2826_v54  ;;  %3316 = vst [vmem:[#allocation2 + $0x60] sm:$0xff] %v3237_v45  ;;  %v2468_v11 = vpop.f32.mrb[12].mxu0  ;;  %v3797_v22 = vld [vmem:[#allocation2 + $0x120] sm:$0xff] }
 0x317   : > { %3025 = vst [vmem:[#allocation2 + $0x1b0] sm:$0xfe] %v8307_v16  ;;  %3319 = vst [vmem:[#allocation2 + $0x138] sm:$0xfe] %v8307_v16  ;;  %v8313_v39 = vmax.f32 %v2689_v53, 0.0  ;;  %v6397_v7 = vadd.f32 %v8283_v18, %v2468_v11  ;;  %v2470_v1 = vpop.f32.mrb[13].mxu0 }
 0x318   : > { %3613 = vst [vmem:[#allocation2 + $0xc0] sm:$0xfe] %v8307_v16  ;;  %v2889_v2 = vld [vmem:[#allocation3 + $0x18] sm:$0x7f]  ;;  %4285 = vmatmul.mubr.f32.gmra.mrb[40].mxu1 %v3797_v22 }
 0x319   : > { %v3113_v29 = vld [vmem:[#allocation3 + $0x11] sm:$0xff]  ;;  %v3114_v49 = vld [vmem:[#allocation3 + $0x19] sm:$0x7f]  ;;  %v2950_v50 = vrot.slane %v2889_v2, 7  ;;  %2859 = vst [vmem:[#allocation3 + $0x28] sm:$0xff] %v8313_v39  ;;  %3384 = vst [vmem:[#allocation2 + $0x188] sm:$0xff] %v8313_v39  ;;  %v2694_v21 = vadd.f32 %v6397_v7, %v8205_v27  ;;  %4289 = vmatprep.mubr.f32.mxu1 %v2825_v43 }
 0x31a   : > { %v3174_v58 = vld [vmem:[#allocation3 + $0x18] sm:$0x7f]  ;;  %3143 = vst [vmem:[#allocation2 + $0x130] sm:$0xff] %v3113_v29  ;;  %3144 = vst [vmem:[#allocation2 + $0x178] sm:$0x7f] %v3114_v49  ;;  %5879 = vmatprep.mubr.f32.mxu0 %v3113_v29  ;;  %v2473_v56 = vpop.f32.mrb[14].mxu0 }
 0x31b   : > { %v3414_v20 = vld [vmem:[#allocation3 + $0x19] sm:$0x7f]  ;;  %3445 = vst [vmem:[#allocation2 + $0xb8] sm:$0xff] %v3113_v29  ;;  %3674 = vst [vmem:[#allocation2 + $0x110] sm:$0xff] %v8313_v39  ;;  %v3239_v37 = vrot.slane %v3174_v58, 7  ;;  %v2828_v31 = vmax.f32 %v2694_v21, 0.0  ;;  %v6398_v23 = vadd.f32 %v8283_v18, %v2473_v56  ;;  %v2951_v57 = vsel %vm441_vm0, %v8296_v32, %v2950_v50 }
 0x31c   : > { %v3477_v44 = vld [vmem:[#allocation3 + $0x18] sm:$0x7f]  ;;  %3446 = vst [vmem:[#allocation2 + $0x100] sm:$0x7f] %v3414_v20  ;;  %v2475_v62 = vpop.f32.mrb[15].mxu0  ;;  %4290 = vmatmul.mubr.f32.gmra.mrb[42].mxu1 %v2951_v57 }
 0x31d   : > { %v3702_v33 = vld [vmem:[#allocation3 + $0x19] sm:$0x7f]  ;;  %v3537_v8 = vrot.slane %v3477_v44, 7  ;;  %v3240_v27 = vsel %vm441_vm0, %v8296_v32, %v3239_v37  ;;  %2860 = vst [vmem:[#allocation3 + $0x30] sm:$0xff] %v2828_v31  ;;  %v8325_v43 = vrot.slane %v2828_v31, 7  ;;  %3385 = vst [vmem:[#allocation2 + $0x1d0] sm:$0xff] %v2828_v31  ;;  %v2699_v41 = vadd.f32 %v6398_v23, %v8201_v51  ;;  %4294 = vmatprep.mubr.f32.mxu1 %v2826_v54 }
 0x31e   : > { %3732 = vst [vmem:[#allocation2 + $0x88] sm:$0x7f] %v3702_v33  ;;  %3675 = vst [vmem:[#allocation2 + $0x158] sm:$0xff] %v2828_v31  ;;  %v2478_v53 = vpop.f32.mrb[16].mxu0  ;;  %v3815_v11 = vld [vmem:[#allocation2 + $0x1b0] sm:$0xff] }
 0x31f   : > { %3318 = vst [vmem:[#allocation2 + $0xf0] sm:$0xff] %v3240_v27  ;;  %v3538_v45 = vsel %vm441_vm0, %v8296_v32, %v3537_v8  ;;  %3027 = vst [vmem:[#allocation2 + $0x240] sm:$0xfe] %v8325_v43  ;;  %v8333_v22 = vmax.f32 %v2699_v41, 0.0  ;;  %v6399_v7 = vadd.f32 %v8283_v18, %v2478_v53  ;;  %v2480_v1 = vpop.f32.mrb[17].mxu0 }
 0x320   : > { %3612 = vst [vmem:[#allocation2 + $0x78] sm:$0xff] %v3538_v45  ;;  %3321 = vst [vmem:[#allocation2 + $0x1c8] sm:$0xfe] %v8325_v43  ;;  %v2891_v51 = vld [vmem:[#allocation3 + $0x28] sm:$0x7f]  ;;  %4295 = vmatmul.mubr.f32.gmra.mrb[44].mxu1 %v3815_v11 }
 0x321   : > { %3615 = vst [vmem:[#allocation2 + $0x150] sm:$0xfe] %v8325_v43  ;;  %v3115_v54 = vld [vmem:[#allocation3 + $0x21] sm:$0xff]  ;;  %v3116_v2 = vld [vmem:[#allocation3 + $0x29] sm:$0x7f]  ;;  %v2953_v29 = vrot.slane %v2891_v51, 7  ;;  %v2704_v50 = vadd.f32 %v6399_v7, %v8221_v46  ;;  %4299 = vmatprep.mubr.f32.mxu1 %v8313_v39 }
 0x322   : > { %v3176_v32 = vld [vmem:[#allocation3 + $0x28] sm:$0x7f]  ;;  %3145 = vst [vmem:[#allocation2 + $0x1c0] sm:$0xff] %v3115_v54  ;;  %3146 = vst [vmem:[#allocation2 + $0x208] sm:$0x7f] %v3116_v2  ;;  %v2483_v37 = vpop.f32.mrb[18].mxu0 }
 0x323   : > { %v3416_v49 = vld [vmem:[#allocation3 + $0x29] sm:$0x7f]  ;;  %3447 = vst [vmem:[#allocation2 + $0x148] sm:$0xff] %v3115_v54  ;;  %2861 = vst [vmem:[#allocation3 + $0x38] sm:$0xff] %v8333_v22  ;;  %v3242_v58 = vrot.slane %v3176_v32, 7  ;;  %v2830_v33 = vmax.f32 %v2704_v50, 0.0  ;;  %v6400_v56 = vadd.f32 %v8283_v18, %v2483_v37  ;;  %v2954_v62 = vsel %vm441_vm0, %v8307_v16, %v2953_v29 }
 0x324   : > { %3386 = vst [vmem:[#allocation2 + $0x218] sm:$0xff] %v8333_v22  ;;  %3676 = vst [vmem:[#allocation2 + $0x1a0] sm:$0xff] %v8333_v22  ;;  %v3479_v20 = vld [vmem:[#allocation3 + $0x28] sm:$0x7f]  ;;  %v2485_v23 = vpop.f32.mrb[19].mxu0  ;;  %4300 = vmatmul.mubr.f32.gmra.mrb[46].mxu1 %v2954_v62 }
 0x325   : > { %v3704_v21 = vld [vmem:[#allocation3 + $0x29] sm:$0x7f]  ;;  %3448 = vst [vmem:[#allocation2 + $0x190] sm:$0x7f] %v3416_v49  ;;  %v3540_v44 = vrot.slane %v3479_v20, 7  ;;  %v3243_v46 = vsel %vm441_vm0, %v8307_v16, %v3242_v58  ;;  %2862 = vst [vmem:[#allocation3 + $0x40] sm:$0xff] %v2830_v33  ;;  %v2709_v57 = vadd.f32 %v6400_v56, %v8218_v60  ;;  %4304 = vmatprep.mubr.f32.mxu1 %v2828_v31 }
 0x326   : > { %3734 = vst [vmem:[#allocation2 + $0x118] sm:$0x7f] %v3704_v21  ;;  %v3778_v8 = vld [vmem:[#allocation2 + $0x88] sm:$0xff]  ;;  %v8346_v39 = vrot.slane %v2830_v33, 7  ;;  %3387 = vst [vmem:[#allocation2 + $0x260] sm:$0xff] %v2830_v33  ;;  %v2488_v41 = vpop.f32.mrb[20].mxu0 }
 0x327   : > { %5880 = vmatmul.mubr.f32.vlgmr.msra.gmra.mrb[64].mxu0 %v3778_v8  ;;  %3677 = vst [vmem:[#allocation2 + $0x1e8] sm:$0xff] %v2830_v33  ;;  %3320 = vst [vmem:[#allocation2 + $0x180] sm:$0xff] %v3243_v46  ;;  %v3541_v27 = vsel %vm441_vm0, %v8307_v16, %v3540_v44  ;;  %v3833_v45 = vld [vmem:[#allocation2 + $0x240] sm:$0xff]  ;;  %v8354_v53 = vmax.f32 %v2709_v57, 0.0  ;;  %v6401_v11 = vadd.f32 %v8283_v18, %v2488_v41  ;;  %v2490_v60 = vpop.f32.mrb[21].mxu0 }
 0x328   : > { %5882 = vmatprep.mubr.f32.mxu0 %v3115_v54  ;;  %3614 = vst [vmem:[#allocation2 + $0x108] sm:$0xff] %v3541_v27  ;;  %3029 = vst [vmem:[#allocation2 + $0x2d0] sm:$0xfe] %v8346_v39  ;;  %4305 = vmatmul.mubr.f32.gmra.mrb[48].mxu1 %v3833_v45 }
 0x329   : > { %3323 = vst [vmem:[#allocation2 + $0x258] sm:$0xfe] %v8346_v39  ;;  %3617 = vst [vmem:[#allocation2 + $0x1e0] sm:$0xfe] %v8346_v39  ;;  %v2714_v2 = vadd.f32 %v6401_v11, %v8228_v5  ;;  %4309 = vmatprep.mubr.f32.mxu1 %v8333_v22 }
 0x32a   : > { %v2893_v7 = vld [vmem:[#allocation3 + $0x38] sm:$0x7f]  ;;  %2863 = vst [vmem:[#allocation3 + $0x48] sm:$0xff] %v8354_v53  ;;  %3388 = vst [vmem:[#allocation2 + $0x2a8] sm:$0xff] %v8354_v53  ;;  %v2493_v50 = vpop.f32.mrb[22].mxu0 }
 0x32b   : > { %v3117_v31 = vld [vmem:[#allocation3 + $0x31] sm:$0xff]  ;;  %v3118_v1 = vld [vmem:[#allocation3 + $0x39] sm:$0x7f]  ;;  %v2956_v51 = vrot.slane %v2893_v7, 7  ;;  %3678 = vst [vmem:[#allocation2 + $0x230] sm:$0xff] %v8354_v53  ;;  %v2832_v20 = vmax.f32 %v2714_v2, 0.0  ;;  %v6402_v21 = vadd.f32 %v8283_v18, %v2493_v50 }
 0x32c   : > { %v3178_v16 = vld [vmem:[#allocation3 + $0x38] sm:$0x7f]  ;;  %3147 = vst [vmem:[#allocation2 + $0x250] sm:$0xff] %v3117_v31  ;;  %3148 = vst [vmem:[#allocation2 + $0x298] sm:$0x7f] %v3118_v1  ;;  %v2495_v44 = vpop.f32.mrb[23].mxu0 }
 0x32d   : > { %v3418_v54 = vld [vmem:[#allocation3 + $0x39] sm:$0x7f]  ;;  %3449 = vst [vmem:[#allocation2 + $0x1d8] sm:$0xff] %v3117_v31  ;;  %v3245_v29 = vrot.slane %v3178_v16, 7  ;;  %v2957_v56 = vsel %vm441_vm0, %v8325_v43, %v2956_v51  ;;  %2864 = vst [vmem:[#allocation3 + $0x50] sm:$0xff] %v2832_v20  ;;  %v8367_v22 = vrot.slane %v2832_v20, 7  ;;  %v2719_v8 = vadd.f32 %v6402_v21, %v8226_v14 }
 0x32e   : > { %v3481_v32 = vld [vmem:[#allocation3 + $0x38] sm:$0x7f]  ;;  %3450 = vst [vmem:[#allocation2 + $0x220] sm:$0x7f] %v3418_v54  ;;  %4310 = vmatmul.mubr.f32.gmra.mrb[50].mxu1 %v2957_v56  ;;  %3389 = vst [vmem:[#allocation2 + $0x2f0] sm:$0xff] %v2832_v20  ;;  %v2498_v62 = vpop.f32.mrb[24].mxu0 }
 0x32f   : > { %v3706_v49 = vld [vmem:[#allocation3 + $0x39] sm:$0x7f]  ;;  %v3543_v58 = vrot.slane %v3481_v32, 7  ;;  %v3246_v5 = vsel %vm441_vm0, %v8325_v43, %v3245_v29  ;;  %3679 = vst [vmem:[#allocation2 + $0x278] sm:$0xff] %v2832_v20  ;;  %4314 = vmatprep.mubr.f32.mxu1 %v2830_v33  ;;  %v3851_v46 = vld [vmem:[#allocation2 + $0x2d0] sm:$0xff]  ;;  %v8375_v57 = vmax.f32 %v2719_v8, 0.0  ;;  %v6403_v27 = vadd.f32 %v8283_v18, %v2498_v62 }
 0x330   : > { %3736 = vst [vmem:[#allocation2 + $0x1a8] sm:$0x7f] %v3706_v49  ;;  %v3796_v37 = vld [vmem:[#allocation2 + $0x118] sm:$0xff]  ;;  %3322 = vst [vmem:[#allocation2 + $0x210] sm:$0xff] %v3246_v5  ;;  %v2500_v14 = vpop.f32.mrb[25].mxu0 }
 0x331   : > { %5883 = vmatmul.mubr.f32.gmra.mrb[66].mxu0 %v3796_v37  ;;  %v3544_v23 = vsel %vm441_vm0, %v8325_v43, %v3543_v58  ;;  %3031 = vst [vmem:[#allocation2 + $0x360] sm:$0xfe] %v8367_v22  ;;  %3325 = vst [vmem:[#allocation2 + $0x2e8] sm:$0xfe] %v8367_v22  ;;  %v2895_v41 = vld [vmem:[#allocation3 + $0x48] sm:$0x7f]  ;;  %v2724_v7 = vadd.f32 %v6403_v27, %v8233_v12 }
 0x332   : > { %5885 = vmatprep.mubr.f32.mxu0 %v3117_v31  ;;  %3616 = vst [vmem:[#allocation2 + $0x198] sm:$0xff] %v3544_v23  ;;  %3619 = vst [vmem:[#allocation2 + $0x270] sm:$0xfe] %v8367_v22  ;;  %v3119_v33 = vld [vmem:[#allocation3 + $0x41] sm:$0xff]  ;;  %v3120_v45 = vld [vmem:[#allocation3 + $0x49] sm:$0x7f]  ;;  %4315 = vmatmul.mubr.f32.gmra.mrb[52].mxu1 %v3851_v46 }
 0x333   : > { %v2959_v11 = vrot.slane %v2895_v41, 7  ;;  %v3180_v43 = vld [vmem:[#allocation3 + $0x48] sm:$0x7f]  ;;  %3149 = vst [vmem:[#allocation2 + $0x2e0] sm:$0xff] %v3119_v33  ;;  %3150 = vst [vmem:[#allocation2 + $0x328] sm:$0x7f] %v3120_v45  ;;  %4319 = vmatprep.mubr.f32.mxu1 %v8354_v53 }
 0x334   : > { %v3420_v60 = vld [vmem:[#allocation3 + $0x49] sm:$0x7f]  ;;  %3451 = vst [vmem:[#allocation2 + $0x268] sm:$0xff] %v3119_v33  ;;  %2865 = vst [vmem:[#allocation3 + $0x58] sm:$0xff] %v8375_v57  ;;  %v3248_v31 = vrot.slane %v3180_v43, 7  ;;  %v2503_v16 = vpop.f32.mrb[26].mxu0 }
 0x335   : > { %3390 = vst [vmem:[#allocation2 + $0x338] sm:$0xff] %v8375_v57  ;;  %3680 = vst [vmem:[#allocation2 + $0x2c0] sm:$0xff] %v8375_v57  ;;  %v3483_v1 = vld [vmem:[#allocation3 + $0x48] sm:$0x7f]  ;;  %v2834_v2 = vmax.f32 %v2724_v7, 0.0  ;;  %v6404_v29 = vadd.f32 %v8283_v18, %v2503_v16  ;;  %v2505_v49 = vpop.f32.mrb[27].mxu0  ;;  %v2960_v50 = vsel %vm441_vm0, %v8346_v39, %v2959_v11 }
 0x336   : > { %v3708_v51 = vld [vmem:[#allocation3 + $0x49] sm:$0x7f]  ;;  %3452 = vst [vmem:[#allocation2 + $0x2b0] sm:$0x7f] %v3420_v60  ;;  %v3546_v54 = vrot.slane %v3483_v1, 7  ;;  %4320 = vmatmul.mubr.f32.gmra.mrb[54].mxu1 %v2960_v50  ;;  %v3249_v12 = vsel %vm441_vm0, %v8346_v39, %v3248_v31  ;;  %v2508_v37 = vpop.f32.mrb[28].mxu0 }
 0x337   : > { %3738 = vst [vmem:[#allocation2 + $0x238] sm:$0x7f] %v3708_v51  ;;  %v3814_v32 = vld [vmem:[#allocation2 + $0x1a8] sm:$0xff]  ;;  %2866 = vst [vmem:[#allocation3 + $0x60] sm:$0xff] %v2834_v2  ;;  %v8388_v53 = vrot.slane %v2834_v2, 7  ;;  %v2729_v58 = vadd.f32 %v6404_v29, %v8231_v35  ;;  %4324 = vmatprep.mubr.f32.mxu1 %v2832_v20  ;;  %v6405_v5 = vadd.f32 %v8283_v18, %v2508_v37  ;;  %v2510_v35 = vpop.f32.mrb[29].mxu0 }
 0x338   : > { %5886 = vmatmul.mubr.f32.gmra.mrb[68].mxu0 %v3814_v32  ;;  %3391 = vst [vmem:[#allocation2 + $0x380] sm:$0xff] %v2834_v2  ;;  %3681 = vst [vmem:[#allocation2 + $0x308] sm:$0xff] %v2834_v2  ;;  %v3547_v21 = vsel %vm441_vm0, %v8346_v39, %v3546_v54  ;;  %v3869_v44 = vld [vmem:[#allocation2 + $0x360] sm:$0xff] }
 0x339   : > { %5888 = vmatprep.mubr.f32.mxu0 %v3119_v33  ;;  %3324 = vst [vmem:[#allocation2 + $0x2a0] sm:$0xff] %v3249_v12  ;;  %3618 = vst [vmem:[#allocation2 + $0x228] sm:$0xff] %v3547_v21  ;;  %v8396_v56 = vmax.f32 %v2729_v58, 0.0  ;;  %v2734_v27 = vadd.f32 %v6405_v5, %v8238_v17 }
 0x33a   : > { %3033 = vst [vmem:[#allocation2 + $0x3f0] sm:$0xfe] %v8388_v53  ;;  %3327 = vst [vmem:[#allocation2 + $0x378] sm:$0xfe] %v8388_v53  ;;  %4325 = vmatmul.mubr.f32.gmra.mrb[56].mxu1 %v3869_v44  ;;  %v2513_v45 = vpop.f32.mrb[30].mxu0 }
 0x33b   : > { %3621 = vst [vmem:[#allocation2 + $0x300] sm:$0xfe] %v8388_v53  ;;  %v2897_v8 = vld [vmem:[#allocation3 + $0x58] sm:$0x7f]  ;;  %2867 = vst [vmem:[#allocation3 + $0x68] sm:$0xff] %v8396_v56  ;;  %4329 = vmatprep.mubr.f32.mxu1 %v8375_v57  ;;  %v2836_v43 = vmax.f32 %v2734_v27, 0.0  ;;  %v6406_v60 = vadd.f32 %v8283_v18, %v2513_v45 }
 0x33c   : > { %v3121_v20 = vld [vmem:[#allocation3 + $0x51] sm:$0xff]  ;;  %v3122_v23 = vld [vmem:[#allocation3 + $0x59] sm:$0x7f]  ;;  %v2962_v62 = vrot.slane %v2897_v8, 7  ;;  %3392 = vst [vmem:[#allocation2 + $0x3c8] sm:$0xff] %v8396_v56  ;;  %3682 = vst [vmem:[#allocation2 + $0x350] sm:$0xff] %v8396_v56 }
 0x33d   : > { %v3182_v39 = vld [vmem:[#allocation3 + $0x58] sm:$0x7f]  ;;  %3151 = vst [vmem:[#allocation2 + $0x370] sm:$0xff] %v3121_v20  ;;  %3152 = vst [vmem:[#allocation2 + $0x3b8] sm:$0x7f] %v3122_v23  ;;  %v2515_v31 = vpop.f32.mrb[31].mxu0  ;;  %v2739_v51 = vadd.f32 %v6406_v60, %v8236_v28 }
 0x33e   : > { %v3422_v46 = vld [vmem:[#allocation3 + $0x59] sm:$0x7f]  ;;  %3453 = vst [vmem:[#allocation2 + $0x2f8] sm:$0xff] %v3121_v20  ;;  %v3251_v14 = vrot.slane %v3182_v39, 7  ;;  %v2963_v1 = vsel %vm441_vm0, %v8367_v22, %v2962_v62  ;;  %2868 = vst [vmem:[#allocation3 + $0x70] sm:$0xff] %v2836_v43  ;;  %v8409_v57 = vrot.slane %v2836_v43, 7 }
 0x33f   : > { %v3485_v41 = vld [vmem:[#allocation3 + $0x58] sm:$0x7f]  ;;  %3454 = vst [vmem:[#allocation2 + $0x340] sm:$0x7f] %v3422_v46  ;;  %4330 = vmatmul.mubr.f32.gmra.mrb[58].mxu1 %v2963_v1  ;;  %3393 = vst [vmem:[#allocation2 + $0x410] sm:$0xff] %v2836_v43  ;;  %v2518_v54 = vpop.f32.mrb[32].mxu0 }
 0x340   : > { %v3710_v33 = vld [vmem:[#allocation3 + $0x59] sm:$0x7f]  ;;  %v3549_v11 = vrot.slane %v3485_v41, 7  ;;  %v3252_v17 = vsel %vm441_vm0, %v8367_v22, %v3251_v14  ;;  %3683 = vst [vmem:[#allocation2 + $0x398] sm:$0xff] %v2836_v43  ;;  %4334 = vmatprep.mubr.f32.mxu1 %v2834_v2  ;;  %3035 = vst [vmem:[#allocation2 + $0x480] sm:$0xfe] %v8409_v57  ;;  %v6407_v49 = vadd.f32 %v8283_v18, %v2518_v54 }
 0x341   : > { %3740 = vst [vmem:[#allocation2 + $0x2c8] sm:$0x7f] %v3710_v33  ;;  %v3832_v7 = vld [vmem:[#allocation2 + $0x238] sm:$0xff]  ;;  %3326 = vst [vmem:[#allocation2 + $0x330] sm:$0xff] %v3252_v17  ;;  %v3887_v29 = vld [vmem:[#allocation2 + $0x3f0] sm:$0xff]  ;;  %v8417_v32 = vmax.f32 %v2739_v51, 0.0 }
 0x342   : > { %5889 = vmatmul.mubr.f32.gmra.mrb[70].mxu0 %v3832_v7  ;;  %v3550_v16 = vsel %vm441_vm0, %v8367_v22, %v3549_v11  ;;  %3329 = vst [vmem:[#allocation2 + $0x408] sm:$0xfe] %v8409_v57  ;;  %3623 = vst [vmem:[#allocation2 + $0x390] sm:$0xfe] %v8409_v57  ;;  %v2520_v28 = vpop.f32.mrb[33].mxu0  ;;  %v3123_v2 = vld [vmem:[#allocation3 + $0x61] sm:$0xff]  ;;  %v2744_v37 = vadd.f32 %v6407_v49, %v8243_v10 }
 0x343   : > { %5891 = vmatprep.mubr.f32.mxu0 %v3121_v20  ;;  %3620 = vst [vmem:[#allocation2 + $0x2b8] sm:$0xff] %v3550_v16  ;;  %v2899_v50 = vld [vmem:[#allocation3 + $0x68] sm:$0x7f]  ;;  %4335 = vmatmul.mubr.f32.gmra.mrb[60].mxu1 %v3887_v29  ;;  %3153 = vst [vmem:[#allocation2 + $0x400] sm:$0xff] %v3123_v2  ;;  %v2523_v8 = vpop.f32.mrb[34].mxu0 }
 0x344   : > { %v3124_v12 = vld [vmem:[#allocation3 + $0x69] sm:$0x7f]  ;;  %v2965_v58 = vrot.slane %v2899_v50, 7  ;;  %3455 = vst [vmem:[#allocation2 + $0x388] sm:$0xff] %v3123_v2  ;;  %2869 = vst [vmem:[#allocation3 + $0x78] sm:$0xff] %v8417_v32  ;;  %4339 = vmatprep.mubr.f32.mxu1 %v8396_v56  ;;  %v2838_v23 = vmax.f32 %v2744_v37, 0.0  ;;  %v6408_v62 = vadd.f32 %v8283_v18, %v2523_v8 }
 0x345   : > { %v3184_v22 = vld [vmem:[#allocation3 + $0x68] sm:$0x7f]  ;;  %3154 = vst [vmem:[#allocation2 + $0x448] sm:$0x7f] %v3124_v12  ;;  %3394 = vst [vmem:[#allocation2 + $0x458] sm:$0xff] %v8417_v32  ;;  %v2525_v46 = vpop.f32.mrb[35].mxu0 }
 0x346   : > { %v3424_v21 = vld [vmem:[#allocation3 + $0x69] sm:$0x7f]  ;;  %3684 = vst [vmem:[#allocation2 + $0x3e0] sm:$0xff] %v8417_v32  ;;  %v3254_v44 = vrot.slane %v3184_v22, 7  ;;  %v2966_v27 = vsel %vm441_vm0, %v8388_v53, %v2965_v58  ;;  %2870 = vst [vmem:[#allocation3 + $0x80] sm:$0xff] %v2838_v23  ;;  %v8430_v56 = vrot.slane %v2838_v23, 7  ;;  %v2749_v14 = vadd.f32 %v6408_v62, %v8241_v63 }
 0x347   : > { %v3487_v5 = vld [vmem:[#allocation3 + $0x68] sm:$0x7f]  ;;  %3456 = vst [vmem:[#allocation2 + $0x3d0] sm:$0x7f] %v3424_v21  ;;  %4340 = vmatmul.mubr.f32.gmra.mrb[62].mxu1 %v2966_v27  ;;  %3395 = vst [vmem:[#allocation2 + $0x4a0] sm:$0xff] %v2838_v23  ;;  %v2528_v33 = vpop.f32.mrb[36].mxu0 }
 0x348   : > { %v3712_v35 = vld [vmem:[#allocation3 + $0x69] sm:$0x7f]  ;;  %v3552_v20 = vrot.slane %v3487_v5, 7  ;;  %v3255_v10 = vsel %vm441_vm0, %v8388_v53, %v3254_v44  ;;  %3685 = vst [vmem:[#allocation2 + $0x428] sm:$0xff] %v2838_v23  ;;  %4344 = vmatprep.mubr.f32.mxu1 %v2836_v43  ;;  %v3905_v45 = vld [vmem:[#allocation2 + $0x480] sm:$0xff]  ;;  %v8438_v11 = vmax.f32 %v2749_v14, 0.0  ;;  %v6409_v60 = vadd.f32 %v8283_v18, %v2528_v33 }
 0x349   : > { %3742 = vst [vmem:[#allocation2 + $0x358] sm:$0x7f] %v3712_v35  ;;  %v3850_v39 = vld [vmem:[#allocation2 + $0x2c8] sm:$0xff]  ;;  %3328 = vst [vmem:[#allocation2 + $0x3c0] sm:$0xff] %v3255_v10  ;;  %v2530_v63 = vpop.f32.mrb[37].mxu0 }
 0x34a   : > { %5892 = vmatmul.mubr.f32.gmra.mrb[72].mxu0 %v3850_v39  ;;  %v3553_v41 = vsel %vm441_vm0, %v8388_v53, %v3552_v20  ;;  %3037 = vst [vmem:[#allocation2 + $0x510] sm:$0xfe] %v8430_v56  ;;  %3331 = vst [vmem:[#allocation2 + $0x498] sm:$0xfe] %v8430_v56  ;;  %v2754_v51 = vadd.f32 %v6409_v60, %v8248_v34  ;;  %v2533_v49 = vpop.f32.mrb[38].mxu0 }
 0x34b   : > { %5894 = vmatprep.mubr.f32.mxu0 %v3123_v2  ;;  %3622 = vst [vmem:[#allocation2 + $0x348] sm:$0xff] %v3553_v41  ;;  %3625 = vst [vmem:[#allocation2 + $0x420] sm:$0xfe] %v8430_v56  ;;  %v2901_v7 = vld [vmem:[#allocation3 + $0x78] sm:$0x7f]  ;;  %4345 = vmatmul.mubr.f32.gmra.mrb[64].mxu1 %v3905_v45  ;;  %v6410_v2 = vadd.f32 %v8283_v18, %v2533_v49  ;;  %v2535_v58 = vpop.f32.mrb[39].mxu0 }
 0x34c   : > { %v3125_v43 = vld [vmem:[#allocation3 + $0x71] sm:$0xff]  ;;  %v3126_v31 = vld [vmem:[#allocation3 + $0x79] sm:$0x7f]  ;;  %v2968_v1 = vrot.slane %v2901_v7, 7  ;;  %2871 = vst [vmem:[#allocation3 + $0x88] sm:$0xff] %v8438_v11  ;;  %3396 = vst [vmem:[#allocation2 + $0x4e8] sm:$0xff] %v8438_v11  ;;  %4349 = vmatprep.mubr.f32.mxu1 %v8417_v32 }
 0x34d   : > { %v3186_v53 = vld [vmem:[#allocation3 + $0x78] sm:$0x7f]  ;;  %3155 = vst [vmem:[#allocation2 + $0x490] sm:$0xff] %v3125_v43  ;;  %3156 = vst [vmem:[#allocation2 + $0x4d8] sm:$0x7f] %v3126_v31  ;;  %v2840_v50 = vmax.f32 %v2754_v51, 0.0  ;;  %v2759_v21 = vadd.f32 %v6410_v2, %v8246_v55 }
 0x34e   : > { %v3426_v17 = vld [vmem:[#allocation3 + $0x79] sm:$0x7f]  ;;  %3457 = vst [vmem:[#allocation2 + $0x418] sm:$0xff] %v3125_v43  ;;  %3686 = vst [vmem:[#allocation2 + $0x470] sm:$0xff] %v8438_v11  ;;  %v3257_v16 = vrot.slane %v3186_v53, 7  ;;  %v2969_v22 = vsel %vm441_vm0, %v8409_v57, %v2968_v1  ;;  %v2538_v44 = vpop.f32.mrb[40].mxu0 }
 0x34f   : > { %v3489_v54 = vld [vmem:[#allocation3 + $0x78] sm:$0x7f]  ;;  %3458 = vst [vmem:[#allocation2 + $0x460] sm:$0x7f] %v3426_v17  ;;  %4350 = vmatmul.mubr.f32.gmra.mrb[66].mxu1 %v2969_v22  ;;  %2872 = vst [vmem:[#allocation3 + $0x90] sm:$0xff] %v2840_v50  ;;  %v8453_v32 = vrot.slane %v2840_v50, 7  ;;  %v6411_v8 = vadd.f32 %v8283_v18, %v2538_v44 }
 0x350   : > { %v3714_v29 = vld [vmem:[#allocation3 + $0x79] sm:$0x7f]  ;;  %v3555_v28 = vrot.slane %v3489_v54, 7  ;;  %v8451_v34 = vsel %vm441_vm0, %v8409_v57, %v3257_v16  ;;  %3397 = vst [vmem:[#allocation2 + $0x530] sm:$0xff] %v2840_v50  ;;  %3687 = vst [vmem:[#allocation2 + $0x4b8] sm:$0xff] %v2840_v50  ;;  %4354 = vmatprep.mubr.f32.mxu1 %v2838_v23  ;;  %v8461_v35 = vmax.f32 %v2759_v21, 0.0 }
 0x351   : > { %3744 = vst [vmem:[#allocation2 + $0x3e8] sm:$0x7f] %v3714_v29  ;;  %v3868_v12 = vld [vmem:[#allocation2 + $0x358] sm:$0xff]  ;;  %v3923_v5 = vld [vmem:[#allocation2 + $0x510] sm:$0xff]  ;;  %3039 = vst [vmem:[#allocation2 + $0x5a0] sm:$0xfe] %v8453_v32  ;;  %v2764_v27 = vadd.f32 %v6411_v8, %v8253_v9 }
 0x352   : > { %5895 = vmatmul.mubr.f32.gmra.mrb[74].mxu0 %v3868_v12  ;;  %v3556_v37 = vsel %vm441_vm0, %v8409_v57, %v3555_v28  ;;  %3333 = vst [vmem:[#allocation2 + $0x528] sm:$0xfe] %v8453_v32  ;;  %3627 = vst [vmem:[#allocation2 + $0x4b0] sm:$0xfe] %v8453_v32  ;;  %v2540_v20 = vpop.f32.mrb[41].mxu0 }
 0x353   : > { %5897 = vmatprep.mubr.f32.mxu0 %v3125_v43  ;;  %3624 = vst [vmem:[#allocation2 + $0x3d8] sm:$0xff] %v3556_v37  ;;  %v2903_v55 = vld [vmem:[#allocation3 + $0x88] sm:$0x7f]  ;;  %4355 = vmatmul.mubr.f32.gmra.mrb[68].mxu1 %v3923_v5  ;;  %2873 = vst [vmem:[#allocation3 + $0x98] sm:$0xff] %v8461_v35  ;;  %v2543_v33 = vpop.f32.mrb[42].mxu0  ;;  %v2842_v60 = vmax.f32 %v2764_v27, 0.0 }
 0x354   : > { %v3127_v62 = vld [vmem:[#allocation3 + $0x81] sm:$0xff]  ;;  %v3128_v23 = vld [vmem:[#allocation3 + $0x89] sm:$0x7f]  ;;  %v2971_v39 = vrot.slane %v2903_v55, 7  ;;  %3398 = vst [vmem:[#allocation2 + $0x578] sm:$0xff] %v8461_v35  ;;  %3688 = vst [vmem:[#allocation2 + $0x500] sm:$0xff] %v8461_v35  ;;  %4359 = vmatprep.mubr.f32.mxu1 %v8438_v11  ;;  %v6412_v63 = vadd.f32 %v8283_v18, %v2543_v33 }
 0x355   : > { %v3188_v57 = vld [vmem:[#allocation3 + $0x88] sm:$0x7f]  ;;  %3157 = vst [vmem:[#allocation2 + $0x520] sm:$0xff] %v3127_v62  ;;  %3158 = vst [vmem:[#allocation2 + $0x568] sm:$0x7f] %v3128_v23  ;;  %v2545_v43 = vpop.f32.mrb[43].mxu0 }
 0x356   : > { %v3428_v46 = vld [vmem:[#allocation3 + $0x89] sm:$0x7f]  ;;  %3459 = vst [vmem:[#allocation2 + $0x4a8] sm:$0xff] %v3127_v62  ;;  %v3260_v10 = vrot.slane %v3188_v57, 7  ;;  %v2972_v31 = vsel %vm441_vm0, %v8430_v56, %v2971_v39  ;;  %2874 = vst [vmem:[#allocation3 + $0xa0] sm:$0xff] %v2842_v60  ;;  %v8476_v11 = vrot.slane %v2842_v60, 7  ;;  %v2769_v1 = vadd.f32 %v6412_v63, %v8251_v19 }
 0x357   : > { %v3491_v14 = vld [vmem:[#allocation3 + $0x88] sm:$0x7f]  ;;  %3460 = vst [vmem:[#allocation2 + $0x4f0] sm:$0x7f] %v3428_v46  ;;  %4360 = vmatmul.mubr.f32.gmra.mrb[70].mxu1 %v2972_v31  ;;  %3399 = vst [vmem:[#allocation2 + $0x5c0] sm:$0xff] %v2842_v60  ;;  %v2548_v53 = vpop.f32.mrb[44].mxu0 }
 0x358   : > { %v3716_v41 = vld [vmem:[#allocation3 + $0x89] sm:$0x7f]  ;;  %v3558_v45 = vrot.slane %v3491_v14, 7  ;;  %v8474_v9 = vsel %vm441_vm0, %v8430_v56, %v3260_v10  ;;  %3689 = vst [vmem:[#allocation2 + $0x548] sm:$0xff] %v2842_v60  ;;  %4364 = vmatprep.mubr.f32.mxu1 %v2840_v50  ;;  %v3941_v17 = vld [vmem:[#allocation2 + $0x5a0] sm:$0xff]  ;;  %v8484_v51 = vmax.f32 %v2769_v1, 0.0 }
 0x359   : > { %3746 = vst [vmem:[#allocation2 + $0x478] sm:$0x7f] %v3716_v41  ;;  %v3886_v7 = vld [vmem:[#allocation2 + $0x3e8] sm:$0xff]  ;;  %3041 = vst [vmem:[#allocation2 + $0x630] sm:$0xfe] %v8476_v11  ;;  %v2550_v54 = vpop.f32.mrb[45].mxu0 }
 0x35a   : > { %5898 = vmatmul.mubr.f32.gmra.mrb[76].mxu0 %v3886_v7  ;;  %v3559_v18 = vsel %vm441_vm0, %v8430_v56, %v3558_v45  ;;  %3335 = vst [vmem:[#allocation2 + $0x5b8] sm:$0xfe] %v8476_v11  ;;  %3629 = vst [vmem:[#allocation2 + $0x540] sm:$0xfe] %v8476_v11  ;;  %v8489_v19 = vld [vmem:[%s8916_s2] ss:$0 sm:$0xff] }
 0x35b   : > { %5900 = vmatprep.mubr.f32.mxu0 %v3127_v62  ;;  %3626 = vst [vmem:[#allocation2 + $0x468] sm:$0xff] %v3559_v18  ;;  %v6413_v16 = vadd.f32 %v8489_v19, %v2548_v53  ;;  %v2905_v56 = vld [vmem:[#allocation3 + $0x98] sm:$0x7f]  ;;  %4365 = vmatmul.mubr.f32.gmra.mrb[72].mxu1 %v3941_v17  ;;  %2875 = vst [vmem:[#allocation3 + $0xa8] sm:$0xff] %v8484_v51  ;;  %v2553_v37 = vpop.f32.mrb[46].mxu0 }
 0x35c   : > { %v3129_v29 = vld [vmem:[#allocation3 + $0x91] sm:$0xff]  ;;  %v3130_v49 = vld [vmem:[#allocation3 + $0x99] sm:$0x7f]  ;;  %v2974_v28 = vrot.slane %v2905_v56, 7  ;;  %3400 = vst [vmem:[#allocation2 + $0x608] sm:$0xff] %v8484_v51  ;;  %3690 = vst [vmem:[#allocation2 + $0x590] sm:$0xff] %v8484_v51  ;;  %4369 = vmatprep.mubr.f32.mxu1 %v8461_v35  ;;  %v6414_v8 = vadd.f32 %v8489_v19, %v2553_v37 }
 0x35d   : > { %v3190_v50 = vld [vmem:[#allocation3 + $0x98] sm:$0x7f]  ;;  %3159 = vst [vmem:[#allocation2 + $0x5b0] sm:$0xff] %v3129_v29  ;;  %3160 = vst [vmem:[#allocation2 + $0x5f8] sm:$0x7f] %v3130_v49  ;;  %v2774_v12 = vadd.f32 %v6413_v16, %v8258_v61  ;;  %v2555_v55 = vpop.f32.mrb[47].mxu0 }
 0x35e   : > { %v3430_v2 = vld [vmem:[#allocation3 + $0x99] sm:$0x7f]  ;;  %3461 = vst [vmem:[#allocation2 + $0x538] sm:$0xff] %v3129_v29  ;;  %v3263_v58 = vrot.slane %v3190_v50, 7  ;;  %v2975_v62 = vsel %vm441_vm0, %v8453_v32, %v2974_v28  ;;  %v2779_v23 = vadd.f32 %v6414_v8, %v8256_v15  ;;  %v2558_v57 = vpop.f32.mrb[48].mxu0 }
 0x35f   : > { %v3493_v22 = vld [vmem:[#allocation3 + $0x98] sm:$0x7f]  ;;  %3462 = vst [vmem:[#allocation2 + $0x580] sm:$0x7f] %v3430_v2  ;;  %v2844_v5 = vmax.f32 %v2774_v12, 0.0  ;;  %4370 = vmatmul.mubr.f32.gmra.mrb[74].mxu1 %v2975_v62  ;;  %v6415_v10 = vadd.f32 %v8489_v19, %v2558_v57  ;;  %v2560_v14 = vpop.f32.mrb[49].mxu0 }
 0x360   : > { %v3718_v21 = vld [vmem:[#allocation3 + $0x99] sm:$0x7f]  ;;  %v3561_v44 = vrot.slane %v3493_v22, 7  ;;  %v8502_v61 = vsel %vm441_vm0, %v8453_v32, %v3263_v58  ;;  %4374 = vmatprep.mubr.f32.mxu1 %v2842_v60  ;;  %v3959_v46 = vld [vmem:[#allocation2 + $0x630] sm:$0xff]  ;;  %v8512_v27 = vmax.f32 %v2779_v23, 0.0 }
 0x361   : > { %3748 = vst [vmem:[#allocation2 + $0x508] sm:$0x7f] %v3718_v21  ;;  %v3904_v20 = vld [vmem:[#allocation2 + $0x478] sm:$0xff]  ;;  %2876 = vst [vmem:[#allocation3 + $0xb0] sm:$0xff] %v2844_v5  ;;  %v8504_v35 = vrot.slane %v2844_v5, 7  ;;  %v2784_v63 = vadd.f32 %v6415_v10, %v8263_v24 }
 0x362   : > { %5901 = vmatmul.mubr.f32.gmra.mrb[78].mxu0 %v3904_v20  ;;  %3401 = vst [vmem:[#allocation2 + $0x650] sm:$0xff] %v2844_v5  ;;  %3691 = vst [vmem:[#allocation2 + $0x5d8] sm:$0xff] %v2844_v5  ;;  %v3562_v39 = vsel %vm441_vm0, %v8453_v32, %v3561_v44  ;;  %v2907_v15 = vld [vmem:[#allocation3 + $0xa8] sm:$0x7f]  ;;  %v2563_v1 = vpop.f32.mrb[50].mxu0 }
 0x363   : > { %5903 = vmatprep.mubr.f32.mxu0 %v3129_v29  ;;  %3628 = vst [vmem:[#allocation2 + $0x4f8] sm:$0xff] %v3562_v39  ;;  %3043 = vst [vmem:[#allocation2 + $0x6c0] sm:$0xfe] %v8504_v35  ;;  %v3131_v41 = vld [vmem:[#allocation3 + $0xa1] sm:$0xff]  ;;  %v3132_v33 = vld [vmem:[#allocation3 + $0xa9] sm:$0x7f]  ;;  %4375 = vmatmul.mubr.f32.gmra.mrb[76].mxu1 %v3959_v46  ;;  %v6416_v17 = vadd.f32 %v8489_v19, %v2563_v1 }
 0x364   : > { %3337 = vst [vmem:[#allocation2 + $0x648] sm:$0xfe] %v8504_v35  ;;  %3631 = vst [vmem:[#allocation2 + $0x5d0] sm:$0xfe] %v8504_v35  ;;  %v2977_v45 = vrot.slane %v2907_v15, 7  ;;  %4379 = vmatprep.mubr.f32.mxu1 %v8484_v51  ;;  %v2846_v53 = vmax.f32 %v2784_v63, 0.0 }
 0x365   : > { %v3192_v32 = vld [vmem:[#allocation3 + $0xa8] sm:$0x7f]  ;;  %3161 = vst [vmem:[#allocation2 + $0x640] sm:$0xff] %v3131_v41  ;;  %3162 = vst [vmem:[#allocation2 + $0x688] sm:$0x7f] %v3132_v33  ;;  %v2565_v54 = vpop.f32.mrb[51].mxu0  ;;  %v2789_v29 = vadd.f32 %v6416_v17, %v8261_v30 }
 0x366   : > { %v3432_v60 = vld [vmem:[#allocation3 + $0xa9] sm:$0x7f]  ;;  %3463 = vst [vmem:[#allocation2 + $0x5c8] sm:$0xff] %v3131_v41  ;;  %2877 = vst [vmem:[#allocation3 + $0xb8] sm:$0xff] %v8512_v27  ;;  %v3266_v7 = vrot.slane %v3192_v32, 7  ;;  %v2978_v56 = vsel %vm441_vm0, %v8476_v11, %v2977_v45  ;;  %v8527_v51 = vrot.slane %v2846_v53, 7 }
 0x367   : > { %3402 = vst [vmem:[#allocation2 + $0x698] sm:$0xff] %v8512_v27  ;;  %3692 = vst [vmem:[#allocation2 + $0x620] sm:$0xff] %v8512_v27  ;;  %v3495_v43 = vld [vmem:[#allocation3 + $0xa8] sm:$0x7f]  ;;  %4380 = vmatmul.mubr.f32.gmra.mrb[78].mxu1 %v2978_v56  ;;  %v2568_v28 = vpop.f32.mrb[52].mxu0  ;;  %v2847_v2 = vmax.f32 %v2789_v29, 0.0 }
 0x368   : > { %v3720_v31 = vld [vmem:[#allocation3 + $0xa9] sm:$0x7f]  ;;  %3464 = vst [vmem:[#allocation2 + $0x610] sm:$0x7f] %v3432_v60  ;;  %v3564_v18 = vrot.slane %v3495_v43, 7  ;;  %v8525_v24 = vsel %vm441_vm0, %v8476_v11, %v3266_v7  ;;  %2878 = vst [vmem:[#allocation3 + $0xc0] sm:$0xff] %v2846_v53  ;;  %4384 = vmatprep.mubr.f32.mxu1 %v2844_v5  ;;  %v6417_v12 = vadd.f32 %v8489_v19, %v2568_v28 }
 0x369   : > { %3750 = vst [vmem:[#allocation2 + $0x598] sm:$0x7f] %v3720_v31  ;;  %v3922_v16 = vld [vmem:[#allocation2 + $0x508] sm:$0xff]  ;;  %3403 = vst [vmem:[#allocation2 + $0x6e0] sm:$0xff] %v2846_v53  ;;  %v2570_v58 = vpop.f32.mrb[53].mxu0 }
 0x36a   : > { %5904 = vmatmul.mubr.f32.gmra.mrb[80].mxu0 %v3922_v16  ;;  %3693 = vst [vmem:[#allocation2 + $0x668] sm:$0xff] %v2846_v53  ;;  %v3565_v49 = vsel %vm441_vm0, %v8476_v11, %v3564_v18  ;;  %v3977_v50 = vld [vmem:[#allocation2 + $0x6c0] sm:$0xff]  ;;  %3045 = vst [vmem:[#allocation2 + $0x750] sm:$0xfe] %v8527_v51  ;;  %v2794_v5 = vadd.f32 %v6417_v12, %v8268_v47  ;;  %v2573_v62 = vpop.f32.mrb[54].mxu0 }
 0x36b   : > { %5906 = vmatprep.mubr.f32.mxu0 %v3131_v41  ;;  %3630 = vst [vmem:[#allocation2 + $0x588] sm:$0xff] %v3565_v49  ;;  %3339 = vst [vmem:[#allocation2 + $0x6d8] sm:$0xfe] %v8527_v51  ;;  %4385 = vmatmul.mubr.f32.gmra.mrb[80].mxu1 %v3977_v50  ;;  %v6418_v57 = vadd.f32 %v8489_v19, %v2573_v62  ;;  %v2575_v10 = vpop.f32.mrb[55].mxu0 }
 0x36c   : > { %3633 = vst [vmem:[#allocation2 + $0x660] sm:$0xfe] %v8527_v51  ;;  %2879 = vst [vmem:[#allocation3 + $0xc8] sm:$0xff] %v2847_v2  ;;  %4389 = vmatprep.mubr.f32.mxu1 %v8512_v27  ;;  %v2848_v39 = vmax.f32 %v2794_v5, 0.0 }
 0x36d   : > { %v2909_v22 = vld [vmem:[#allocation3 + $0xb8] sm:$0x7f]  ;;  %3404 = vst [vmem:[#allocation2 + $0x728] sm:$0xff] %v2847_v2  ;;  %3694 = vst [vmem:[#allocation2 + $0x6b0] sm:$0xff] %v2847_v2  ;;  %v2799_v15 = vadd.f32 %v6418_v57, %v8266_v25 }
 0x36e   : > { %v8536_v30 = vld [vmem:[#allocation3 + $0xb1] sm:$0xff]  ;;  %v3134_v21 = vld [vmem:[#allocation3 + $0xb9] sm:$0x7f]  ;;  %v2980_v37 = vrot.slane %v2909_v22, 7  ;;  %2880 = vst [vmem:[#allocation3 + $0xd0] sm:$0xff] %v2848_v39  ;;  %v8548_v27 = vrot.slane %v2848_v39, 7 }
 0x36f   : > { %v3194_v11 = vld [vmem:[#allocation3 + $0xb8] sm:$0x7f]  ;;  %3164 = vst [vmem:[#allocation2 + $0x718] sm:$0x7f] %v3134_v21  ;;  %3465 = vst [vmem:[#allocation2 + $0x658] sm:$0xff] %v8536_v30  ;;  %v2578_v33 = vpop.f32.mrb[56].mxu0 }
 0x370   : > { %v3434_v44 = vld [vmem:[#allocation3 + $0xb9] sm:$0x7f]  ;;  %v3269_v8 = vrot.slane %v3194_v11, 7  ;;  %v2981_v14 = vsel %vm441_vm0, %v8504_v35, %v2980_v37  ;;  %3405 = vst [vmem:[#allocation2 + $0x770] sm:$0xff] %v2848_v39  ;;  %3695 = vst [vmem:[#allocation2 + $0x6f8] sm:$0xff] %v2848_v39  ;;  %v8557_v32 = vmax.f32 %v2799_v15, 0.0  ;;  %v6419_v60 = vadd.f32 %v8489_v19, %v2578_v33 }
 0x371   : > { %v3497_v20 = vld [vmem:[#allocation3 + $0xb8] sm:$0x7f]  ;;  %3466 = vst [vmem:[#allocation2 + $0x6a0] sm:$0x7f] %v3434_v44  ;;  %4390 = vmatmul.mubr.f32.gmra.mrb[82].mxu1 %v2981_v14  ;;  %v3995_v45 = vld [vmem:[#allocation2 + $0x750] sm:$0xff]  ;;  %v2580_v25 = vpop.f32.mrb[57].mxu0 }
 0x372   : > { %v3722_v55 = vld [vmem:[#allocation3 + $0xb9] sm:$0x7f]  ;;  %v3567_v23 = vrot.slane %v3497_v20, 7  ;;  %v8546_v47 = vsel %vm441_vm0, %v8504_v35, %v3269_v8  ;;  %4394 = vmatprep.mubr.f32.mxu1 %v2846_v53  ;;  %3047 = vst [vmem:[#allocation2 + $0x7e0] sm:$0xfe] %v8548_v27  ;;  %2881 = vst [vmem:[#allocation3 + $0xd8] sm:$0xff] %v8557_v32  ;;  %v2804_v18 = vadd.f32 %v6419_v60, %v8273_v6 }
 0x373   : > { %3752 = vst [vmem:[#allocation2 + $0x628] sm:$0x7f] %v3722_v55  ;;  %v3940_v46 = vld [vmem:[#allocation2 + $0x598] sm:$0xff]  ;;  %3341 = vst [vmem:[#allocation2 + $0x768] sm:$0xfe] %v8548_v27  ;;  %v8560_v7 = vld [vmem:[#allocation3 + $0xc1] sm:$0xff] }
 0x374   : > { %5907 = vmatmul.mubr.f32.gmra.mrb[82].mxu0 %v3940_v46  ;;  %v3568_v41 = vsel %vm441_vm0, %v8504_v35, %v3567_v23  ;;  %3635 = vst [vmem:[#allocation2 + $0x6f0] sm:$0xfe] %v8548_v27  ;;  %v2911_v63 = vld [vmem:[#allocation3 + $0xc8] sm:$0x7f]  ;;  %3467 = vst [vmem:[#allocation2 + $0x6e8] sm:$0xff] %v8560_v7  ;;  %v2583_v54 = vpop.f32.mrb[58].mxu0 }
 0x375   : > { %5909 = vmatprep.mubr.f32.mxu0 %v8536_v30  ;;  %3632 = vst [vmem:[#allocation2 + $0x618] sm:$0xff] %v3568_v41  ;;  %v3136_v43 = vld [vmem:[#allocation3 + $0xc9] sm:$0x7f]  ;;  %4395 = vmatmul.mubr.f32.gmra.mrb[84].mxu1 %v3995_v45  ;;  %v2983_v35 = vrot.slane %v2911_v63, 7  ;;  %3406 = vst [vmem:[#allocation2 + $0x7b8] sm:$0xff] %v8557_v32  ;;  %v2850_v29 = vmax.f32 %v2804_v18, 0.0  ;;  %v6420_v49 = vadd.f32 %v8489_v19, %v2583_v54 }
 0x376   : > { %v3196_v31 = vld [vmem:[#allocation3 + $0xc8] sm:$0x7f]  ;;  %3166 = vst [vmem:[#allocation2 + $0x7a8] sm:$0x7f] %v3136_v43  ;;  %3696 = vst [vmem:[#allocation2 + $0x740] sm:$0xff] %v8557_v32  ;;  %4399 = vmatprep.mubr.f32.mxu1 %v2847_v2  ;;  %v2585_v50 = vpop.f32.mrb[59].mxu0 }
 0x377   : > { %v3436_v1 = vld [vmem:[#allocation3 + $0xc9] sm:$0x7f]  ;;  %v3272_v53 = vrot.slane %v3196_v31, 7  ;;  %v2984_v12 = vsel %vm441_vm0, %v8527_v51, %v2983_v35  ;;  %2882 = vst [vmem:[#allocation3 + $0xe0] sm:$0xff] %v2850_v29  ;;  %v8574_v2 = vrot.slane %v2850_v29, 7  ;;  %3407 = vst [vmem:[#allocation2 + $0x800] sm:$0xff] %v2850_v29  ;;  %v2809_v58 = vadd.f32 %v6420_v49, %v8271_v3 }
 0x378   : > { %v3499_v17 = vld [vmem:[#allocation3 + $0xc8] sm:$0x7f]  ;;  %3468 = vst [vmem:[#allocation2 + $0x730] sm:$0x7f] %v3436_v1  ;;  %3697 = vst [vmem:[#allocation2 + $0x788] sm:$0xff] %v2850_v29  ;;  %v2588_v21 = vpop.f32.mrb[60].mxu0 }
 0x379   : > { %v3724_v16 = vld [vmem:[#allocation3 + $0xc9] sm:$0x7f]  ;;  %v3570_v56 = vrot.slane %v3499_v17, 7  ;;  %4400 = vmatmul.mubr.f32.gmra.mrb[86].mxu1 %v2984_v12  ;;  %v8572_v6 = vsel %vm441_vm0, %v8527_v51, %v3272_v53  ;;  %v4013_v37 = vld [vmem:[#allocation2 + $0x7e0] sm:$0xff]  ;;  %3049 = vst [vmem:[#allocation2 + $0x870] sm:$0xfe] %v8574_v2  ;;  %v6421_v44 = vadd.f32 %v8489_v19, %v2588_v21 }
 0x37a   : > { %3754 = vst [vmem:[#allocation2 + $0x6b8] sm:$0x7f] %v3724_v16  ;;  %v3958_v28 = vld [vmem:[#allocation2 + $0x628] sm:$0xff]  ;;  %4404 = vmatprep.mubr.f32.mxu1 %v2848_v39  ;;  %3343 = vst [vmem:[#allocation2 + $0x7f8] sm:$0xfe] %v8574_v2  ;;  %v2851_v11 = vmax.f32 %v2809_v58, 0.0 }
 0x37b   : > { %5910 = vmatmul.mubr.f32.gmra.mrb[84].mxu0 %v3958_v28  ;;  %v3571_v22 = vsel %vm441_vm0, %v8527_v51, %v3570_v56  ;;  %3637 = vst [vmem:[#allocation2 + $0x780] sm:$0xfe] %v8574_v2  ;;  %v2590_v5 = vpop.f32.mrb[61].mxu0  ;;  %v2913_v3 = vld [vmem:[#allocation3 + $0xd8] sm:$0x7f]  ;;  %v2814_v23 = vadd.f32 %v6421_v44, %v8278_v26  ;;  %v4114_v56 = vld [vmem:[#allocation9 + $0x208] sm:$0xff] }
 0x37c   : > { %5912 = vmatprep.mubr.f32.mxu0 %v8560_v7  ;;  %3634 = vst [vmem:[#allocation2 + $0x6a8] sm:$0xff] %v3571_v22  ;;  %v8584_v8 = vld [vmem:[#allocation3 + $0xd1] sm:$0xff]  ;;  %v3138_v20 = vld [vmem:[#allocation3 + $0xd9] sm:$0x7f]  ;;  %v2986_v55 = vrot.slane %v2913_v3, 7  ;;  %2883 = vst [vmem:[#allocation3 + $0xe8] sm:$0xff] %v2851_v11 }
 0x37d   : > { %4405 = vmatmul.mubr.f32.gmra.mrb[88].mxu1 %v4013_v37  ;;  %v3198_v51 = vld [vmem:[#allocation3 + $0xd8] sm:$0x7f]  ;;  %3168 = vst [vmem:[#allocation2 + $0x838] sm:$0x7f] %v3138_v20  ;;  %3469 = vst [vmem:[#allocation2 + $0x778] sm:$0xff] %v8584_v8  ;;  %v2593_v10 = vpop.f32.mrb[62].mxu0 }
 0x37e   : > { %v3438_v62 = vld [vmem:[#allocation3 + $0xd9] sm:$0x7f]  ;;  %3755 = vst [vmem:[#allocation2 + $0x700] sm:$0xff] %v8584_v8  ;;  %3408 = vst [vmem:[#allocation2 + $0x848] sm:$0xff] %v2851_v11  ;;  %4409 = vmatprep.mubr.f32.mxu1 %v8557_v32  ;;  %v3275_v39 = vrot.slane %v3198_v51, 7  ;;  %v2852_v15 = vmax.f32 %v2814_v23, 0.0  ;;  %v6422_v41 = vadd.f32 %v8489_v19, %v2593_v10  ;;  %v2987_v60 = vsel %vm441_vm0, %v8548_v27, %v2986_v55 }
 0x37f   : > { %3698 = vst [vmem:[#allocation2 + $0x7d0] sm:$0xff] %v2851_v11  ;;  %v3501_v57 = vld [vmem:[#allocation3 + $0xd8] sm:$0x7f]  ;;  %3470 = vst [vmem:[#allocation2 + $0x7c0] sm:$0x7f] %v3438_v62  ;;  %v2595_v45 = vpop.f32.mrb[63].mxu0 }
 0x380   : > { %v3726_v46 = vld [vmem:[#allocation3 + $0xd9] sm:$0x7f]  ;;  %v3573_v14 = vrot.slane %v3501_v57, 7  ;;  %v8595_v26 = vsel %vm441_vm0, %v8548_v27, %v3275_v39  ;;  %2884 = vst [vmem:[#allocation3 + $0xf0] sm:$0xff] %v2852_v15  ;;  %v8597_v32 = vrot.slane %v2852_v15, 7  ;;  %3409 = vst [vmem:[#allocation2 + $0x890] sm:$0xff] %v2852_v15  ;;  %v2819_v25 = vadd.f32 %v6422_v41, %v8276_v40 }
 0x381   : > { %3756 = vst [vmem:[#allocation2 + $0x748] sm:$0x7f] %v3726_v46  ;;  %v3976_v33 = vld [vmem:[#allocation2 + $0x6b8] sm:$0xff]  ;;  %4410 = vmatmul.mubr.f32.gmra.mrb[90].mxu1 %v2987_v60  ;;  %3699 = vst [vmem:[#allocation2 + $0x818] sm:$0xff] %v2852_v15  ;;  %v4031_v63 = vld [vmem:[#allocation2 + $0x870] sm:$0xff] }
 0x382   : > { %5913 = vmatmul.mubr.f32.gmra.mrb[86].mxu0 %v3976_v33  ;;  %4414 = vmatprep.mubr.f32.mxu1 %v2850_v29  ;;  %v3574_v19 = vsel %vm441_vm0, %v8548_v27, %v3573_v14  ;;  %3345 = vst [vmem:[#allocation2 + $0x888] sm:$0xfe] %v8597_v32  ;;  %3639 = vst [vmem:[#allocation2 + $0x810] sm:$0xfe] %v8597_v32  ;;  %v2853_v43 = vmax.f32 %v2819_v25, 0.0  ;;  %v4113_v40 = vld [vmem:[#allocation9 + $0x200] sm:$0xff] }
 0x383   : > { %3636 = vst [vmem:[#allocation2 + $0x738] sm:$0xff] %v3574_v19  ;;  %v2915_v35 = vld [vmem:[#allocation3 + $0xe8] sm:$0x7f]  ;;  %v3764_v28 = vld [vmem:[#allocation2 + $0x18] sm:$0xff]  ;;  %v6248_v12 = vpack.c.bf16 %v4114_v56, %v4113_v40  ;;  %v4115_v22 = vld [vmem:[#allocation9 + $0x210] sm:$0xff] }
 0x384   : > { %v8604_v31 = vld [vmem:[#allocation3 + $0xe1] sm:$0xff]  ;;  %v3140_v1 = vld [vmem:[#allocation3 + $0xe9] sm:$0x7f]  ;;  %v2989_v18 = vrot.slane %v2915_v35, 7  ;;  %2885 = vst [vmem:[#allocation3 + $0xf8] sm:$0xff] %v2853_v43  ;;  %3410 = vst [vmem:[#allocation2 + $0x8d8] sm:$0xff] %v2853_v43 }
 0x385   : > { %4415 = vmatmul.mubr.f32.gmra.mrb[92].mxu1 %v4031_v63  ;;  %v3200_v53 = vld [vmem:[#allocation3 + $0xe8] sm:$0x7f]  ;;  %3170 = vst [vmem:[#allocation2 + $0x8c8] sm:$0x7f] %v3140_v1  ;;  %3471 = vst [vmem:[#allocation2 + $0x808] sm:$0xff] %v8604_v31  ;;  %v4116_v21 = vld [vmem:[#allocation9 + $0x218] sm:$0xff] }
 0x386   : > { %v3440_v17 = vld [vmem:[#allocation3 + $0xe9] sm:$0x7f]  ;;  %3757 = vst [vmem:[#allocation2 + $0x790] sm:$0xff] %v8604_v31  ;;  %3700 = vst [vmem:[#allocation2 + $0x860] sm:$0xff] %v2853_v43  ;;  %4419 = vmatprep.mubr.f32.mxu1 %v2851_v11  ;;  %v3278_v27 = vrot.slane %v3200_v53, 7  ;;  %v2990_v49 = vsel %vm441_vm0, %v8574_v2, %v2989_v18  ;;  %v6917_v51 = vld [vmem:[#allocation2 + $0x60] sm:$0xff] }
 0x387   : > { %v3503_v16 = vld [vmem:[#allocation3 + $0xe8] sm:$0x7f]  ;;  %3472 = vst [vmem:[#allocation2 + $0x850] sm:$0x7f] %v3440_v17  ;;  %v3772_v62 = vld [vmem:[#allocation2 + $0x58] sm:$0xff]  ;;  %v4117_v39 = vld [vmem:[#allocation9 + $0x220] sm:$0xff] }
 0x388   : > { %v3728_v54 = vld [vmem:[#allocation3 + $0xe9] sm:$0x7f]  ;;  %v3576_v29 = vrot.slane %v3503_v16, 7  ;;  %v8612_v50 = vsel %vm441_vm0, %v8574_v2, %v3278_v27  ;;  %v4119_v41 = vld [vmem:[#allocation9 + $0x230] sm:$0xff]  ;;  %v4120_v33 = vld [vmem:[#allocation9 + $0x238] sm:$0xff] }
 0x389   : > { %3758 = vst [vmem:[#allocation2 + $0x7d8] sm:$0x7f] %v3728_v54  ;;  %4420 = vmatmul.mubr.f32.gmra.mrb[94].mxu1 %v2990_v49  ;;  %v6916_v5 = vld [vmem:[#allocation2 + $0x8] sm:$0xff]  ;;  %v3781_v45 = vld [vmem:[#allocation2 + $0xa0] sm:$0xff]  ;;  %v6918_v60 = vld [vmem:[#allocation2 + $0xf0] sm:$0xff]  ;;  %v6257_v25 = vpack.c.bf16 %v4120_v33, %v4119_v41 }
 0x38a   : > { %4489 = vmatprep.mubr.f32.mxu1 %v3764_v28  ;;  %v3577_v58 = vsel %vm441_vm0, %v8574_v2, %v3576_v29  ;;  %v6251_v2 = vpack.c.bf16 %v4116_v21, %v4115_v22  ;;  %v4118_v57 = vld [vmem:[#allocation9 + $0x228] sm:$0xff]  ;;  %v4121_v19 = vld [vmem:[#allocation9 + $0x240] sm:$0xff]  ;;  %v4123_v1 = vld [vmem:[#allocation9 + $0x250] sm:$0xff] }
 0x38b   : > { %3638 = vst [vmem:[#allocation2 + $0x7c8] sm:$0xff] %v3577_v58  ;;  %v3202_v37 = vld [vmem:[#allocation3 + $0xf8] sm:$0x7f]  ;;  %v3782_v10 = vld [vmem:[#allocation2 + $0xa8] sm:$0xff]  ;;  %v6254_v15 = vpack.c.bf16 %v4118_v57, %v4117_v39  ;;  %v3799_v53 = vld [vmem:[#allocation2 + $0x130] sm:$0xff] }
 0x38c   : > { %v8616_v11 = vld [vmem:[#allocation3 + $0xf1] sm:$0xff]  ;;  %v3442_v44 = vld [vmem:[#allocation3 + $0xf9] sm:$0x7f]  ;;  %v3281_v3 = vrot.slane %v3202_v37, 7  ;;  %v4122_v63 = vld [vmem:[#allocation9 + $0x248] sm:$0xff] }
 0x38d   : > { %4490 = vmatmul.mubr.f32.vlgmr.msra.gmra.mrb[32].mxu1 %v6916_v5  ;;  %v3505_v20 = vld [vmem:[#allocation3 + $0xf8] sm:$0x7f]  ;;  %3474 = vst [vmem:[#allocation2 + $0x8e0] sm:$0x7f] %v3442_v44  ;;  %3759 = vst [vmem:[#allocation2 + $0x820] sm:$0xff] %v8616_v11  ;;  %v3790_v43 = vld [vmem:[#allocation2 + $0xe8] sm:$0xff]  ;;  %v6260_v35 = vpack.c.bf16 %v4122_v63, %v4121_v19 }
 0x38e   : > { %v3730_v55 = vld [vmem:[#allocation3 + $0xf9] sm:$0x7f]  ;;  %4494 = vmatprep.mubr.f32.mxu1 %v6917_v51  ;;  %6249 = vmatpush1.bf16.msra.mxu1 %v6248_v12  ;;  %v3579_v23 = vrot.slane %v3505_v20, 7  ;;  %v8622_v46 = vsel %vm441_vm0, %v8597_v32, %v3281_v3  ;;  %v6919_v17 = vld [vmem:[#allocation2 + $0x180] sm:$0xff]  ;;  %v4126_v16 = vld [vmem:[#allocation9 + $0x268] sm:$0xff] }
 0x38f   : > { %3760 = vst [vmem:[#allocation2 + $0x868] sm:$0x7f] %v3730_v55  ;;  %6250 = vmatprep.subr.bf16.mxu1 %v7103_v0  ;;  %v4124_v18 = vld [vmem:[#allocation9 + $0x258] sm:$0xff]  ;;  %v4125_v27 = vld [vmem:[#allocation9 + $0x260] sm:$0xff]  ;;  %v3818_v56 = vld [vmem:[#allocation2 + $0x1c8] sm:$0xff] }
 0x390   : > { %v3580_v14 = vsel %vm441_vm0, %v8597_v32, %v3579_v23  ;;  %v3800_v32 = vld [vmem:[#allocation2 + $0x138] sm:$0xff]  ;;  %v6263_v40 = vpack.c.bf16 %v4124_v18, %v4123_v1  ;;  %v6266_v29 = vpack.c.bf16 %v4126_v16, %v4125_v27  ;;  %v4127_v49 = vld [vmem:[#allocation9 + $0x270] sm:$0xff]  ;;  %v3817_v12 = vld [vmem:[#allocation2 + $0x1c0] sm:$0xff] }
 0x391   : > { %4495 = vmatmul.mubr.f32.gmra.mrb[34].mxu1 %v3772_v62  ;;  %3640 = vst [vmem:[#allocation2 + $0x858] sm:$0xff] %v3580_v14  ;;  %v3808_v54 = vld [vmem:[#allocation2 + $0x178] sm:$0xff]  ;;  %v6920_v58 = vld [vmem:[#allocation2 + $0x210] sm:$0xff]  ;;  %v4129_v21 = vld [vmem:[#allocation9 + $0x280] sm:$0xff] }
 0x392   : > { %4499 = vmatprep.mubr.f32.mxu1 %v3782_v10  ;;  %6252 = vmatpush1.bf16.msra.mxu1 %v6251_v2  ;;  %v4128_v28 = vld [vmem:[#allocation9 + $0x278] sm:$0xff]  ;;  %v4130_v37 = vld [vmem:[#allocation9 + $0x288] sm:$0xff]  ;;  %v4131_v20 = vld [vmem:[#allocation9 + $0x290] sm:$0xff] }
 0x393   : > { %6253 = vmatprep.subr.bf16.mxu1 %v7103_v0  ;;  %v6269_v22 = vpack.c.bf16 %v4128_v28, %v4127_v49  ;;  %v3826_v44 = vld [vmem:[#allocation2 + $0x208] sm:$0xff]  ;;  %v3836_v5 = vld [vmem:[#allocation2 + $0x258] sm:$0xff]  ;;  %v6272_v3 = vpack.c.bf16 %v4130_v37, %v4129_v21  ;;  %v3835_v51 = vld [vmem:[#allocation2 + $0x250] sm:$0xff] }
 0x394   : > { %v4132_v55 = vld [vmem:[#allocation9 + $0x298] sm:$0xff]  ;;  %v6921_v62 = vld [vmem:[#allocation2 + $0x2a0] sm:$0xff]  ;;  %v4134_v39 = vld [vmem:[#allocation9 + $0x2a8] sm:$0xff] }
 0x395   : > { %4500 = vmatmul.mubr.f32.gmra.mrb[36].mxu1 %v3781_v45  ;;  %v6275_v2 = vpack.c.bf16 %v4132_v55, %v4131_v20  ;;  %v4133_v23 = vld [vmem:[#allocation9 + $0x2a0] sm:$0xff]  ;;  %v3844_v57 = vld [vmem:[#allocation2 + $0x298] sm:$0xff]  ;;  %v3854_v10 = vld [vmem:[#allocation2 + $0x2e8] sm:$0xff] }
 0x396   : > { %4504 = vmatprep.mubr.f32.mxu1 %v6918_v60  ;;  %6255 = vmatpush1.bf16.msra.mxu1 %v6254_v15  ;;  %v6278_v14 = vpack.c.bf16 %v4134_v39, %v4133_v23  ;;  %v4135_v15 = vld [vmem:[#allocation9 + $0x2b0] sm:$0xff]  ;;  %v4136_v41 = vld [vmem:[#allocation9 + $0x2b8] sm:$0xff]  ;;  %v3853_v33 = vld [vmem:[#allocation2 + $0x2e0] sm:$0xff] }
 0x397   : > { %6256 = vmatprep.subr.bf16.mxu1 %v7103_v0  ;;  %v6922_v45 = vld [vmem:[#allocation2 + $0x330] sm:$0xff]  ;;  %v6281_v60 = vpack.c.bf16 %v4136_v41, %v4135_v15  ;;  %v4138_v19 = vld [vmem:[#allocation9 + $0x2c8] sm:$0xff]  ;;  %v4140_v1 = vld [vmem:[#allocation9 + $0x2d8] sm:$0xff] }
 0x398   : > { %v3862_v63 = vld [vmem:[#allocation2 + $0x328] sm:$0xff]  ;;  %v3871_v18 = vld [vmem:[#allocation2 + $0x370] sm:$0xff]  ;;  %v3880_v16 = vld [vmem:[#allocation2 + $0x3b8] sm:$0xff] }
 0x399   : > { %4505 = vmatmul.mubr.f32.gmra.mrb[38].mxu1 %v3790_v43  ;;  %v3872_v43 = vld [vmem:[#allocation2 + $0x378] sm:$0xff]  ;;  %v4142_v27 = vld [vmem:[#allocation9 + $0x2e8] sm:$0xff]  ;;  %v3889_v28 = vld [vmem:[#allocation2 + $0x400] sm:$0xff] }
 0x39a   : > { %4509 = vmatprep.mubr.f32.mxu1 %v3800_v32  ;;  %6258 = vmatpush1.bf16.msra.mxu1 %v6257_v25  ;;  %v4137_v25 = vld [vmem:[#allocation9 + $0x2c0] sm:$0xff]  ;;  %v4144_v49 = vld [vmem:[#allocation9 + $0x2f8] sm:$0xff]  ;;  %v3907_v21 = vld [vmem:[#allocation2 + $0x490] sm:$0xff] }
 0x39b   : > { %6259 = vmatprep.subr.bf16.mxu1 %v7103_v0  ;;  %v6284_v32 = vpack.c.bf16 %v4138_v19, %v4137_v25  ;;  %v3916_v37 = vld [vmem:[#allocation2 + $0x4d8] sm:$0xff]  ;;  %v3943_v20 = vld [vmem:[#allocation2 + $0x5b0] sm:$0xff]  ;;  %v3998_v23 = vld [vmem:[#allocation2 + $0x768] sm:$0xff] }
 0x39c   : > { %v3952_v55 = vld [vmem:[#allocation2 + $0x5f8] sm:$0xff]  ;;  %v4042_v15 = vld [vmem:[#allocation2 + $0x8c8] sm:$0xff]  ;;  %v3775_v19 = vld [vmem:[#allocation2 + $0x70] sm:$0xff] }
 0x39d   : > { %4510 = vmatmul.mubr.f32.gmra.mrb[40].mxu1 %v3799_v53  ;;  %v6923_v53 = vld [vmem:[#allocation2 + $0x3c0] sm:$0xff]  ;;  %v4016_v39 = vld [vmem:[#allocation2 + $0x7f8] sm:$0xff]  ;;  %v3766_v41 = vld [vmem:[#allocation2 + $0x28] sm:$0xff] }
 0x39e   : > { %4514 = vmatprep.mubr.f32.mxu1 %v6919_v17  ;;  %6261 = vmatpush1.bf16.msra.mxu1 %v6260_v35  ;;  %v4139_v35 = vld [vmem:[#allocation9 + $0x2d0] sm:$0xff] }
 0x39f   : > { %6262 = vmatprep.subr.bf16.mxu1 %v7103_v0  ;;  %v6287_v17 = vpack.c.bf16 %v4140_v1, %v4139_v35  ;;  %v4151_v1 = vld [vmem:[#allocation9 + $0x330] sm:$0xff] }
 0x3a1   : > { %4515 = vmatmul.mubr.f32.gmra.mrb[42].mxu1 %v3808_v54  ;;  %v3890_v54 = vld [vmem:[#allocation2 + $0x408] sm:$0xff] }
 0x3a2   : > { %4519 = vmatprep.mubr.f32.mxu1 %v3818_v56  ;;  %6264 = vmatpush1.bf16.msra.mxu1 %v6263_v40  ;;  %v4141_v40 = vld [vmem:[#allocation9 + $0x2e0] sm:$0xff] }
 0x3a3   : > { %6265 = vmatprep.subr.bf16.mxu1 %v7103_v0  ;;  %v6290_v56 = vpack.c.bf16 %v4142_v27, %v4141_v40  ;;  %v3793_v27 = vld [vmem:[#allocation2 + $0x100] sm:$0xff] }
 0x3a5   : > { %4520 = vmatmul.mubr.f32.gmra.mrb[44].mxu1 %v3817_v12 }
 0x3a6   : > { %4524 = vmatprep.mubr.f32.mxu1 %v6920_v58  ;;  %6267 = vmatpush1.bf16.msra.mxu1 %v6266_v29  ;;  %v4143_v29 = vld [vmem:[#allocation9 + $0x2f0] sm:$0xff]  ;;  %v3898_v58 = vld [vmem:[#allocation2 + $0x448] sm:$0xff] }
 0x3a7   : > { %6268 = vmatprep.subr.bf16.mxu1 %v7103_v0  ;;  %v6293_v12 = vpack.c.bf16 %v4144_v49, %v4143_v29  ;;  %v3792_v29 = vld [vmem:[#allocation2 + $0xf8] sm:$0xff]  ;;  %v3802_v49 = vld [vmem:[#allocation2 + $0x148] sm:$0xff] }
 0x3a9   : > { %4525 = vmatmul.mubr.f32.gmra.mrb[46].mxu1 %v3826_v44  ;;  %v3926_v44 = vld [vmem:[#allocation2 + $0x528] sm:$0xff] }
 0x3aa   : > { %4529 = vmatprep.mubr.f32.mxu1 %v3836_v5  ;;  %6270 = vmatpush1.bf16.msra.mxu1 %v6269_v22  ;;  %v3908_v22 = vld [vmem:[#allocation2 + $0x498] sm:$0xff]  ;;  %v3934_v5 = vld [vmem:[#allocation2 + $0x568] sm:$0xff] }
 0x3ab   : > { %6271 = vmatprep.subr.bf16.mxu1 %v7103_v0 }
 0x3ad   : > { %4530 = vmatmul.mubr.f32.gmra.mrb[48].mxu1 %v3835_v51  ;;  %v3962_v51 = vld [vmem:[#allocation2 + $0x648] sm:$0xff] }
 0x3ae   : > { %4534 = vmatprep.mubr.f32.mxu1 %v6921_v62  ;;  %6273 = vmatpush1.bf16.msra.mxu1 %v6272_v3  ;;  %v3944_v3 = vld [vmem:[#allocation2 + $0x5b8] sm:$0xff]  ;;  %v3970_v62 = vld [vmem:[#allocation2 + $0x688] sm:$0xff] }
 0x3af   : > { %6274 = vmatprep.subr.bf16.mxu1 %v7103_v0 }
 0x3b1   : > { %4535 = vmatmul.mubr.f32.gmra.mrb[50].mxu1 %v3844_v57 }
 0x3b2   : > { %4539 = vmatprep.mubr.f32.mxu1 %v3854_v10  ;;  %6276 = vmatpush1.bf16.msra.mxu1 %v6275_v2  ;;  %v3980_v2 = vld [vmem:[#allocation2 + $0x6d8] sm:$0xff] }
 0x3b3   : > { %6277 = vmatprep.subr.bf16.mxu1 %v7103_v0 }
 0x3b5   : > { %4540 = vmatmul.mubr.f32.gmra.mrb[52].mxu1 %v3853_v33  ;;  %v4148_v33 = vld [vmem:[#allocation9 + $0x318] sm:$0xff] }
 0x3b6   : > { %4544 = vmatprep.mubr.f32.mxu1 %v6922_v45  ;;  %6279 = vmatpush1.bf16.msra.mxu1 %v6278_v14  ;;  %v4146_v14 = vld [vmem:[#allocation9 + $0x308] sm:$0xff] }
 0x3b7   : > { %6280 = vmatprep.subr.bf16.mxu1 %v7103_v0 }
 0x3b9   : > { %4545 = vmatmul.mubr.f32.gmra.mrb[54].mxu1 %v3862_v63  ;;  %v4150_v63 = vld [vmem:[#allocation9 + $0x328] sm:$0xff] }
 0x3ba   : > { %4549 = vmatprep.mubr.f32.mxu1 %v3872_v43  ;;  %6282 = vmatpush1.bf16.msra.mxu1 %v6281_v60  ;;  %v3765_v60 = vld [vmem:[#allocation2 + $0x20] sm:$0xff]  ;;  %v3774_v43 = vld [vmem:[#allocation2 + $0x68] sm:$0xff] }
 0x3bb   : > { %6283 = vmatprep.subr.bf16.mxu1 %v7103_v0 }
 0x3bd   : > { %4550 = vmatmul.mubr.f32.gmra.mrb[56].mxu1 %v3871_v18  ;;  %v4152_v18 = vld [vmem:[#allocation9 + $0x338] sm:$0xff] }
 0x3be   : > { %4554 = vmatprep.mubr.f32.mxu1 %v6923_v53  ;;  %6285 = vmatpush1.bf16.msra.mxu1 %v6284_v32  ;;  %v3784_v32 = vld [vmem:[#allocation2 + $0xb8] sm:$0xff] }
 0x3bf   : > { %6286 = vmatprep.subr.bf16.mxu1 %v7103_v0 }
 0x3c1   : > { %4555 = vmatmul.mubr.f32.gmra.mrb[58].mxu1 %v3880_v16  ;;  %v6305_v16 = vpack.c.bf16 %v4152_v18, %v4151_v1  ;;  %v4167_v1 = vld [vmem:[#allocation9 + $0x3b0] sm:$0xff]  ;;  %v4168_v18 = vld [vmem:[#allocation9 + $0x3b8] sm:$0xff] }
 0x3c2   : > { %4559 = vmatprep.mubr.f32.mxu1 %v3890_v54  ;;  %6288 = vmatpush1.bf16.msra.mxu1 %v6287_v17  ;;  %v3783_v17 = vld [vmem:[#allocation2 + $0xb0] sm:$0xff]  ;;  %v4153_v54 = vld [vmem:[#allocation9 + $0x340] sm:$0xff] }
 0x3c3   : > { %6289 = vmatprep.subr.bf16.mxu1 %v7103_v0 }
 0x3c5   : > { %4560 = vmatmul.mubr.f32.gmra.mrb[60].mxu1 %v3889_v28 }
 0x3c6   : > { %4564 = vmatprep.mubr.f32.mxu1 %v8451_v34  ;;  %6291 = vmatpush1.bf16.msra.mxu1 %v6290_v56  ;;  %v3925_v34 = vld [vmem:[#allocation2 + $0x520] sm:$0xff]  ;;  %v4154_v56 = vld [vmem:[#allocation9 + $0x348] sm:$0xff] }
 0x3c7   : > { %6292 = vmatprep.subr.bf16.mxu1 %v7103_v0  ;;  %v6308_v28 = vpack.c.bf16 %v4154_v56, %v4153_v54  ;;  %v3865_v54 = vld [vmem:[#allocation2 + $0x340] sm:$0xff]  ;;  %v6329_v56 = vpack.c.bf16 %v4168_v18, %v4167_v1 }
 0x3c8   : > { %v3937_v18 = vld [vmem:[#allocation2 + $0x580] sm:$0xff] }
 0x3c9   : > { %4565 = vmatmul.mubr.f32.gmra.mrb[62].mxu1 %v3898_v58  ;;  %v4156_v58 = vld [vmem:[#allocation9 + $0x358] sm:$0xff] }
 0x3ca   : > { %4569 = vmatprep.mubr.f32.mxu1 %v3908_v22  ;;  %6294 = vmatpush1.bf16.msra.mxu1 %v6293_v12  ;;  %v4155_v12 = vld [vmem:[#allocation9 + $0x350] sm:$0xff] }
 0x3cb   : > { %6295 = vmatprep.subr.bf16.mxu1 %v7103_v0 }
 0x3cd   : > { %4570 = vmatmul.mubr.f32.gmra.mrb[64].mxu1 %v3907_v21  ;;  %v3801_v21 = vld [vmem:[#allocation2 + $0x140] sm:$0xff] }
 0x3ce   : > { %4574 = vmatprep.mubr.f32.mxu1 %v8474_v9  ;;  %v3961_v9 = vld [vmem:[#allocation2 + $0x640] sm:$0xff] }
 0x3d1   : > { %4575 = vmatmul.mubr.f32.gmra.mrb[66].mxu1 %v3916_v37 }
 0x3d2   : > { %4579 = vmatprep.mubr.f32.mxu1 %v3926_v44  ;;  %v3811_v44 = vld [vmem:[#allocation2 + $0x190] sm:$0xff] }
 0x3d5   : > { %4580 = vmatmul.mubr.f32.gmra.mrb[68].mxu1 %v3925_v34  ;;  %v6311_v34 = vpack.c.bf16 %v4156_v58, %v4155_v12  ;;  %v3874_v12 = vld [vmem:[#allocation2 + $0x388] sm:$0xff] }
 0x3d6   : > { %4584 = vmatprep.mubr.f32.mxu1 %v8502_v61  ;;  %v3988_v61 = vld [vmem:[#allocation2 + $0x718] sm:$0xff] }
 0x3d9   : > { %4585 = vmatmul.mubr.f32.gmra.mrb[70].mxu1 %v3934_v5  ;;  %v4157_v5 = vld [vmem:[#allocation9 + $0x360] sm:$0xff] }
 0x3da   : > { %4589 = vmatprep.mubr.f32.mxu1 %v3944_v3  ;;  %v4158_v3 = vld [vmem:[#allocation9 + $0x368] sm:$0xff] }
 0x3dd   : > { %4590 = vmatmul.mubr.f32.gmra.mrb[72].mxu1 %v3943_v20  ;;  %v3810_v20 = vld [vmem:[#allocation2 + $0x188] sm:$0xff] }
 0x3de   : > { %4594 = vmatprep.mubr.f32.mxu1 %v8525_v24  ;;  %v4006_v24 = vld [vmem:[#allocation2 + $0x7a8] sm:$0xff] }
 0x3e1   : > { %4595 = vmatmul.mubr.f32.gmra.mrb[74].mxu1 %v3952_v55  ;;  %v3820_v55 = vld [vmem:[#allocation2 + $0x1d8] sm:$0xff] }
 0x3e2   : > { %4599 = vmatprep.mubr.f32.mxu1 %v3962_v51  ;;  %v6314_v51 = vpack.c.bf16 %v4158_v3, %v4157_v5  ;;  %v3873_v5 = vld [vmem:[#allocation2 + $0x380] sm:$0xff] }
 0x3e5   : > { %4600 = vmatmul.mubr.f32.gmra.mrb[76].mxu1 %v3961_v9  ;;  %v4159_v9 = vld [vmem:[#allocation9 + $0x370] sm:$0xff] }
 0x3e6   : > { %4604 = vmatprep.mubr.f32.mxu1 %v8546_v47 }
 0x3e9   : > { %4605 = vmatmul.mubr.f32.gmra.mrb[78].mxu1 %v3970_v62  ;;  %v4160_v62 = vld [vmem:[#allocation9 + $0x378] sm:$0xff] }
 0x3ea   : > { %4609 = vmatprep.mubr.f32.mxu1 %v3980_v2 }
 0x3ed   : > { %4610 = vmatmul.mubr.f32.gmra.mrb[80].mxu1 %v8536_v30  ;;  %v4024_v30 = vld [vmem:[#allocation2 + $0x838] sm:$0xff] }
 0x3ee   : > { %4614 = vmatprep.mubr.f32.mxu1 %v8572_v6  ;;  %v4034_v6 = vld [vmem:[#allocation2 + $0x888] sm:$0xff] }
 0x3f1   : > { %4615 = vmatmul.mubr.f32.gmra.mrb[82].mxu1 %v3988_v61  ;;  %v3819_v61 = vld [vmem:[#allocation2 + $0x1d0] sm:$0xff] }
 0x3f2   : > { %4619 = vmatprep.mubr.f32.mxu1 %v3998_v23 }
 0x3f5   : > { %4620 = vmatmul.mubr.f32.gmra.mrb[84].mxu1 %v8560_v7 }
 0x3f6   : > { %4624 = vmatprep.mubr.f32.mxu1 %v8595_v26  ;;  %v4145_v26 = vld [vmem:[#allocation9 + $0x300] sm:$0xff] }
 0x3f9   : > { %4625 = vmatmul.mubr.f32.gmra.mrb[86].mxu1 %v4006_v24  ;;  %v3829_v24 = vld [vmem:[#allocation2 + $0x220] sm:$0xff] }
 0x3fa   : > { %4629 = vmatprep.mubr.f32.mxu1 %v4016_v39  ;;  %v8650_v47 = vpop.f32.mrb[64].mxu0  ;;  %v6317_v39 = vpack.c.bf16 %v4160_v62, %v4159_v9  ;;  %v4174_v9 = vld [vmem:[#allocation9 + $0x3e8] sm:$0xff] }
 0x3fb   : > { %v8652_v57 = vpop.f32.mrb[65].mxu0  ;;  %v3882_v62 = vld [vmem:[#allocation2 + $0x3c8] sm:$0xff] }
 0x3fd   : > { %4630 = vmatmul.mubr.f32.gmra.mrb[88].mxu1 %v8584_v8  ;;  %v6296_v8 = vpack.c.bf16 %v4146_v14, %v4145_v26  ;;  %v3828_v26 = vld [vmem:[#allocation2 + $0x218] sm:$0xff]  ;;  %v3838_v14 = vld [vmem:[#allocation2 + $0x268] sm:$0xff] }
 0x3fe   : > { %4634 = vmatprep.mubr.f32.mxu1 %v8612_v50  ;;  %v4147_v50 = vld [vmem:[#allocation9 + $0x310] sm:$0xff] }
 0x401   : > { %4635 = vmatmul.mubr.f32.gmra.mrb[90].mxu1 %v4024_v30  ;;  %v4161_v30 = vld [vmem:[#allocation9 + $0x380] sm:$0xff] }
 0x402   : > { %4639 = vmatprep.mubr.f32.mxu1 %v4034_v6  ;;  %v4162_v6 = vld [vmem:[#allocation9 + $0x388] sm:$0xff] }
 0x404   : > { %v8656_v10 = vpop.f32.mrb[66].mxu0 }
 0x405   : > { %v8658_v7 = vpop.f32.mrb[67].mxu0  ;;  %4640 = vmatmul.mubr.f32.gmra.mrb[92].mxu1 %v8604_v31  ;;  %v6299_v31 = vpack.c.bf16 %v4148_v33, %v4147_v50  ;;  %v3837_v33 = vld [vmem:[#allocation2 + $0x260] sm:$0xff] }
 0x406   : > { %4644 = vmatprep.mubr.f32.mxu1 %v8622_v46  ;;  %v4149_v46 = vld [vmem:[#allocation9 + $0x320] sm:$0xff] }
 0x407   : > { %v6302_v35 = vpack.c.bf16 %v4150_v63, %v4149_v46  ;;  %v4165_v46 = vld [vmem:[#allocation9 + $0x3a0] sm:$0xff]  ;;  %v4166_v63 = vld [vmem:[#allocation9 + $0x3a8] sm:$0xff] }
 0x409   : > { %4645 = vmatmul.mubr.f32.gmra.mrb[94].mxu1 %v4042_v15  ;;  %v6320_v15 = vpack.c.bf16 %v4162_v6, %v4161_v30  ;;  %v4176_v30 = vld [vmem:[#allocation9 + $0x3f8] sm:$0xff] }
 0x40a   : > { %4714 = vmatprep.mubr.f32.mxu1 %v3766_v41  ;;  %v4163_v41 = vld [vmem:[#allocation9 + $0x390] sm:$0xff] }
 0x40b   : > { %v8662_v45 = vpop.f32.mrb[68].mxu0 }
 0x40c   : > { %v8664_v25 = vpop.f32.mrb[69].mxu0 }
 0x40d   : > { %4715 = vmatmul.mubr.f32.vlgmr.msra.gmra.mrb[32].mxu1 %v3765_v60 }
 0x40e   : > { %4719 = vmatprep.mubr.f32.mxu1 %v3775_v19  ;;  %6297 = vmatpush1.bf16.msra.mxu1 %v6296_v8  ;;  %v4164_v8 = vld [vmem:[#allocation9 + $0x398] sm:$0xff]  ;;  %v3847_v19 = vld [vmem:[#allocation2 + $0x2b0] sm:$0xff] }
 0x40f   : > { %6298 = vmatprep.subr.bf16.mxu1 %v7103_v0 }
 0x411   : > { %4720 = vmatmul.mubr.f32.gmra.mrb[34].mxu1 %v3774_v43  ;;  %v3846_v43 = vld [vmem:[#allocation2 + $0x2a8] sm:$0xff] }
 0x412   : > { %4724 = vmatprep.mubr.f32.mxu1 %v3784_v32  ;;  %6300 = vmatpush1.bf16.msra.mxu1 %v6299_v31  ;;  %v6323_v31 = vpack.c.bf16 %v4164_v8, %v4163_v41  ;;  %v3856_v32 = vld [vmem:[#allocation2 + $0x2f8] sm:$0xff] }
 0x413   : > { %6301 = vmatprep.subr.bf16.mxu1 %v7103_v0  ;;  %v3900_v8 = vld [vmem:[#allocation2 + $0x458] sm:$0xff] }
 0x415   : > { %v8668_v53 = vpop.f32.mrb[70].mxu0  ;;  %4725 = vmatmul.mubr.f32.gmra.mrb[36].mxu1 %v3783_v17 }
 0x416   : > { %v8670_v40 = vpop.f32.mrb[71].mxu0  ;;  %4729 = vmatprep.mubr.f32.mxu1 %v3793_v27  ;;  %6303 = vmatpush1.bf16.msra.mxu1 %v6302_v35  ;;  %v6326_v35 = vpack.c.bf16 %v4166_v63, %v4165_v46  ;;  %v3855_v27 = vld [vmem:[#allocation2 + $0x2f0] sm:$0xff] }
 0x417   : > { %6304 = vmatprep.subr.bf16.mxu1 %v7103_v0  ;;  %v3919_v63 = vld [vmem:[#allocation2 + $0x4f0] sm:$0xff] }
 0x419   : > { %4730 = vmatmul.mubr.f32.gmra.mrb[38].mxu1 %v3792_v29  ;;  %v4169_v29 = vld [vmem:[#allocation9 + $0x3c0] sm:$0xff] }
 0x41a   : > { %4734 = vmatprep.mubr.f32.mxu1 %v3802_v49  ;;  %6306 = vmatpush1.bf16.msra.mxu1 %v6305_v16  ;;  %v4170_v49 = vld [vmem:[#allocation9 + $0x3c8] sm:$0xff] }
 0x41b   : > { %6307 = vmatprep.subr.bf16.mxu1 %v7103_v0  ;;  %v6332_v58 = vpack.c.bf16 %v4170_v49, %v4169_v29  ;;  %v3955_v29 = vld [vmem:[#allocation2 + $0x610] sm:$0xff]  ;;  %v3954_v49 = vld [vmem:[#allocation2 + $0x608] sm:$0xff] }
 0x41d   : > { %v8674_v22 = vpop.f32.mrb[72].mxu0  ;;  %4735 = vmatmul.mubr.f32.gmra.mrb[40].mxu1 %v3801_v21  ;;  %v4171_v21 = vld [vmem:[#allocation9 + $0x3d0] sm:$0xff] }
 0x41e   : > { %v8676_v37 = vpop.f32.mrb[73].mxu0  ;;  %4739 = vmatprep.mubr.f32.mxu1 %v3811_v44  ;;  %6309 = vmatpush1.bf16.msra.mxu1 %v6308_v28  ;;  %v3864_v28 = vld [vmem:[#allocation2 + $0x338] sm:$0xff] }
 0x41f   : > { %6310 = vmatprep.subr.bf16.mxu1 %v7103_v0  ;;  %v4172_v44 = vld [vmem:[#allocation9 + $0x3d8] sm:$0xff] }
 0x421   : > { %4740 = vmatmul.mubr.f32.gmra.mrb[42].mxu1 %v3810_v20  ;;  %v3883_v20 = vld [vmem:[#allocation2 + $0x3d0] sm:$0xff] }
 0x422   : > { %4744 = vmatprep.mubr.f32.mxu1 %v3820_v55  ;;  %6312 = vmatpush1.bf16.msra.mxu1 %v6311_v34  ;;  %v6335_v55 = vpack.c.bf16 %v4172_v44, %v4171_v21  ;;  %v3972_v21 = vld [vmem:[#allocation2 + $0x698] sm:$0xff]  ;;  %v3982_v44 = vld [vmem:[#allocation2 + $0x6e8] sm:$0xff] }
 0x423   : > { %6313 = vmatprep.subr.bf16.mxu1 %v7103_v0 }
 0x425   : > { %v8680_v2 = vpop.f32.mrb[74].mxu0  ;;  %4745 = vmatmul.mubr.f32.gmra.mrb[44].mxu1 %v3819_v61  ;;  %v3892_v61 = vld [vmem:[#allocation2 + $0x418] sm:$0xff] }
 0x426   : > { %v8682_v23 = vpop.f32.mrb[75].mxu0  ;;  %4749 = vmatprep.mubr.f32.mxu1 %v3829_v24  ;;  %6315 = vmatpush1.bf16.msra.mxu1 %v6314_v51  ;;  %v4173_v51 = vld [vmem:[#allocation9 + $0x3e0] sm:$0xff] }
 0x427   : > { %6316 = vmatprep.subr.bf16.mxu1 %v7103_v0  ;;  %v6338_v24 = vpack.c.bf16 %v4174_v9, %v4173_v51  ;;  %v4000_v51 = vld [vmem:[#allocation2 + $0x778] sm:$0xff]  ;;  %v3999_v9 = vld [vmem:[#allocation2 + $0x770] sm:$0xff] }
 0x429   : > { %4750 = vmatmul.mubr.f32.gmra.mrb[46].mxu1 %v3828_v26  ;;  %v3891_v26 = vld [vmem:[#allocation2 + $0x410] sm:$0xff] }
 0x42a   : > { %4754 = vmatprep.mubr.f32.mxu1 %v3838_v14  ;;  %6318 = vmatpush1.bf16.msra.mxu1 %v6317_v39  ;;  %v4175_v39 = vld [vmem:[#allocation9 + $0x3f0] sm:$0xff] }
 0x42b   : > { %6319 = vmatprep.subr.bf16.mxu1 %v7103_v0  ;;  %v6341_v41 = vpack.c.bf16 %v4176_v30, %v4175_v39  ;;  %v4017_v39 = vld [vmem:[#allocation2 + $0x800] sm:$0xff]  ;;  %v4027_v30 = vld [vmem:[#allocation2 + $0x850] sm:$0xff] }
 0x42d   : > { %v8686_v50 = vpop.f32.mrb[76].mxu0  ;;  %4755 = vmatmul.mubr.f32.gmra.mrb[48].mxu1 %v3837_v33  ;;  %v3910_v33 = vld [vmem:[#allocation2 + $0x4a8] sm:$0xff] }
 0x42e   : > { %v8688_v60 = vpop.f32.mrb[77].mxu0  ;;  %4759 = vmatprep.mubr.f32.mxu1 %v3847_v19  ;;  %6321 = vmatpush1.bf16.msra.mxu1 %v6320_v15  ;;  %v3901_v15 = vld [vmem:[#allocation2 + $0x460] sm:$0xff] }
 0x42f   : > { %6322 = vmatprep.subr.bf16.mxu1 %v7103_v0 }
 0x431   : > { %4760 = vmatmul.mubr.f32.gmra.mrb[50].mxu1 %v3846_v43  ;;  %v3918_v43 = vld [vmem:[#allocation2 + $0x4e8] sm:$0xff] }
 0x432   : > { %4764 = vmatprep.mubr.f32.mxu1 %v3856_v32  ;;  %6324 = vmatpush1.bf16.msra.mxu1 %v6323_v31  ;;  %v3909_v31 = vld [vmem:[#allocation2 + $0x4a0] sm:$0xff]  ;;  %v3928_v32 = vld [vmem:[#allocation2 + $0x538] sm:$0xff] }
 0x433   : > { %6325 = vmatprep.subr.bf16.mxu1 %v7103_v0 }
 0x435   : > { %v8692_v17 = vpop.f32.mrb[78].mxu0  ;;  %4765 = vmatmul.mubr.f32.gmra.mrb[52].mxu1 %v3855_v27  ;;  %v3936_v27 = vld [vmem:[#allocation2 + $0x578] sm:$0xff] }
 0x436   : > { %v8694_v16 = vpop.f32.mrb[79].mxu0  ;;  %4769 = vmatprep.mubr.f32.mxu1 %v3865_v54  ;;  %6327 = vmatpush1.bf16.msra.mxu1 %v6326_v35  ;;  %v3927_v35 = vld [vmem:[#allocation2 + $0x530] sm:$0xff]  ;;  %v3946_v54 = vld [vmem:[#allocation2 + $0x5c8] sm:$0xff] }
 0x437   : > { %6328 = vmatprep.subr.bf16.mxu1 %v7103_v0 }
 0x439   : > { %4770 = vmatmul.mubr.f32.gmra.mrb[54].mxu1 %v3864_v28  ;;  %v3964_v28 = vld [vmem:[#allocation2 + $0x658] sm:$0xff] }
 0x43a   : > { %4774 = vmatprep.mubr.f32.mxu1 %v3874_v12  ;;  %6330 = vmatpush1.bf16.msra.mxu1 %v6329_v56  ;;  %v3945_v56 = vld [vmem:[#allocation2 + $0x5c0] sm:$0xff]  ;;  %v3963_v12 = vld [vmem:[#allocation2 + $0x650] sm:$0xff] }
 0x43b   : > { %6331 = vmatprep.subr.bf16.mxu1 %v7103_v0 }
 0x43d   : > { %v8698_v34 = vpop.f32.mrb[80].mxu0  ;;  %4775 = vmatmul.mubr.f32.gmra.mrb[56].mxu1 %v3873_v5  ;;  %v3981_v5 = vld [vmem:[#allocation2 + $0x6e0] sm:$0xff] }
 0x43e   : > { %v8700_v3 = vpop.f32.mrb[81].mxu0  ;;  %4779 = vmatprep.mubr.f32.mxu1 %v3883_v20  ;;  %6333 = vmatpush1.bf16.msra.mxu1 %v6332_v58  ;;  %v3973_v58 = vld [vmem:[#allocation2 + $0x6a0] sm:$0xff]  ;;  %v3991_v20 = vld [vmem:[#allocation2 + $0x730] sm:$0xff] }
 0x43f   : > { %6334 = vmatprep.subr.bf16.mxu1 %v7103_v0 }
 0x441   : > { %4780 = vmatmul.mubr.f32.gmra.mrb[58].mxu1 %v3882_v62  ;;  %v4009_v62 = vld [vmem:[#allocation2 + $0x7c0] sm:$0xff] }
 0x442   : > { %4784 = vmatprep.mubr.f32.mxu1 %v3892_v61  ;;  %6336 = vmatpush1.bf16.msra.mxu1 %v6335_v55  ;;  %v3990_v55 = vld [vmem:[#allocation2 + $0x728] sm:$0xff]  ;;  %v4008_v61 = vld [vmem:[#allocation2 + $0x7b8] sm:$0xff] }
 0x443   : > { %6337 = vmatprep.subr.bf16.mxu1 %v7103_v0 }
 0x445   : > { %4785 = vmatmul.mubr.f32.gmra.mrb[60].mxu1 %v3891_v26  ;;  %v4026_v26 = vld [vmem:[#allocation2 + $0x848] sm:$0xff] }
 0x446   : > { %4789 = vmatprep.mubr.f32.mxu1 %v3901_v15  ;;  %6339 = vmatpush1.bf16.msra.mxu1 %v6338_v24  ;;  %v4018_v24 = vld [vmem:[#allocation2 + $0x808] sm:$0xff]  ;;  %v4035_v15 = vld [vmem:[#allocation2 + $0x890] sm:$0xff] }
 0x447   : > { %v8704_v6 = vpop.f32.mrb[82].mxu0  ;;  %6340 = vmatprep.subr.bf16.mxu1 %v7103_v0 }
 0x448   : > { %v8706_v14 = vpop.f32.mrb[83].mxu0 }
 0x449   : > { %4790 = vmatmul.mubr.f32.gmra.mrb[62].mxu1 %v3900_v8  ;;  %v4044_v8 = vld [vmem:[#allocation2 + $0x8d8] sm:$0xff] }
 0x44a   : > { %4794 = vmatprep.mubr.f32.mxu1 %v3910_v33  ;;  %6342 = vmatpush1.bf16.msra.mxu1 %v6341_v41  ;;  %v4045_v41 = vld [vmem:[#allocation2 + $0x8e0] sm:$0xff]  ;;  %v3768_v33 = vld [vmem:[#allocation2 + $0x38] sm:$0xff] }
 0x44b   : > { %6375 = vmatprep.subr.bf16.mxu1 %v8146_v42 }
 0x44d   : > { %4795 = vmatmul.mubr.f32.gmra.mrb[64].mxu1 %v3909_v31  ;;  %v3767_v31 = vld [vmem:[#allocation2 + $0x30] sm:$0xff] }
 0x44e   : > { %v8710_v19 = vpop.f32.mrb[84].mxu0  ;;  %4799 = vmatprep.mubr.f32.mxu1 %v3919_v63  ;;  %v3777_v63 = vld [vmem:[#allocation2 + $0x80] sm:$0xff] }
 0x44f   : > { %v8712_v46 = vpop.f32.mrb[85].mxu0 }
 0x451   : > { %4800 = vmatmul.mubr.f32.gmra.mrb[66].mxu1 %v3918_v43  ;;  %v6924_v43 = vld [vmem:[#allocation2 + $0x78] sm:$0xff] }
 0x452   : > { %4804 = vmatprep.mubr.f32.mxu1 %v3928_v32  ;;  %v3786_v32 = vld [vmem:[#allocation2 + $0xc8] sm:$0xff] }
 0x455   : > { %v8714_v0 = vpop.f32.mrb[86].mxu0  ;;  %4805 = vmatmul.mubr.f32.gmra.mrb[68].mxu1 %v3927_v35  ;;  %v3795_v35 = vld [vmem:[#allocation2 + $0x110] sm:$0xff] }
 0x456   : > { %v8716_v1 = vpop.f32.mrb[87].mxu0  ;;  %4809 = vmatprep.mubr.f32.mxu1 %v3937_v18  ;;  %v6925_v18 = vld [vmem:[#allocation2 + $0x108] sm:$0xff] }
 0x459   : > { %4810 = vmatmul.mubr.f32.gmra.mrb[70].mxu1 %v3936_v27  ;;  %v3803_v27 = vld [vmem:[#allocation2 + $0x150] sm:$0xff] }
 0x45a   : > { %4814 = vmatprep.mubr.f32.mxu1 %v3946_v54  ;;  %v6926_v54 = vld [vmem:[#allocation2 + $0x198] sm:$0xff] }
 0x45d   : > { %4815 = vmatmul.mubr.f32.gmra.mrb[72].mxu1 %v3945_v56  ;;  %v3821_v56 = vld [vmem:[#allocation2 + $0x1e0] sm:$0xff] }
 0x45e   : > { %4819 = vmatprep.mubr.f32.mxu1 %v3955_v29  ;;  %v6927_v29 = vld [vmem:[#allocation2 + $0x228] sm:$0xff] }
 0x461   : > { %4820 = vmatmul.mubr.f32.gmra.mrb[74].mxu1 %v3954_v49  ;;  %v3839_v49 = vld [vmem:[#allocation2 + $0x270] sm:$0xff] }
 0x462   : > { %4824 = vmatprep.mubr.f32.mxu1 %v3964_v28  ;;  %v3849_v28 = vld [vmem:[#allocation2 + $0x2c0] sm:$0xff] }
 0x465   : > { %4825 = vmatmul.mubr.f32.gmra.mrb[76].mxu1 %v3963_v12  ;;  %v3858_v12 = vld [vmem:[#allocation2 + $0x308] sm:$0xff] }
 0x466   : > { %4829 = vmatprep.mubr.f32.mxu1 %v3973_v58  ;;  %v3857_v58 = vld [vmem:[#allocation2 + $0x300] sm:$0xff] }
 0x469   : > { %4830 = vmatmul.mubr.f32.gmra.mrb[78].mxu1 %v3972_v21  ;;  %v3867_v21 = vld [vmem:[#allocation2 + $0x350] sm:$0xff] }
 0x46a   : > { %4834 = vmatprep.mubr.f32.mxu1 %v3982_v44  ;;  %v3876_v44 = vld [vmem:[#allocation2 + $0x398] sm:$0xff] }
 0x46d   : > { %4835 = vmatmul.mubr.f32.gmra.mrb[80].mxu1 %v3981_v5  ;;  %v3875_v5 = vld [vmem:[#allocation2 + $0x390] sm:$0xff] }
 0x46e   : > { %4839 = vmatprep.mubr.f32.mxu1 %v3991_v20  ;;  %v3885_v20 = vld [vmem:[#allocation2 + $0x3e0] sm:$0xff] }
 0x471   : > { %4840 = vmatmul.mubr.f32.gmra.mrb[82].mxu1 %v3990_v55  ;;  %v3894_v55 = vld [vmem:[#allocation2 + $0x428] sm:$0xff] }
 0x472   : > { %4844 = vmatprep.mubr.f32.mxu1 %v4000_v51  ;;  %v3893_v51 = vld [vmem:[#allocation2 + $0x420] sm:$0xff] }
 0x475   : > { %4845 = vmatmul.mubr.f32.gmra.mrb[84].mxu1 %v3999_v9  ;;  %v3903_v9 = vld [vmem:[#allocation2 + $0x470] sm:$0xff] }
 0x476   : > { %4849 = vmatprep.mubr.f32.mxu1 %v4009_v62  ;;  %v6931_v62 = vld [vmem:[#allocation2 + $0x468] sm:$0xff] }
 0x479   : > { %4850 = vmatmul.mubr.f32.gmra.mrb[86].mxu1 %v4008_v61  ;;  %v3912_v61 = vld [vmem:[#allocation2 + $0x4b8] sm:$0xff] }
 0x47a   : > { %4854 = vmatprep.mubr.f32.mxu1 %v4018_v24  ;;  %v3911_v24 = vld [vmem:[#allocation2 + $0x4b0] sm:$0xff] }
 0x47d   : > { %4855 = vmatmul.mubr.f32.gmra.mrb[88].mxu1 %v4017_v39  ;;  %v3921_v39 = vld [vmem:[#allocation2 + $0x500] sm:$0xff] }
 0x47e   : > { %4859 = vmatprep.mubr.f32.mxu1 %v4027_v30  ;;  %v6932_v30 = vld [vmem:[#allocation2 + $0x4f8] sm:$0xff] }
 0x481   : > { %4860 = vmatmul.mubr.f32.gmra.mrb[90].mxu1 %v4026_v26  ;;  %v3930_v26 = vld [vmem:[#allocation2 + $0x548] sm:$0xff] }
 0x482   : > { %4864 = vmatprep.mubr.f32.mxu1 %v8616_v11  ;;  %v3785_v11 = vld [vmem:[#allocation2 + $0xc0] sm:$0xff] }
 0x485   : > { %4865 = vmatmul.mubr.f32.gmra.mrb[92].mxu1 %v4035_v15  ;;  %v3929_v15 = vld [vmem:[#allocation2 + $0x540] sm:$0xff] }
 0x486   : > { %4869 = vmatprep.mubr.f32.mxu1 %v4045_v41  ;;  %v3939_v41 = vld [vmem:[#allocation2 + $0x590] sm:$0xff] }
 0x489   : > { %4870 = vmatmul.mubr.f32.gmra.mrb[94].mxu1 %v4044_v8  ;;  %v6933_v8 = vld [vmem:[#allocation2 + $0x588] sm:$0xff] }
 0x48a   : > { %4939 = vmatprep.mubr.f32.mxu1 %v3768_v33  ;;  %v3948_v33 = vld [vmem:[#allocation2 + $0x5d8] sm:$0xff] }
 0x48d   : > { %4940 = vmatmul.mubr.f32.vlgmr.msra.gmra.mrb[32].mxu1 %v3767_v31  ;;  %v3947_v31 = vld [vmem:[#allocation2 + $0x5d0] sm:$0xff] }
 0x48e   : > { %4944 = vmatprep.mubr.f32.mxu1 %v3777_v63  ;;  %6383 = vmatpush3.bf16.msra.mxu1 %v8146_v42  ;;  %v3804_v42 = vld [vmem:[#allocation2 + $0x158] sm:$0xff]  ;;  %v3957_v63 = vld [vmem:[#allocation2 + $0x620] sm:$0xff] }
 0x48f   : > { %6376 = vmatprep.subr.bf16.mxu1 %v8158_v36 }
 0x491   : > { %4945 = vmatmul.mubr.f32.gmra.mrb[34].mxu1 %v6924_v43  ;;  %v6934_v43 = vld [vmem:[#allocation2 + $0x618] sm:$0xff] }
 0x492   : > { %4949 = vmatprep.mubr.f32.mxu1 %v3786_v32  ;;  %6384 = vmatpush3.bf16.msra.mxu1 %v8158_v36  ;;  %v3813_v36 = vld [vmem:[#allocation2 + $0x1a0] sm:$0xff]  ;;  %v3966_v32 = vld [vmem:[#allocation2 + $0x668] sm:$0xff] }
 0x493   : > { %6377 = vmatprep.subr.bf16.mxu1 %v8169_v48 }
 0x495   : > { %4950 = vmatmul.mubr.f32.gmra.mrb[36].mxu1 %v3785_v11  ;;  %v3965_v11 = vld [vmem:[#allocation2 + $0x660] sm:$0xff] }
 0x496   : > { %4954 = vmatprep.mubr.f32.mxu1 %v3795_v35  ;;  %6385 = vmatpush3.bf16.msra.mxu1 %v8169_v48  ;;  %v3822_v48 = vld [vmem:[#allocation2 + $0x1e8] sm:$0xff]  ;;  %v3975_v35 = vld [vmem:[#allocation2 + $0x6b0] sm:$0xff] }
 0x497   : > { %6378 = vmatprep.subr.bf16.mxu1 %v8178_v52 }
 0x499   : > { %4955 = vmatmul.mubr.f32.gmra.mrb[38].mxu1 %v6925_v18  ;;  %v6935_v18 = vld [vmem:[#allocation2 + $0x6a8] sm:$0xff] }
 0x49a   : > { %4959 = vmatprep.mubr.f32.mxu1 %v3804_v42  ;;  %6386 = vmatpush3.bf16.msra.mxu1 %v8178_v52  ;;  %v3831_v52 = vld [vmem:[#allocation2 + $0x230] sm:$0xff]  ;;  %v3984_v42 = vld [vmem:[#allocation2 + $0x6f8] sm:$0xff] }
 0x49b   : > { %6379 = vmatprep.subr.bf16.mxu1 %v8185_v38 }
 0x49d   : > { %4960 = vmatmul.mubr.f32.gmra.mrb[40].mxu1 %v3803_v27  ;;  %v3983_v27 = vld [vmem:[#allocation2 + $0x6f0] sm:$0xff] }
 0x49e   : > { %4964 = vmatprep.mubr.f32.mxu1 %v3813_v36  ;;  %6387 = vmatpush3.bf16.msra.mxu1 %v8185_v38  ;;  %v3840_v38 = vld [vmem:[#allocation2 + $0x278] sm:$0xff]  ;;  %v3993_v36 = vld [vmem:[#allocation2 + $0x740] sm:$0xff] }
 0x49f   : > { %6380 = vmatprep.subr.bf16.mxu1 %v8196_v13 }
 0x4a1   : > { %4965 = vmatmul.mubr.f32.gmra.mrb[42].mxu1 %v6926_v54  ;;  %v6936_v54 = vld [vmem:[#allocation2 + $0x738] sm:$0xff] }
 0x4a2   : > { %4969 = vmatprep.mubr.f32.mxu1 %v3822_v48  ;;  %6388 = vmatpush3.bf16.msra.mxu1 %v8196_v13  ;;  %v6928_v13 = vld [vmem:[#allocation2 + $0x2b8] sm:$0xff]  ;;  %v4002_v48 = vld [vmem:[#allocation2 + $0x788] sm:$0xff] }
 0x4a3   : > { %6381 = vmatprep.subr.bf16.mxu1 %v8203_v59 }
 0x4a5   : > { %4970 = vmatmul.mubr.f32.gmra.mrb[44].mxu1 %v3821_v56  ;;  %v4001_v56 = vld [vmem:[#allocation2 + $0x780] sm:$0xff] }
 0x4a6   : > { %4974 = vmatprep.mubr.f32.mxu1 %v3831_v52  ;;  %6389 = vmatpush3.bf16.msra.mxu1 %v8203_v59  ;;  %v6929_v59 = vld [vmem:[#allocation2 + $0x348] sm:$0xff]  ;;  %v4011_v52 = vld [vmem:[#allocation2 + $0x7d0] sm:$0xff] }
 0x4a7   : > { %6382 = vmatprep.subr.bf16.mxu1 %v8213_v4 }
 0x4a9   : > { %4975 = vmatmul.mubr.f32.gmra.mrb[46].mxu1 %v6927_v29  ;;  %v6937_v29 = vld [vmem:[#allocation2 + $0x7c8] sm:$0xff] }
 0x4aa   : > { %4979 = vmatprep.mubr.f32.mxu1 %v3840_v38  ;;  %6390 = vmatpush3.bf16.msra.mxu1 %v8213_v4  ;;  %v6930_v4 = vld [vmem:[#allocation2 + $0x3d8] sm:$0xff] }
 0x4ab   : > { %v4020_v38 = vld [vmem:[#allocation2 + $0x818] sm:$0xff] }
 0x4ad   : > { %4980 = vmatmul.mubr.f32.gmra.mrb[48].mxu1 %v3839_v49  ;;  %v4019_v49 = vld [vmem:[#allocation2 + $0x810] sm:$0xff] }
 0x4ae   : > { %4984 = vmatprep.mubr.f32.mxu1 %v3849_v28  ;;  %v4029_v28 = vld [vmem:[#allocation2 + $0x860] sm:$0xff] }
 0x4b1   : > { %4985 = vmatmul.mubr.f32.gmra.mrb[50].mxu1 %v6928_v13  ;;  %v6938_v13 = vld [vmem:[#allocation2 + $0x858] sm:$0xff] }
 0x4b2   : > { %4989 = vmatprep.mubr.f32.mxu1 %v3858_v12  ;;  %v6939_v12 = vld [vmem:[#allocation2 + $0x8] sm:$0xff] }
 0x4b5   : > { %4990 = vmatmul.mubr.f32.gmra.mrb[52].mxu1 %v3857_v58  ;;  %v4037_v58 = vld [vmem:[#allocation2 + $0x8a0] sm:$0xff] }
 0x4b6   : > { %4994 = vmatprep.mubr.f32.mxu1 %v3867_v21  ;;  %v3985_v21 = vld [vmem:[#allocation2 + $0x700] sm:$0xff] }
 0x4b9   : > { %4995 = vmatmul.mubr.f32.gmra.mrb[54].mxu1 %v6929_v59  ;;  %v3994_v59 = vld [vmem:[#allocation2 + $0x748] sm:$0xff] }
 0x4ba   : > { %4999 = vmatprep.mubr.f32.mxu1 %v3876_v44  ;;  %v4003_v44 = vld [vmem:[#allocation2 + $0x790] sm:$0xff] }
 0x4bd   : > { %5000 = vmatmul.mubr.f32.gmra.mrb[56].mxu1 %v3875_v5  ;;  %v4012_v5 = vld [vmem:[#allocation2 + $0x7d8] sm:$0xff] }
 0x4be   : > { %5004 = vmatprep.mubr.f32.mxu1 %v3885_v20  ;;  %v4021_v20 = vld [vmem:[#allocation2 + $0x820] sm:$0xff] }
 0x4c1   : > { %5005 = vmatmul.mubr.f32.gmra.mrb[58].mxu1 %v6930_v4  ;;  %v4030_v4 = vld [vmem:[#allocation2 + $0x868] sm:$0xff] }
 0x4c2   : > { %5009 = vmatprep.mubr.f32.mxu1 %v3894_v55  ;;  %v4048_v55 = vld [vmem:[#allocation2 + $0x8f8] sm:$0xff] }
 0x4c5   : > { %5010 = vmatmul.mubr.f32.gmra.mrb[60].mxu1 %v3893_v51  ;;  %v8737_v51 = vld [vmem:[%s8918_s4] ss:$0 sm:$0xff] }
 0x4c6   : > { %5014 = vmatprep.mubr.f32.mxu1 %v3903_v9 }
 0x4c9   : > { %5015 = vmatmul.mubr.f32.gmra.mrb[62].mxu1 %v6931_v62 }
 0x4ca   : > { %5019 = vmatprep.mubr.f32.mxu1 %v3912_v61 }
 0x4cd   : > { %5020 = vmatmul.mubr.f32.gmra.mrb[64].mxu1 %v3911_v24  ;;  %v5325_v24 = vld [vmem:[%s7325_s12] sm:$0xff] }
 0x4ce   : > { %5024 = vmatprep.mubr.f32.mxu1 %v3921_v39 }
 0x4d1   : > { %5025 = vmatmul.mubr.f32.gmra.mrb[66].mxu1 %v6932_v30 }
 0x4d2   : > { %5029 = vmatprep.mubr.f32.mxu1 %v3930_v26 }
 0x4d5   : > { %5030 = vmatmul.mubr.f32.gmra.mrb[68].mxu1 %v3929_v15 }
 0x4d6   : > { %5034 = vmatprep.mubr.f32.mxu1 %v3939_v41 }
 0x4d9   : > { %5035 = vmatmul.mubr.f32.gmra.mrb[70].mxu1 %v6933_v8  ;;  %v5326_v8 = vld [vmem:[%s7325_s12 + $0x8] sm:$0xff] }
 0x4da   : > { %5039 = vmatprep.mubr.f32.mxu1 %v3948_v33 }
 0x4dd   : > { %5040 = vmatmul.mubr.f32.gmra.mrb[72].mxu1 %v3947_v31 }
 0x4de   : > { %5044 = vmatprep.mubr.f32.mxu1 %v3957_v63 }
 0x4e1   : > { %5045 = vmatmul.mubr.f32.gmra.mrb[74].mxu1 %v6934_v43 }
 0x4e2   : > { %5049 = vmatprep.mubr.f32.mxu1 %v3966_v32 }
 0x4e5   : > { %5050 = vmatmul.mubr.f32.gmra.mrb[76].mxu1 %v3965_v11  ;;  %v5327_v11 = vld [vmem:[%s7325_s12 + $0x10] sm:$0xff] }
 0x4e6   : > { %5054 = vmatprep.mubr.f32.mxu1 %v3975_v35 }
 0x4e9   : > { %5055 = vmatmul.mubr.f32.gmra.mrb[78].mxu1 %v6935_v18 }
 0x4ea   : > { %5059 = vmatprep.mubr.f32.mxu1 %v3984_v42 }
 0x4ed   : > { %5060 = vmatmul.mubr.f32.gmra.mrb[80].mxu1 %v3983_v27 }
 0x4ee   : > { %5064 = vmatprep.mubr.f32.mxu1 %v3993_v36 }
 0x4f1   : > { %5065 = vmatmul.mubr.f32.gmra.mrb[82].mxu1 %v6936_v54  ;;  %v5328_v54 = vld [vmem:[%s7325_s12 + $0x18] sm:$0xff] }
 0x4f2   : > { %5069 = vmatprep.mubr.f32.mxu1 %v4002_v48 }
 0x4f5   : > { %5070 = vmatmul.mubr.f32.gmra.mrb[84].mxu1 %v4001_v56 }
 0x4f6   : > { %5074 = vmatprep.mubr.f32.mxu1 %v4011_v52 }
 0x4f9   : > { %5075 = vmatmul.mubr.f32.gmra.mrb[86].mxu1 %v6937_v29 }
 0x4fa   : > { %5079 = vmatprep.mubr.f32.mxu1 %v4020_v38 }
 0x4fd   : > { %5080 = vmatmul.mubr.f32.gmra.mrb[88].mxu1 %v4019_v49 }
 0x4fe   : > { %5084 = vmatprep.mubr.f32.mxu1 %v4029_v28 }
 0x501   : > { %5085 = vmatmul.mubr.f32.gmra.mrb[90].mxu1 %v6938_v13 }
 0x502   : > { %5089 = vmatprep.mubr.f32.mxu1 %v6939_v12 }
 0x505   : > { %5090 = vmatmul.mubr.f32.gmra.mrb[92].mxu1 %v4037_v58 }
 0x506   : > { %5094 = vmatprep.mubr.f32.mxu1 %v6939_v12 }
 0x509   : > { %5095 = vmatmul.mubr.f32.gmra.mrb[94].mxu1 %v6939_v12 }
 0x50a   : > { %5915 = vmatprep.mubr.f32.mxu1 %v3985_v21 }
 0x50d   : > { %5916 = vmatmul.mubr.f32.vlgmr.msra.gmra.mrb[96].mxu1 %v3994_v59 }
 0x50e   : > { %5918 = vmatprep.mubr.f32.mxu1 %v4003_v44 }
 0x511   : > { %5919 = vmatmul.mubr.f32.gmra.mrb[98].mxu1 %v4012_v5 }
 0x512   : > { %5921 = vmatprep.mubr.f32.mxu1 %v4021_v20 }
 0x515   : > { %5922 = vmatmul.mubr.f32.gmra.mrb[100].mxu1 %v4030_v4 }
 0x516   : > { %5924 = vmatprep.mubr.f32.mxu1 %v6939_v12 }
 0x519   : > { %5925 = vmatmul.mubr.f32.gmra.mrb[102].mxu1 %v4048_v55 }
 0x560   : > { %v4941_v9 = vpop.f32.mrb[32].mxu1 }
 0x561   : > { %v6423_v62 = vadd.f32 %v8737_v51, %v4941_v9  ;;  %v4943_v61 = vpop.f32.mrb[33].mxu1 }
 0x563   : > { %v5167_v39 = vadd.f32 %v6423_v62, %v8652_v57 }
 0x564   : > { %v4946_v30 = vpop.f32.mrb[34].mxu1 }
 0x565   : > { %v5357_v26 = vadd.f32 %v5325_v24, %v5167_v39  ;;  %v6424_v15 = vadd.f32 %v8737_v51, %v4946_v30  ;;  %v4948_v41 = vpop.f32.mrb[35].mxu1 }
 0x567   : > { %v5389_v33 = vmax.f32 %v5357_v26, 0.0  ;;  %v5172_v31 = vadd.f32 %v6424_v15, %v8650_v47 }
 0x568   : > { %v4951_v63 = vpop.f32.mrb[36].mxu1 }
 0x569   : > { %5421 = vst [vmem:[%s8747_s13] sm:$0xff] %v5389_v33  ;;  %v5358_v43 = vadd.f32 %v5326_v8, %v5172_v31  ;;  %v6425_v57 = vadd.f32 %v8737_v51, %v4951_v63  ;;  %v4953_v32 = vpop.f32.mrb[37].mxu1 }
 0x56b   : > { %v5390_v35 = vmax.f32 %v5358_v43, 0.0  ;;  %v5177_v18 = vadd.f32 %v6425_v57, %v8658_v7  ;;  %v5329_v7 = vld [vmem:[%s7325_s12 + $0x20] sm:$0xff] }
 0x56c   : > { %v4956_v42 = vpop.f32.mrb[38].mxu1 }
 0x56d   : > { %5422 = vst [vmem:[%s8747_s13 + $0x8] sm:$0xff] %v5390_v35  ;;  %v5359_v47 = vadd.f32 %v5327_v11, %v5177_v18  ;;  %v6426_v27 = vadd.f32 %v8737_v51, %v4956_v42  ;;  %v4958_v36 = vpop.f32.mrb[39].mxu1 }
 0x56f   : > { %v5391_v48 = vmax.f32 %v5359_v47, 0.0  ;;  %v5182_v56 = vadd.f32 %v6426_v27, %v8656_v10  ;;  %v5330_v10 = vld [vmem:[%s7325_s12 + $0x28] sm:$0xff] }
 0x570   : > { %v4961_v52 = vpop.f32.mrb[40].mxu1 }
 0x571   : > { %5423 = vst [vmem:[%s8747_s13 + $0x10] sm:$0xff] %v5391_v48  ;;  %v5360_v29 = vadd.f32 %v5328_v54, %v5182_v56  ;;  %v6427_v38 = vadd.f32 %v8737_v51, %v4961_v52  ;;  %v4963_v49 = vpop.f32.mrb[41].mxu1 }
 0x573   : > { %v5392_v28 = vmax.f32 %v5360_v29, 0.0  ;;  %v5187_v13 = vadd.f32 %v6427_v38, %v8664_v25  ;;  %v5331_v25 = vld [vmem:[%s7325_s12 + $0x30] sm:$0xff] }
 0x574   : > { %v4966_v12 = vpop.f32.mrb[42].mxu1 }
 0x575   : > { %5424 = vst [vmem:[%s8747_s13 + $0x18] sm:$0xff] %v5392_v28  ;;  %v5361_v58 = vadd.f32 %v5329_v7, %v5187_v13  ;;  %v6428_v21 = vadd.f32 %v8737_v51, %v4966_v12  ;;  %v4968_v59 = vpop.f32.mrb[43].mxu1 }
 0x577   : > { %v5393_v44 = vmax.f32 %v5361_v58, 0.0  ;;  %v5192_v5 = vadd.f32 %v6428_v21, %v8662_v45  ;;  %v5332_v45 = vld [vmem:[%s7325_s12 + $0x38] sm:$0xff] }
 0x578   : > { %v4971_v20 = vpop.f32.mrb[44].mxu1 }
 0x579   : > { %5425 = vst [vmem:[%s8747_s13 + $0x20] sm:$0xff] %v5393_v44  ;;  %v5362_v4 = vadd.f32 %v5330_v10, %v5192_v5  ;;  %v6429_v55 = vadd.f32 %v8737_v51, %v4971_v20  ;;  %v4973_v9 = vpop.f32.mrb[45].mxu1 }
 0x57b   : > { %v5394_v62 = vmax.f32 %v5362_v4, 0.0  ;;  %v5197_v61 = vadd.f32 %v6429_v55, %v8670_v40  ;;  %v5333_v40 = vld [vmem:[%s7325_s12 + $0x40] sm:$0xff] }
 0x57c   : > { %v4976_v24 = vpop.f32.mrb[46].mxu1 }
 0x57d   : > { %5426 = vst [vmem:[%s8747_s13 + $0x28] sm:$0xff] %v5394_v62  ;;  %v5363_v39 = vadd.f32 %v5331_v25, %v5197_v61  ;;  %v6430_v30 = vadd.f32 %v8737_v51, %v4976_v24  ;;  %v4978_v26 = vpop.f32.mrb[47].mxu1 }
 0x57f   : > { %v5395_v15 = vmax.f32 %v5363_v39, 0.0  ;;  %v5202_v41 = vadd.f32 %v6430_v30, %v8668_v53  ;;  %v5334_v53 = vld [vmem:[%s7325_s12 + $0x48] sm:$0xff] }
 0x580   : > { %v4981_v8 = vpop.f32.mrb[48].mxu1 }
 0x581   : > { %5427 = vst [vmem:[%s8747_s13 + $0x30] sm:$0xff] %v5395_v15  ;;  %v5364_v33 = vadd.f32 %v5332_v45, %v5202_v41  ;;  %v6431_v31 = vadd.f32 %v8737_v51, %v4981_v8  ;;  %v4983_v63 = vpop.f32.mrb[49].mxu1 }
 0x583   : > { %v5396_v43 = vmax.f32 %v5364_v33, 0.0  ;;  %v5207_v57 = vadd.f32 %v6431_v31, %v8676_v37  ;;  %v5335_v37 = vld [vmem:[%s7325_s12 + $0x50] sm:$0xff] }
 0x584   : > { %v4986_v32 = vpop.f32.mrb[50].mxu1 }
 0x585   : > { %5428 = vst [vmem:[%s8747_s13 + $0x38] sm:$0xff] %v5396_v43  ;;  %v5365_v11 = vadd.f32 %v5333_v40, %v5207_v57  ;;  %v6432_v35 = vadd.f32 %v8737_v51, %v4986_v32  ;;  %v4988_v18 = vpop.f32.mrb[51].mxu1 }
 0x587   : > { %v5397_v42 = vmax.f32 %v5365_v11, 0.0  ;;  %v5212_v47 = vadd.f32 %v6432_v35, %v8674_v22  ;;  %v5336_v22 = vld [vmem:[%s7325_s12 + $0x58] sm:$0xff] }
 0x588   : > { %v4991_v27 = vpop.f32.mrb[52].mxu1 }
 0x589   : > { %5429 = vst [vmem:[%s8747_s13 + $0x40] sm:$0xff] %v5397_v42  ;;  %v5366_v36 = vadd.f32 %v5334_v53, %v5212_v47  ;;  %v6433_v54 = vadd.f32 %v8737_v51, %v4991_v27  ;;  %v4993_v48 = vpop.f32.mrb[53].mxu1 }
 0x58b   : > { %v5398_v56 = vmax.f32 %v5366_v36, 0.0  ;;  %v5217_v52 = vadd.f32 %v6433_v54, %v8682_v23  ;;  %v5337_v23 = vld [vmem:[%s7325_s12 + $0x60] sm:$0xff] }
 0x58c   : > { %v4996_v29 = vpop.f32.mrb[54].mxu1 }
 0x58d   : > { %5430 = vst [vmem:[%s8747_s13 + $0x48] sm:$0xff] %v5398_v56  ;;  %v5367_v38 = vadd.f32 %v5335_v37, %v5217_v52  ;;  %v6434_v49 = vadd.f32 %v8737_v51, %v4996_v29  ;;  %v4998_v7 = vpop.f32.mrb[55].mxu1 }
 0x58f   : > { %v5399_v28 = vmax.f32 %v5367_v38, 0.0  ;;  %v5222_v13 = vadd.f32 %v6434_v49, %v8680_v2  ;;  %v5338_v2 = vld [vmem:[%s7325_s12 + $0x68] sm:$0xff] }
 0x590   : > { %v5001_v12 = vpop.f32.mrb[56].mxu1 }
 0x591   : > { %5431 = vst [vmem:[%s8747_s13 + $0x50] sm:$0xff] %v5399_v28  ;;  %v5368_v58 = vadd.f32 %v5336_v22, %v5222_v13  ;;  %v6435_v21 = vadd.f32 %v8737_v51, %v5001_v12  ;;  %v5003_v59 = vpop.f32.mrb[57].mxu1 }
 0x593   : > { %v5400_v10 = vmax.f32 %v5368_v58, 0.0  ;;  %v5227_v44 = vadd.f32 %v6435_v21, %v8688_v60  ;;  %v5339_v60 = vld [vmem:[%s7325_s12 + $0x70] sm:$0xff] }
 0x594   : > { %v5006_v5 = vpop.f32.mrb[58].mxu1 }
 0x595   : > { %5432 = vst [vmem:[%s8747_s13 + $0x58] sm:$0xff] %v5400_v10  ;;  %v5369_v20 = vadd.f32 %v5337_v23, %v5227_v44  ;;  %v6436_v4 = vadd.f32 %v8737_v51, %v5006_v5  ;;  %v5008_v55 = vpop.f32.mrb[59].mxu1 }
 0x597   : > { %v5401_v9 = vmax.f32 %v5369_v20, 0.0  ;;  %v5232_v25 = vadd.f32 %v6436_v4, %v8686_v50  ;;  %v5340_v50 = vld [vmem:[%s7325_s12 + $0x78] sm:$0xff] }
 0x598   : > { %v5011_v62 = vpop.f32.mrb[60].mxu1 }
 0x599   : > { %5433 = vst [vmem:[%s8747_s13 + $0x60] sm:$0xff] %v5401_v9  ;;  %v5370_v61 = vadd.f32 %v5338_v2, %v5232_v25  ;;  %v6437_v24 = vadd.f32 %v8737_v51, %v5011_v62  ;;  %v5013_v39 = vpop.f32.mrb[61].mxu1 }
 0x59b   : > { %v5402_v30 = vmax.f32 %v5370_v61, 0.0  ;;  %v5237_v26 = vadd.f32 %v6437_v24, %v8694_v16  ;;  %v5341_v16 = vld [vmem:[%s7325_s12 + $0x80] sm:$0xff] }
 0x59c   : > { %v5016_v45 = vpop.f32.mrb[62].mxu1 }
 0x59d   : > { %5434 = vst [vmem:[%s8747_s13 + $0x68] sm:$0xff] %v5402_v30  ;;  %v5371_v15 = vadd.f32 %v5339_v60, %v5237_v26  ;;  %v6438_v41 = vadd.f32 %v8737_v51, %v5016_v45  ;;  %v5018_v8 = vpop.f32.mrb[63].mxu1  ;;  %v5348_v45 = vld [vmem:[%s7325_s12 + $0xb8] sm:$0xff] }
 0x59f   : > { %v5403_v33 = vmax.f32 %v5371_v15, 0.0  ;;  %v5242_v31 = vadd.f32 %v6438_v41, %v8692_v17  ;;  %v5342_v17 = vld [vmem:[%s7325_s12 + $0x88] sm:$0xff] }
 0x5a0   : > { %v5021_v63 = vpop.f32.mrb[64].mxu1 }
 0x5a1   : > { %5435 = vst [vmem:[%s8747_s13 + $0x70] sm:$0xff] %v5403_v33  ;;  %v5372_v40 = vadd.f32 %v5340_v50, %v5242_v31  ;;  %v6439_v43 = vadd.f32 %v8737_v51, %v5021_v63  ;;  %v5023_v57 = vpop.f32.mrb[65].mxu1 }
 0x5a3   : > { %v5404_v32 = vmax.f32 %v5372_v40, 0.0  ;;  %v5247_v11 = vadd.f32 %v6439_v43, %v8700_v3  ;;  %v5343_v3 = vld [vmem:[%s7325_s12 + $0x90] sm:$0xff] }
 0x5a4   : > { %v5026_v35 = vpop.f32.mrb[66].mxu1 }
 0x5a5   : > { %5436 = vst [vmem:[%s8747_s13 + $0x78] sm:$0xff] %v5404_v32  ;;  %v5373_v18 = vadd.f32 %v5341_v16, %v5247_v11  ;;  %v6440_v53 = vadd.f32 %v8737_v51, %v5026_v35  ;;  %v5028_v42 = vpop.f32.mrb[67].mxu1 }
 0x5a7   : > { %v5405_v47 = vmax.f32 %v5373_v18, 0.0  ;;  %v5252_v27 = vadd.f32 %v6440_v53, %v8698_v34  ;;  %v5344_v34 = vld [vmem:[%s7325_s12 + $0x98] sm:$0xff] }
 0x5a8   : > { %v5031_v36 = vpop.f32.mrb[68].mxu1 }
 0x5a9   : > { %5437 = vst [vmem:[%s8747_s13 + $0x80] sm:$0xff] %v5405_v47  ;;  %v5374_v54 = vadd.f32 %v5342_v17, %v5252_v27  ;;  %v6441_v48 = vadd.f32 %v8737_v51, %v5031_v36  ;;  %v5033_v37 = vpop.f32.mrb[69].mxu1  ;;  %v5350_v36 = vld [vmem:[%s7325_s12 + $0xc8] sm:$0xff] }
 0x5aa   : > { %v5349_v37 = vld [vmem:[%s7325_s12 + $0xc0] sm:$0xff] }
 0x5ab   : > { %v5406_v56 = vmax.f32 %v5374_v54, 0.0  ;;  %v5257_v52 = vadd.f32 %v6441_v48, %v8706_v14  ;;  %v5345_v14 = vld [vmem:[%s7325_s12 + $0xa0] sm:$0xff] }
 0x5ac   : > { %v5036_v29 = vpop.f32.mrb[70].mxu1 }
 0x5ad   : > { %5438 = vst [vmem:[%s8747_s13 + $0x88] sm:$0xff] %v5406_v56  ;;  %v5375_v38 = vadd.f32 %v5343_v3, %v5257_v52  ;;  %v6442_v49 = vadd.f32 %v8737_v51, %v5036_v29  ;;  %v5038_v7 = vpop.f32.mrb[71].mxu1 }
 0x5ae   : > { %v5352_v7 = vld [vmem:[%s7325_s12 + $0xd8] sm:$0xff] }
 0x5af   : > { %v5407_v22 = vmax.f32 %v5375_v38, 0.0  ;;  %v5262_v28 = vadd.f32 %v6442_v49, %v8704_v6  ;;  %v5346_v6 = vld [vmem:[%s7325_s12 + $0xa8] sm:$0xff] }
 0x5b0   : > { %v5041_v13 = vpop.f32.mrb[72].mxu1 }
 0x5b1   : > { %5439 = vst [vmem:[%s8747_s13 + $0x90] sm:$0xff] %v5407_v22  ;;  %v5376_v12 = vadd.f32 %v5344_v34, %v5262_v28  ;;  %v6443_v58 = vadd.f32 %v8737_v51, %v5041_v13  ;;  %v5043_v21 = vpop.f32.mrb[73].mxu1  ;;  %v5351_v13 = vld [vmem:[%s7325_s12 + $0xd0] sm:$0xff] }
 0x5b3   : > { %v5408_v59 = vmax.f32 %v5376_v12, 0.0  ;;  %v5267_v23 = vadd.f32 %v6443_v58, %v8712_v46  ;;  %v5347_v46 = vld [vmem:[%s7325_s12 + $0xb0] sm:$0xff] }
 0x5b4   : > { %v5046_v10 = vpop.f32.mrb[74].mxu1 }
 0x5b5   : > { %5440 = vst [vmem:[%s8747_s13 + $0x98] sm:$0xff] %v5408_v59  ;;  %v5377_v44 = vadd.f32 %v5345_v14, %v5267_v23  ;;  %v6444_v5 = vadd.f32 %v8737_v51, %v5046_v10  ;;  %v5048_v20 = vpop.f32.mrb[75].mxu1 }
 0x5b7   : > { %v5409_v4 = vmax.f32 %v5377_v44, 0.0  ;;  %v5272_v55 = vadd.f32 %v6444_v5, %v8710_v19  ;;  %v5354_v44 = vld [vmem:[%s7325_s12 + $0xe8] sm:$0xff] }
 0x5b8   : > { %v5051_v2 = vpop.f32.mrb[76].mxu1 }
 0x5b9   : > { %5441 = vst [vmem:[%s8747_s13 + $0xa0] sm:$0xff] %v5409_v4  ;;  %v5378_v9 = vadd.f32 %v5346_v6, %v5272_v55  ;;  %v6445_v25 = vadd.f32 %v8737_v51, %v5051_v2  ;;  %v5053_v62 = vpop.f32.mrb[77].mxu1  ;;  %v5353_v4 = vld [vmem:[%s7325_s12 + $0xe0] sm:$0xff] }
 0x5bb   : > { %v5410_v61 = vmax.f32 %v5378_v9, 0.0  ;;  %v5277_v24 = vadd.f32 %v6445_v25, %v8716_v1 }
 0x5bc   : > { %v5056_v39 = vpop.f32.mrb[78].mxu1 }
 0x5bd   : > { %5442 = vst [vmem:[%s8747_s13 + $0xa8] sm:$0xff] %v5410_v61  ;;  %v5379_v60 = vadd.f32 %v5347_v46, %v5277_v24  ;;  %v6446_v30 = vadd.f32 %v8737_v51, %v5056_v39  ;;  %v5058_v26 = vpop.f32.mrb[79].mxu1  ;;  %v5356_v24 = vld [vmem:[%s7325_s12 + $0xf8] sm:$0xff] }
 0x5be   : > { %v5355_v26 = vld [vmem:[%s7325_s12 + $0xf0] sm:$0xff]  ;;  %s7030_s12 = sshll.u32 %s7105_s8, 4  ;;  %s7031_s12 = int_to_ptr.vmem [resolvable:$false] %s7030_s12 }
 0x5bf   : > { %v5411_v19 = vmax.f32 %v5379_v60, 0.0  ;;  %v5282_v15 = vadd.f32 %v6446_v30, %v8714_v0  ;;  %s7032_s24 = scalar_lea.vmem %s7031_s12, 8192  ;;  %p7033_p7 = scmp.lt.s32.totalorder %s8868_s30, %s7031_s12 }
 0x5c0   : > { %v5061_v41 = vpop.f32.mrb[80].mxu1  ;;  %p7034_p9 = scmp.lt.s32.totalorder %s7032_s24, %s7026_s6 }
 0x5c1   : > { %5443 = vst [vmem:[%s8747_s13 + $0xb0] sm:$0xff] %v5411_v19  ;;  %v5380_v8 = vadd.f32 %v5348_v45, %v5282_v15  ;;  %v5063_v50 = vpop.f32.mrb[81].mxu1  ;;  %v6447_v47 = vadd.f32 %v8737_v51, %v5061_v41 }
 0x5c2   : > { %p7035_p12 = por %p7034_p9, %p7033_p7 }
 0x5c3   : > { %v5412_v33 = vmax.f32 %v5380_v8, 0.0 }
 0x5c4   : > { %v5066_v31 = vpop.f32.mrb[82].mxu1  ;;  %p7036_p1 = pnand %p7035_p12, %p7029_p3 }
 0x5c5   : > { %5444 = vst [vmem:[%s8747_s13 + $0xb8] sm:$0xff] %v5412_v33  ;;  %v5068_v63 = vpop.f32.mrb[83].mxu1  ;;  %v6448_v17 = vadd.f32 %v8737_v51, %v5066_v31 }
 0x5c8   : > { %v5071_v1 = vpop.f32.mrb[84].mxu1 }
 0x5c9   : > { %v5073_v40 = vpop.f32.mrb[85].mxu1  ;;  %v6449_v29 = vadd.f32 %v8737_v51, %v5071_v1 }
 0x5cc   : > { %v5076_v43 = vpop.f32.mrb[86].mxu1 }
 0x5cd   : > { %v5078_v57 = vpop.f32.mrb[87].mxu1  ;;  %v6450_v56 = vadd.f32 %v8737_v51, %v5076_v43 }
 0x5d0   : > { %v5081_v16 = vpop.f32.mrb[88].mxu1 }
 0x5d1   : > { %v5083_v32 = vpop.f32.mrb[89].mxu1  ;;  %v6451_v59 = vadd.f32 %v8737_v51, %v5081_v16 }
 0x5d4   : > { %v5086_v11 = vpop.f32.mrb[90].mxu1 }
 0x5d5   : > { %v5088_v35 = vpop.f32.mrb[91].mxu1  ;;  %v6452_v21 = vadd.f32 %v8737_v51, %v5086_v11 }
 0x5d8   : > { %v5091_v18 = vpop.f32.mrb[92].mxu1 }
 0x5d9   : > { %v5093_v0 = vpop.f32.mrb[93].mxu1  ;;  %v6453_v62 = vadd.f32 %v8737_v51, %v5091_v18 }
 0x5dc   : > { %v5096_v53 = vpop.f32.mrb[94].mxu1 }
 0x5dd   : > { %v5098_v42 = vpop.f32.mrb[95].mxu1  ;;  %v6454_v9 = vadd.f32 %v8737_v51, %v5096_v53 }
 0x5e0   : > { %v5917_v27 = vpop.f32.mrb[96].mxu1 }
 0x5e1   : > { %v5292_v54 = vadd.f32 %v6448_v17, %v5917_v27  ;;  %v5286_v48 = vpop.f32.mrb[97].mxu1 }
 0x5e2   : > { %v5287_v3 = vadd.f32 %v6447_v47, %v5286_v48 }
 0x5e3   : > { %v5382_v52 = vadd.f32 %v5350_v36, %v5292_v54 }
 0x5e4   : > { %v5381_v38 = vadd.f32 %v5349_v37, %v5287_v3  ;;  %v5920_v49 = vpop.f32.mrb[98].mxu1 }
 0x5e5   : > { %v5414_v34 = vmax.f32 %v5382_v52, 0.0  ;;  %v5302_v22 = vadd.f32 %v6450_v56, %v5920_v49  ;;  %v5296_v28 = vpop.f32.mrb[99].mxu1 }
 0x5e6   : > { %v5413_v12 = vmax.f32 %v5381_v38, 0.0  ;;  %v5297_v58 = vadd.f32 %v6449_v29, %v5296_v28 }
 0x5e7   : > { %5446 = vst [vmem:[%s8747_s13 + $0xc8] sm:$0xff] %v5414_v34  ;;  %v5384_v14 = vadd.f32 %v5352_v7, %v5302_v22 }
 0x5e8   : > { %5445 = vst [vmem:[%s8747_s13 + $0xc0] sm:$0xff] %v5413_v12  ;;  %v5383_v23 = vadd.f32 %v5351_v13, %v5297_v58  ;;  %v5923_v10 = vpop.f32.mrb[100].mxu1 }
 0x5e9   : > { %v5416_v5 = vmax.f32 %v5384_v14, 0.0  ;;  %v5312_v20 = vadd.f32 %v6452_v21, %v5923_v10  ;;  %v5306_v6 = vpop.f32.mrb[101].mxu1 }
 0x5ea   : > { %v5415_v55 = vmax.f32 %v5383_v23, 0.0  ;;  %v5307_v2 = vadd.f32 %v6451_v59, %v5306_v6 }
 0x5eb   : > { %5448 = vst [vmem:[%s8747_s13 + $0xd8] sm:$0xff] %v5416_v5  ;;  %v5386_v25 = vadd.f32 %v5354_v44, %v5312_v20 }
 0x5ec   : > { %5447 = vst [vmem:[%s8747_s13 + $0xd0] sm:$0xff] %v5415_v55  ;;  %v5385_v46 = vadd.f32 %v5353_v4, %v5307_v2  ;;  %v5926_v61 = vpop.f32.mrb[102].mxu1 }
 0x5ed   : > { %v5418_v39 = vmax.f32 %v5386_v25, 0.0  ;;  %v5322_v60 = vadd.f32 %v6454_v9, %v5926_v61  ;;  %v5316_v30 = vpop.f32.mrb[103].mxu1 }
 0x5ee   : > { %v5417_v45 = vmax.f32 %v5385_v46, 0.0  ;;  %v5317_v19 = vadd.f32 %v6453_v62, %v5316_v30 }
 0x5ef   : > { %5450 = vst [vmem:[%s8747_s13 + $0xe8] sm:$0xff] %v5418_v39  ;;  %v5388_v15 = vadd.f32 %v5356_v24, %v5322_v60 }
 0x5f0   : > { %5449 = vst [vmem:[%s8747_s13 + $0xe0] sm:$0xff] %v5417_v45  ;;  %v5387_v51 = vadd.f32 %v5355_v26, %v5317_v19 }
 0x5f1   : > { %v5420_v41 = vmax.f32 %v5388_v15, 0.0 }
 0x5f2   : > { %v5419_v8 = vmax.f32 %v5387_v51, 0.0 }
 0x5f3   : > { %5452 = vst [vmem:[%s8747_s13 + $0xf8] sm:$0xff] %v5420_v41 }
 0x5f4   : > { %5451 = vst [vmem:[%s8747_s13 + $0xf0] sm:$0xff] %v5419_v8 }
 0x5f5   : > { %7039 = shalt.err (!%p7036_p1)
}
 0x5f6   : > { %s7040_s26 = scalar_lea.hbm %s8866_s7, 4096  ;;  %s7044_s10 = scalar_lea.hbm %s8919_s5, 8192 }
 0x5f7   : > { %p7041_p13 = scmp.ne.s32.totalorder %s8866_s7, %s7040_s26  ;;  %p7045_p4 = scmp.lt.u32.totalorder %s8866_s7, %s8919_s5 }
 0x5f8   : > { %p7046_p5 = scmp.lt.u32.totalorder %s7044_s10, %s7040_s26  ;;  %p7048_p11 = scmp.lt.u32.totalorder %s7040_s26, %s8866_s7 }
 0x5f9   : > { %p7042_p6 = pnand %p7041_p13, %p8933_p0 }
 0x5fa   : > { %p7047_p8 = por %p7046_p5, %p7045_p4 }
 0x5fb   : > { %p7043_p10 = pneg %p7042_p6 }
 0x5fc   : > { %p7049_p2 = por %p7048_p11, %p7047_p8 }
 0x5fe   : > { %p7050_p3 = pnand %p7049_p2, %p7043_p10 }
 0x600   : > { %7053 = shalt.err (!%p7050_p3)
}
 0x601   : > { %s7106_s9 = smov 128   ;;  %s7107_s11 = smov 8  }
 0x602   : > { %6849 = dma.vmem_to_hbm [thread:$0]  (%p8933_p0), %s8868_s30, 4096, %s8866_s7, %s5454_s22, %s7106_s9, %s7106_s9, %s7107_s11  }
 0x603 PF: > { %s5482_s17 = sand.u32 1, %s7084_s18   ;;  %p8934_p7 = scmp.ne.s32.totalorder %s8924_s25, 0 }
 0x604   : > { %p8935_p9 = scmp.ge.s32.totalorder %s7096_s21, 2  ;;  %s5483_s6 = scalar_lea.sflag [#allocation6], %s5482_s17 }
 0x606   : > { %p6863_p12 = pnand %p8935_p9, %p8934_p7 }
 0x608   : > { %7079 = dma.done.wait (!%p6863_p12), %s5483_s6, 4096  }
 0x609   : > { %7081 = vsyncadd (!%p6863_p12), %s5483_s6, 4294963200  ;;  %p19_p1 = scmp.ge.s32.totalorder %s7254_s29, 4   ;;  %s8936_s18 = smov %s7088_s19 }
 0x60a   : > { %s8937_s19 = smov %s7092_s20  ;;  %s8938_s20 = smov %s7270_s27 }
 0x60b   : > { %s8939_s21 = smov %s7254_s29  ;;  %21 = sbr.rel (!%p19_p1) target bundleno = 6 (0x6), region = 97 }
 0x612   :  { %5488 = vsyncpa [#allocation5], 1 }
 0x613   :  { %5490 = vsyncpa [#allocation5 + $0x1], 1 }
 0x614   :  { %5491 = vsyncpa [#allocation8], 1 }
 0x615   :  { %5492 = vsyncpa [#allocation6], 1 }
 0x616   :  { %5494 = vsyncpa [#allocation6 + $0x1], 1 }

</bundles_post_ra>
